<compile_context>
chip_gen: v6e
topology: v6e:2x2x1
jax: 0.10.0
libtpu: 0.0.40
codegen_flags: <defaults>
</compile_context>

<pallas_src>
import functools
import math

import jax
import jax.numpy as jnp
from jax.experimental import pallas as pl
from jax.experimental.pallas import tpu as pltpu


def _gcn_chain_kernel(n_real, x_ref, w1_ref, b1_ref, w2_ref, b2_ref,
                      w3_ref, b3_ref, wca_ref, wcb_ref, bc_ref, out_ref):
    """Fused 3x GCNConv(chain) + tanh + pairwise-concat Linear classifier."""
    n_pad = x_ref.shape[0]

    # Per-row symmetric-normalization coefficients for the chain graph with
    # self loops: degree = 2 at the two endpoints, 3 in the interior.  Padding
    # rows get s = 0 so they never contribute to (or leak into) real rows.
    row = jax.lax.broadcasted_iota(jnp.int32, (n_pad, 1), 0)
    deg = jnp.where((row == 0) | (row == n_real - 1), 2.0, 3.0).astype(jnp.float32)
    s = jnp.where(row < n_real, jax.lax.rsqrt(deg), 0.0)          # (n_pad, 1) f32

    def gcn_layer(h_bf16, w_ref, b_ref):
        # X @ W on the MXU: bf16 operands, f32 accumulation.
        z = jnp.dot(h_bf16, w_ref[...], preferred_element_type=jnp.float32)
        u = s * z                                                 # pad rows -> 0
        # Tridiagonal propagation as a sublane stencil (XLU rolls + VPU adds).
        # Summing both rolls is symmetric, so no endpoint masks are required;
        # the wrapped rows are the all-zero padding rows.
        agg = u + pltpu.roll(u, 1, axis=0) + pltpu.roll(u, n_pad - 1, axis=0)
        return jnp.tanh(s * agg + b_ref[...])                     # f32 epilogue

    h = gcn_layer(x_ref[...], w1_ref, b1_ref)
    h = gcn_layer(h.astype(jnp.bfloat16), w2_ref, b2_ref)
    h = gcn_layer(h.astype(jnp.bfloat16), w3_ref, b3_ref)

    # Classifier: [h_i, h_{i+1}] @ Wc + bc == h_i @ Wc[:D] + h_{i+1} @ Wc[D:] + bc.
    # h_{i+1} via sublane roll by n_pad-1 (== -1); the wrapped entry only lands
    # in padding rows that the wrapper slices away.
    h_next = pltpu.roll(h, n_pad - 1, axis=0)
    logits = (jnp.dot(h.astype(jnp.bfloat16), wca_ref[...],
                      preferred_element_type=jnp.float32)
              + jnp.dot(h_next.astype(jnp.bfloat16), wcb_ref[...],
                        preferred_element_type=jnp.float32)
              + bc_ref[...])
    out_ref[...] = logits


def gcn_chain_forward(x, layer1, layer2, layer3, wc, bc):
    """Runs the fused GCN-chain forward pass. Returns (N-1, 2) logits.

    x:        (N, D) f32 token features (BERT output).
    layer*:   (W, b) with W of shape (D, D) laid out so that h @ W matches
              PyG's h @ weight.T, and b of shape (D,).
    wc, bc:   classifier Linear(2D, 2): wc (2D, 2) == weight.T, bc (2,).
    """
    n, d = x.shape
    assert n >= 2 and d % 128 == 0, (n, d)

    # Pad rows to a sublane multiple with at least one all-zero row so the
    # stencil wraparound only ever touches zeroed padding.
    n_pad = ((n + 1 + 7) // 8) * 8
    c_pad = 128                                    # lane-dense classifier output

    x_pad = jnp.zeros((n_pad, d), jnp.bfloat16).at[:n, :].set(x.astype(jnp.bfloat16))

    def layer_params(w, b):
        return w.astype(jnp.bfloat16), b.reshape(1, d).astype(jnp.float32)

    w1, b1 = layer_params(*layer1)
    w2, b2 = layer_params(*layer2)
    w3, b3 = layer_params(*layer3)

    n_cls = wc.shape[1]
    wca = jnp.zeros((d, c_pad), jnp.bfloat16).at[:, :n_cls].set(wc[:d].astype(jnp.bfloat16))
    wcb = jnp.zeros((d, c_pad), jnp.bfloat16).at[:, :n_cls].set(wc[d:].astype(jnp.bfloat16))
    bcp = jnp.zeros((1, c_pad), jnp.float32).at[0, :n_cls].set(bc.astype(jnp.float32))

    vmem = pl.BlockSpec(memory_space=pltpu.MemorySpace.VMEM)
    out = pl.pallas_call(
        functools.partial(_gcn_chain_kernel, n),
        out_shape=jax.ShapeDtypeStruct((n_pad, c_pad), jnp.float32),
        in_specs=[vmem] * 10,
        out_specs=vmem,
        compiler_params=pltpu.CompilerParams(
            # Whole problem resident in VMEM; stay under the 64 MiB physical
            # VMEM of v7x (v5e/v6e have 128 MiB).
            vmem_limit_bytes=48 * 1024 * 1024,
        ),
    )(x_pad, w1, b1, w2, b2, w3, b3, wca, wcb, bcp)

    # Strip row padding (keep pair rows 0..N-2) and the 2 real logit lanes.
    return out[: n - 1, :n_cls]


def _reference_forward(x, w1, b1, w2, b2, w3, b3, wc, bc):
    """Pure-JAX f32 reference with an explicit dense normalized adjacency."""
    n = x.shape[0]
    a_hat = (jnp.eye(n) + jnp.eye(n, k=1) + jnp.eye(n, k=-1)).astype(jnp.float32)
    d_inv_sqrt = 1.0 / jnp.sqrt(jnp.sum(a_hat, axis=1))
    a_norm = a_hat * d_inv_sqrt[:, None] * d_inv_sqrt[None, :]
    h = jnp.tanh(a_norm @ (x @ w1) + b1)
    h = jnp.tanh(a_norm @ (h @ w2) + b2)
    h = jnp.tanh(a_norm @ (h @ w3) + b3)
    pairs = jnp.concatenate([h[:-1], h[1:]], axis=1)      # (n-1, 2D)
    return pairs @ wc + bc


if __name__ == "__main__":
    N, D = 16, 768          # 16 tokens; hidden size fixed at 768 by the module
    key = jax.random.PRNGKey(0)
    kx, k1, k2, k3, kb1, kb2, kb3, kwc, kbc = jax.random.split(key, 9)

    x = jax.random.normal(kx, (N, D), jnp.float32)
    gcn_scale = 1.0 / math.sqrt(D)
    w1 = jax.random.normal(k1, (D, D), jnp.float32) * gcn_scale   # == PyG weight.T
    w2 = jax.random.normal(k2, (D, D), jnp.float32) * gcn_scale
    w3 = jax.random.normal(k3, (D, D), jnp.float32) * gcn_scale
    b1 = jax.random.normal(kb1, (D,), jnp.float32) * 0.02
    b2 = jax.random.normal(kb2, (D,), jnp.float32) * 0.02
    b3 = jax.random.normal(kb3, (D,), jnp.float32) * 0.02
    wc = jax.random.normal(kwc, (2 * D, 2), jnp.float32) / math.sqrt(2 * D)
    bc = jax.random.normal(kbc, (2,), jnp.float32) * 0.02

    logits = gcn_chain_forward(x, (w1, b1), (w2, b2), (w3, b3), wc, bc)
    logits = jax.block_until_ready(logits)
    assert logits.shape == (N - 1, 2), logits.shape

    ref = _reference_forward(x, w1, b1, w2, b2, w3, b3, wc, bc)
    err = float(jnp.max(jnp.abs(logits - ref)))
    assert err < 1e-1, f"kernel/reference mismatch: max abs err = {err}"

    print("KERNEL_OK")
</pallas_src>

<mosaic_0001>
module attributes {stable_mosaic.version = 11 : i64} {
  func.func @_gcn_chain_kernel(%arg0: memref<24x768xbf16, #tpu.memory_space<vmem>>, %arg1: memref<768x768xbf16, #tpu.memory_space<vmem>>, %arg2: memref<1x768xf32, #tpu.memory_space<vmem>>, %arg3: memref<768x768xbf16, #tpu.memory_space<vmem>>, %arg4: memref<1x768xf32, #tpu.memory_space<vmem>>, %arg5: memref<768x768xbf16, #tpu.memory_space<vmem>>, %arg6: memref<1x768xf32, #tpu.memory_space<vmem>>, %arg7: memref<768x128xbf16, #tpu.memory_space<vmem>>, %arg8: memref<768x128xbf16, #tpu.memory_space<vmem>>, %arg9: memref<1x128xf32, #tpu.memory_space<vmem>>, %arg10: memref<24x128xf32, #tpu.memory_space<vmem>>) attributes {dimension_semantics = [], scalar_prefetch = 0 : i64, scratch_operands = 0 : i64, tpu.core_type = #tpu.core_type<tc>} {
    %0 = tpu.iota {dimensions = array<i32: 0>} : vector<24x1xi32>
    %c0_i32 = arith.constant 0 : i32
    %1 = vector.broadcast %c0_i32 : i32 to vector<24x1xi32>
    %2 = arith.cmpi eq, %0, %1 : vector<24x1xi32>
    %c15_i32 = arith.constant 15 : i32
    %3 = vector.broadcast %c15_i32 : i32 to vector<24x1xi32>
    %4 = arith.cmpi eq, %0, %3 : vector<24x1xi32>
    %5 = arith.ori %2, %4 : vector<24x1xi1>
    %cst = arith.constant 2.000000e+00 : f32
    %cst_0 = arith.constant 3.000000e+00 : f32
    %6 = vector.broadcast %cst : f32 to vector<24x1xf32>
    %7 = vector.broadcast %cst_0 : f32 to vector<24x1xf32>
    %8 = arith.select %5, %6, %7 : vector<24x1xi1>, vector<24x1xf32>
    %c16_i32 = arith.constant 16 : i32
    %9 = vector.broadcast %c16_i32 : i32 to vector<24x1xi32>
    %10 = arith.cmpi slt, %0, %9 : vector<24x1xi32>
    %11 = math.rsqrt %8 : vector<24x1xf32>
    %cst_1 = arith.constant 0.000000e+00 : f32
    %12 = vector.broadcast %cst_1 : f32 to vector<24x1xf32>
    %13 = arith.select %10, %11, %12 : vector<24x1xi1>, vector<24x1xf32>
    %c0 = arith.constant 0 : index
    %c0_2 = arith.constant 0 : index
    %14 = vector.load %arg0[%c0, %c0_2] : memref<24x768xbf16, #tpu.memory_space<vmem>>, vector<24x768xbf16>
    %c0_3 = arith.constant 0 : index
    %c0_4 = arith.constant 0 : index
    %15 = vector.load %arg1[%c0_3, %c0_4] : memref<768x768xbf16, #tpu.memory_space<vmem>>, vector<768x768xbf16>
    %cst_5 = arith.constant dense<0.000000e+00> : vector<24x768xf32>
    %16 = tpu.matmul %14, %15, %cst_5 {dimension_numbers = #tpu.dot_dimension_numbers<[1], [0], [0], [1], [0, 0, 1, 1], [], []>} : vector<24x768xbf16>, vector<768x768xbf16>, vector<24x768xf32> -> vector<24x768xf32>
    %17 = vector.broadcast %13 : vector<24x1xf32> to vector<24x768xf32>
    %18 = arith.mulf %17, %16 : vector<24x768xf32>
    %c1_i32 = arith.constant 1 : i32
    %19 = tpu.dynamic_rotate %18 by %c1_i32 dim 0 : vector<24x768xf32>, i32 -> vector<24x768xf32>
    %20 = arith.addf %18, %19 : vector<24x768xf32>
    %c23_i32 = arith.constant 23 : i32
    %21 = tpu.dynamic_rotate %18 by %c23_i32 dim 0 : vector<24x768xf32>, i32 -> vector<24x768xf32>
    %22 = arith.addf %20, %21 : vector<24x768xf32>
    %23 = vector.broadcast %13 : vector<24x1xf32> to vector<24x768xf32>
    %24 = arith.mulf %23, %22 : vector<24x768xf32>
    %c0_6 = arith.constant 0 : index
    %c0_7 = arith.constant 0 : index
    %25 = vector.load %arg2[%c0_6, %c0_7] : memref<1x768xf32, #tpu.memory_space<vmem>>, vector<1x768xf32>
    %26 = vector.broadcast %25 : vector<1x768xf32> to vector<24x768xf32>
    %27 = arith.addf %24, %26 : vector<24x768xf32>
    %28 = math.tanh %27 : vector<24x768xf32>
    %29 = arith.truncf %28 : vector<24x768xf32> to vector<24x768xbf16>
    %c0_8 = arith.constant 0 : index
    %c0_9 = arith.constant 0 : index
    %30 = vector.load %arg3[%c0_8, %c0_9] : memref<768x768xbf16, #tpu.memory_space<vmem>>, vector<768x768xbf16>
    %cst_10 = arith.constant dense<0.000000e+00> : vector<24x768xf32>
    %31 = tpu.matmul %29, %30, %cst_10 {dimension_numbers = #tpu.dot_dimension_numbers<[1], [0], [0], [1], [0, 0, 1, 1], [], []>} : vector<24x768xbf16>, vector<768x768xbf16>, vector<24x768xf32> -> vector<24x768xf32>
    %32 = vector.broadcast %13 : vector<24x1xf32> to vector<24x768xf32>
    %33 = arith.mulf %32, %31 : vector<24x768xf32>
    %c1_i32_11 = arith.constant 1 : i32
    %34 = tpu.dynamic_rotate %33 by %c1_i32_11 dim 0 : vector<24x768xf32>, i32 -> vector<24x768xf32>
    %35 = arith.addf %33, %34 : vector<24x768xf32>
    %c23_i32_12 = arith.constant 23 : i32
    %36 = tpu.dynamic_rotate %33 by %c23_i32_12 dim 0 : vector<24x768xf32>, i32 -> vector<24x768xf32>
    %37 = arith.addf %35, %36 : vector<24x768xf32>
    %38 = vector.broadcast %13 : vector<24x1xf32> to vector<24x768xf32>
    %39 = arith.mulf %38, %37 : vector<24x768xf32>
    %c0_13 = arith.constant 0 : index
    %c0_14 = arith.constant 0 : index
    %40 = vector.load %arg4[%c0_13, %c0_14] : memref<1x768xf32, #tpu.memory_space<vmem>>, vector<1x768xf32>
    %41 = vector.broadcast %40 : vector<1x768xf32> to vector<24x768xf32>
    %42 = arith.addf %39, %41 : vector<24x768xf32>
    %43 = math.tanh %42 : vector<24x768xf32>
    %44 = arith.truncf %43 : vector<24x768xf32> to vector<24x768xbf16>
    %c0_15 = arith.constant 0 : index
    %c0_16 = arith.constant 0 : index
    %45 = vector.load %arg5[%c0_15, %c0_16] : memref<768x768xbf16, #tpu.memory_space<vmem>>, vector<768x768xbf16>
    %cst_17 = arith.constant dense<0.000000e+00> : vector<24x768xf32>
    %46 = tpu.matmul %44, %45, %cst_17 {dimension_numbers = #tpu.dot_dimension_numbers<[1], [0], [0], [1], [0, 0, 1, 1], [], []>} : vector<24x768xbf16>, vector<768x768xbf16>, vector<24x768xf32> -> vector<24x768xf32>
    %47 = vector.broadcast %13 : vector<24x1xf32> to vector<24x768xf32>
    %48 = arith.mulf %47, %46 : vector<24x768xf32>
    %c1_i32_18 = arith.constant 1 : i32
    %49 = tpu.dynamic_rotate %48 by %c1_i32_18 dim 0 : vector<24x768xf32>, i32 -> vector<24x768xf32>
    %50 = arith.addf %48, %49 : vector<24x768xf32>
    %c23_i32_19 = arith.constant 23 : i32
    %51 = tpu.dynamic_rotate %48 by %c23_i32_19 dim 0 : vector<24x768xf32>, i32 -> vector<24x768xf32>
    %52 = arith.addf %50, %51 : vector<24x768xf32>
    %53 = vector.broadcast %13 : vector<24x1xf32> to vector<24x768xf32>
    %54 = arith.mulf %53, %52 : vector<24x768xf32>
    %c0_20 = arith.constant 0 : index
    %c0_21 = arith.constant 0 : index
    %55 = vector.load %arg6[%c0_20, %c0_21] : memref<1x768xf32, #tpu.memory_space<vmem>>, vector<1x768xf32>
    %56 = vector.broadcast %55 : vector<1x768xf32> to vector<24x768xf32>
    %57 = arith.addf %54, %56 : vector<24x768xf32>
    %58 = math.tanh %57 : vector<24x768xf32>
    %c23_i32_22 = arith.constant 23 : i32
    %59 = tpu.dynamic_rotate %58 by %c23_i32_22 dim 0 : vector<24x768xf32>, i32 -> vector<24x768xf32>
    %60 = arith.truncf %58 : vector<24x768xf32> to vector<24x768xbf16>
    %c0_23 = arith.constant 0 : index
    %c0_24 = arith.constant 0 : index
    %61 = vector.load %arg7[%c0_23, %c0_24] : memref<768x128xbf16, #tpu.memory_space<vmem>>, vector<768x128xbf16>
    %cst_25 = arith.constant dense<0.000000e+00> : vector<24x128xf32>
    %62 = tpu.matmul %60, %61, %cst_25 {dimension_numbers = #tpu.dot_dimension_numbers<[1], [0], [0], [1], [0, 0, 1, 1], [], []>} : vector<24x768xbf16>, vector<768x128xbf16>, vector<24x128xf32> -> vector<24x128xf32>
    %63 = arith.truncf %59 : vector<24x768xf32> to vector<24x768xbf16>
    %c0_26 = arith.constant 0 : index
    %c0_27 = arith.constant 0 : index
    %64 = vector.load %arg8[%c0_26, %c0_27] : memref<768x128xbf16, #tpu.memory_space<vmem>>, vector<768x128xbf16>
    %cst_28 = arith.constant dense<0.000000e+00> : vector<24x128xf32>
    %65 = tpu.matmul %63, %64, %cst_28 {dimension_numbers = #tpu.dot_dimension_numbers<[1], [0], [0], [1], [0, 0, 1, 1], [], []>} : vector<24x768xbf16>, vector<768x128xbf16>, vector<24x128xf32> -> vector<24x128xf32>
    %66 = arith.addf %62, %65 : vector<24x128xf32>
    %c0_29 = arith.constant 0 : index
    %c0_30 = arith.constant 0 : index
    %67 = vector.load %arg9[%c0_29, %c0_30] : memref<1x128xf32, #tpu.memory_space<vmem>>, vector<1x128xf32>
    %68 = vector.broadcast %67 : vector<1x128xf32> to vector<24x128xf32>
    %69 = arith.addf %66, %68 : vector<24x128xf32>
    %c0_31 = arith.constant 0 : index
    %c0_32 = arith.constant 0 : index
    %70 = vector.load %arg10[%c0_31, %c0_32] : memref<24x128xf32, #tpu.memory_space<vmem>>, vector<24x128xf32>
    tpu.vector_store %arg10[%c0_31, %c0_32], %69 {strides = array<i32>} : memref<24x128xf32, #tpu.memory_space<vmem>>, vector<24x128xf32>,
    return
  }
}

</mosaic_0001>

<bundles_post_ra>
// kernel: tpu_custom_call.1
= control target key start
LH: loop header
LB: loop body
LE: loop exit
PB: predicated region body
PF: predicated region fallthrough
CT: control target
= control target key end

     0   :  { %15 = vsyncpa [#allocation3], 0  ;;  %s12621_s0 = inlined_call_operand.hbm [shape: bf16[24,768], index: 0, kind: input, shape index: {}]   ;;  %s12622_s1 = inlined_call_operand.hbm [shape: bf16[768,768], index: 1, kind: input, shape index: {}]   ;;  %s12623_s2 = inlined_call_operand.hbm [shape: f32[1,768], index: 2, kind: input, shape index: {}]   ;;  %s12624_s3 = inlined_call_operand.hbm [shape: bf16[768,768], index: 3, kind: input, shape index: {}]   ;;  %s12625_s4 = inlined_call_operand.hbm [shape: f32[1,768], index: 4, kind: input, shape index: {}]   ;;  %s12626_s5 = inlined_call_operand.hbm [shape: bf16[768,768], index: 5, kind: input, shape index: {}]   ;;  %s12627_s6 = inlined_call_operand.hbm [shape: f32[1,768], index: 6, kind: input, shape index: {}]   ;;  %s12628_s7 = inlined_call_operand.hbm [shape: bf16[768,128], index: 7, kind: input, shape index: {}]   ;;  %s12629_s8 = inlined_call_operand.hbm [shape: bf16[768,128], index: 8, kind: input, shape index: {}]   ;;  %s12630_s9 = inlined_call_operand.hbm [shape: f32[1,128], index: 9, kind: input, shape index: {}]   ;;  %s12631_s10 = inlined_call_operand.hbm [shape: f32[24,128], index: 10, kind: output, shape index: {}]  }
   0x1   :  { %16 = vsyncpa [#allocation6], 0 }
   0x2   :  { %17 = vsyncpa [#allocation9], 0 }
   0x3   :  { %18 = vsyncpa [#allocation12], 0 }
   0x4   :  { %19 = vsyncpa [#allocation15], 0 }
   0x5   :  { %20 = vsyncpa [#allocation18], 0 }
   0x6   :  { %21 = vsyncpa [#allocation4], 0  ;;  %s11543_s13 = smov [#allocation5]   ;;  %s11544_s15 = smov [#allocation8]  }
   0x7   :  { %s39_s14 = sshll.u32 %s11543_s13, 4  ;;  %s61_s16 = sshll.u32 %s11544_s15, 4  ;;  %s40_s14 = int_to_ptr.vmem [resolvable:$true] %s39_s14  ;;  %s62_s16 = int_to_ptr.vmem [resolvable:$true] %s61_s16 }
   0x8   :  { %s11317_s17 = scalar_lea.vmem %s40_s14, 36864  ;;  %p11322_p1 = scmp.lt.s32.totalorder %s40_s14, %s40_s14 }
   0x9   :  { %p11318_p0 = scmp.ne.s32.totalorder %s40_s14, %s11317_s17  ;;  %p11323_p2 = scmp.lt.s32.totalorder %s11317_s17, %s11317_s17 }
   0xb   :  { %p11324_p3 = por %p11323_p2, %p11322_p1 }
   0xd   :  { %p11325_p4 = pnand %p11324_p3, %p11318_p0 }
   0xf   :  { %11328 = shalt.err (!%p11325_p4)
}
  0x10   :  { %s11545_s18 = smov 384   ;;  %s11546_s19 = smov 24  }
  0x11   :  { %45 = dma.hbm_to_vmem [thread:$0]  %s12622_s1, 36864, %s40_s14, [#allocation6], %s11545_s18, %s11545_s18, %s11546_s19  }
  0x12   :  { %s11337_s22 = scalar_lea.vmem %s62_s16, 36864  ;;  %p11342_p6 = scmp.lt.s32.totalorder %s62_s16, %s62_s16 }
  0x13   :  { %p11338_p5 = scmp.ne.s32.totalorder %s62_s16, %s11337_s22  ;;  %p11343_p7 = scmp.lt.s32.totalorder %s11337_s22, %s11337_s22 }
  0x15   :  { %p11344_p8 = por %p11343_p7, %p11342_p6 }
  0x17   :  { %p11345_p9 = pnand %p11344_p8, %p11338_p5 }
  0x19   :  { %11348 = shalt.err (!%p11345_p9)
}
  0x1a   :  { %67 = dma.hbm_to_vmem [thread:$0]  %s12624_s3, 36864, %s62_s16, [#allocation9], %s11545_s18, %s11545_s18, %s11546_s19  }
  0x1b   :  { %s11547_s25 = smov [#allocation11]   ;;  %s11548_s27 = smov [#allocation14]  }
  0x1c   :  { %s83_s26 = sshll.u32 %s11547_s25, 4  ;;  %s105_s28 = sshll.u32 %s11548_s27, 4  ;;  %s84_s26 = int_to_ptr.vmem [resolvable:$true] %s83_s26  ;;  %s106_s28 = int_to_ptr.vmem [resolvable:$true] %s105_s28 }
  0x1d   :  { %s11357_s1 = scalar_lea.vmem %s84_s26, 36864  ;;  %p11362_p11 = scmp.lt.s32.totalorder %s84_s26, %s84_s26 }
  0x1e   :  { %p11358_p10 = scmp.ne.s32.totalorder %s84_s26, %s11357_s1  ;;  %p11363_p12 = scmp.lt.s32.totalorder %s11357_s1, %s11357_s1 }
  0x20   :  { %p11364_p13 = por %p11363_p12, %p11362_p11 }
  0x22   :  { %p11365_p0 = pnand %p11364_p13, %p11358_p10 }
  0x24   :  { %11368 = shalt.err (!%p11365_p0)
}
  0x25   :  { %89 = dma.hbm_to_vmem [thread:$0]  %s12626_s5, 36864, %s84_s26, [#allocation12], %s11545_s18, %s11545_s18, %s11546_s19  }
  0x26   :  { %s11377_s3 = scalar_lea.vmem %s106_s28, 6144  ;;  %p11382_p2 = scmp.lt.s32.totalorder %s106_s28, %s106_s28 }
  0x27   :  { %p11378_p1 = scmp.ne.s32.totalorder %s106_s28, %s11377_s3  ;;  %p11383_p3 = scmp.lt.s32.totalorder %s11377_s3, %s11377_s3 }
  0x29   :  { %p11384_p4 = por %p11383_p3, %p11382_p2 }
  0x2b   :  { %p11385_p5 = pnand %p11384_p4, %p11378_p1 }
  0x2d   :  { %11388 = shalt.err (!%p11385_p5)
}
  0x2e   :  { %s11549_s11 = smov 64   ;;  %s11550_s12 = smov 4  }
  0x2f   :  { %111 = dma.hbm_to_vmem [thread:$0]  %s12628_s7, 6144, %s106_s28, [#allocation15], %s11549_s11, %s11549_s11, %s11550_s12  }
  0x30   :  { %s11551_s15 = smov [#allocation2]   ;;  %s11552_s17 = smov [#allocation7]  }
  0x31   :  { %s27_s16 = sshll.u32 %s11551_s15, 4  ;;  %s52_s5 = sshll.u32 %s11552_s17, 4  ;;  %s28_s16 = int_to_ptr.vmem [resolvable:$true] %s27_s16  ;;  %s53_s5 = int_to_ptr.vmem [resolvable:$true] %s52_s5 }
  0x32   :  { %s11397_s20 = scalar_lea.vmem %s28_s16, 1152  ;;  %p11402_p7 = scmp.lt.s32.totalorder %s28_s16, %s28_s16 }
  0x33   :  { %p11398_p6 = scmp.ne.s32.totalorder %s28_s16, %s11397_s20  ;;  %p11403_p8 = scmp.lt.s32.totalorder %s11397_s20, %s11397_s20 }
  0x35   :  { %p11404_p9 = por %p11403_p8, %p11402_p7 }
  0x37   :  { %p11405_p10 = pnand %p11404_p9, %p11398_p6 }
  0x39   :  { %11408 = shalt.err (!%p11405_p10)
}
  0x3a   :  { %33 = dma.hbm_to_vmem [thread:$0]  %s12621_s0, 1152, %s28_s16, [#allocation3], %s11545_s18, %s11545_s18, %s11546_s19  }
  0x3b   :  { %s11417_s7 = scalar_lea.vmem %s53_s5, 96  ;;  %p11422_p12 = scmp.lt.s32.totalorder %s53_s5, %s53_s5 }
  0x3c   :  { %p11418_p11 = scmp.ne.s32.totalorder %s53_s5, %s11417_s7  ;;  %p11423_p13 = scmp.lt.s32.totalorder %s11417_s7, %s11417_s7 }
  0x3e   :  { %p11424_p0 = por %p11423_p13, %p11422_p12 }
  0x40   :  { %p11425_p1 = pnand %p11424_p0, %p11418_p11 }
  0x42   :  { %11428 = shalt.err (!%p11425_p1)
}
  0x43   :  { %55 = dma.hbm_to_vmem [thread:$0]  %s12623_s2, 96, %s53_s5, [#allocation6]  }
  0x44   :  { %s11553_s25 = smov [#allocation10]   ;;  %s11554_s27 = smov [#allocation13]  }
  0x45   :  { %s74_s26 = sshll.u32 %s11553_s25, 4  ;;  %s96_s28 = sshll.u32 %s11554_s27, 4  ;;  %s75_s26 = int_to_ptr.vmem [resolvable:$true] %s74_s26  ;;  %s97_s28 = int_to_ptr.vmem [resolvable:$true] %s96_s28 }
  0x46   :  { %s11437_s1 = scalar_lea.vmem %s75_s26, 96  ;;  %p11442_p3 = scmp.lt.s32.totalorder %s75_s26, %s75_s26 }
  0x47   :  { %p11438_p2 = scmp.ne.s32.totalorder %s75_s26, %s11437_s1  ;;  %p11443_p4 = scmp.lt.s32.totalorder %s11437_s1, %s11437_s1 }
  0x49   :  { %p11444_p5 = por %p11443_p4, %p11442_p3 }
  0x4b   :  { %p11445_p6 = pnand %p11444_p5, %p11438_p2 }
  0x4d   :  { %11448 = shalt.err (!%p11445_p6)
}
  0x4e   :  { %77 = dma.hbm_to_vmem [thread:$0]  %s12625_s4, 96, %s75_s26, [#allocation9]  }
  0x4f   :  { %s11457_s19 = scalar_lea.vmem %s97_s28, 96  ;;  %p11462_p8 = scmp.lt.s32.totalorder %s97_s28, %s97_s28 }
  0x50   :  { %p11458_p7 = scmp.ne.s32.totalorder %s97_s28, %s11457_s19  ;;  %p11463_p9 = scmp.lt.s32.totalorder %s11457_s19, %s11457_s19 }
  0x52   :  { %p11464_p10 = por %p11463_p9, %p11462_p8 }
  0x54   :  { %p11465_p11 = pnand %p11464_p10, %p11458_p7 }
  0x56   :  { %11468 = shalt.err (!%p11465_p11)
}
  0x57   :  { %99 = dma.hbm_to_vmem [thread:$0]  %s12627_s6, 96, %s97_s28, [#allocation12]  }
  0x58   :  { %s11555_s30 = smov [#allocation16]   ;;  %s11556_s13 = smov [#allocation17]  }
  0x59   :  { %s117_s3 = sshll.u32 %s11555_s30, 4  ;;  %s130_s14 = sshll.u32 %s11556_s13, 4  ;;  %s118_s3 = int_to_ptr.vmem [resolvable:$true] %s117_s3  ;;  %s131_s14 = int_to_ptr.vmem [resolvable:$true] %s130_s14 }
  0x5a   :  { %s11477_s15 = scalar_lea.vmem %s118_s3, 6144  ;;  %p11482_p13 = scmp.lt.s32.totalorder %s118_s3, %s118_s3 }
  0x5b   :  { %p11478_p12 = scmp.ne.s32.totalorder %s118_s3, %s11477_s15  ;;  %p11483_p0 = scmp.lt.s32.totalorder %s11477_s15, %s11477_s15 }
  0x5d   :  { %p11484_p1 = por %p11483_p0, %p11482_p13 }
  0x5f   :  { %p11485_p2 = pnand %p11484_p1, %p11478_p12 }
  0x61   :  { %11488 = shalt.err (!%p11485_p2)
}
  0x62   :  { %123 = dma.hbm_to_vmem [thread:$0]  %s12629_s8, 6144, %s118_s3, [#allocation15], %s11549_s11, %s11549_s11, %s11550_s12  }
  0x63   :  { %s11497_s6 = scalar_lea.vmem %s131_s14, 16  ;;  %s11501_s17 = scalar_lea.vmem %s131_s14, 32 }
  0x64   :  { %p11498_p3 = scmp.ne.s32.totalorder %s131_s14, %s11497_s6  ;;  %p11502_p4 = scmp.lt.s32.totalorder %s131_s14, %s131_s14 }
  0x65   :  { %p11503_p5 = scmp.lt.s32.totalorder %s11501_s17, %s11497_s6 }
  0x67   :  { %p11504_p6 = por %p11503_p5, %p11502_p4 }
  0x69   :  { %p11505_p7 = pnand %p11504_p6, %p11498_p3 }
  0x6b   :  { %11508 = shalt.err (!%p11505_p7)
}
  0x6c   :  { %133 = dma.hbm_to_vmem [thread:$0]  %s12630_s9, 16, %s131_s14, [#allocation18]  }
  0x6d   :  { %11529 = dma.done.wait [#allocation3], 1152  }
  0x6e   :  { %11530 = vsyncadd [#allocation3], 4294966144 }
  0x6f   :  { %11531 = dma.done.wait [#allocation6], 36960  }
  0x70   :  { %11532 = vsyncadd [#allocation6], 4294930336 }
  0x71   :  { %11533 = dma.done.wait [#allocation9], 36960  }
  0x72   :  { %11534 = vsyncadd [#allocation9], 4294930336 }
  0x73   :  { %11535 = dma.done.wait [#allocation12], 36960  }
  0x74   :  { %11536 = vsyncadd [#allocation12], 4294930336 }
  0x75   :  { %11537 = dma.done.wait [#allocation15], 12288  }
  0x76   :  { %11538 = vsyncadd [#allocation15], 4294955008 }
  0x77   :  { %11539 = dma.done.wait [#allocation18], 16  }
  0x78   :  { %11540 = vsyncadd [#allocation18], 4294967280  ;;  %v9783_v0 = vld [vmem:[#allocation5 + $0x154] ss:$24 sps:$4 sm:$0xff]   ;;  %v9787_v2 = vld [vmem:[#allocation5 + $0x150] ss:$24 sps:$4 sm:$0xff]  }
  0x79   :  { %v9785_v1 = vld [vmem:[#allocation5 + $0x454] ss:$24 sps:$4 sm:$0xff]   ;;  %1978 = vmatprep.subr.bf16.mxu0 %v9783_v0  ;;  %v9788_v3 = vld [vmem:[#allocation5 + $0x450] ss:$24 sps:$4 sm:$0xff]   ;;  %v9789_v4 = vld [vmem:[#allocation5 + $0x124] ss:$24 sps:$4 sm:$0xff]  }
  0x7a   :  { %2029 = vmatprep.subr.bf16.mxu1 %v9785_v1  ;;  %1979 = vmatpush1.bf16.msra.mxu0 %v9787_v2  ;;  %v9791_v5 = vld [vmem:[#allocation5 + $0x424] ss:$24 sps:$4 sm:$0xff]   ;;  %v9793_v6 = vld [vmem:[#allocation5 + $0x120] ss:$24 sps:$4 sm:$0xff]   ;;  %v9795_v8 = vld [vmem:[#allocation5 + $0xf4] ss:$24 sps:$4 sm:$0xff]  }
  0x7b   :  { %2030 = vmatpush1.bf16.msra.mxu1 %v9788_v3  ;;  %1980 = vmatprep.subr.bf16.mxu0 %v9789_v4  ;;  %v9794_v7 = vld [vmem:[#allocation5 + $0x420] ss:$24 sps:$4 sm:$0xff]   ;;  %v9797_v9 = vld [vmem:[#allocation5 + $0x3f4] ss:$24 sps:$4 sm:$0xff]   ;;  %v9799_v10 = vld [vmem:[#allocation5 + $0xf0] ss:$24 sps:$4 sm:$0xff]  }
  0x7c   :  { %2031 = vmatprep.subr.bf16.mxu1 %v9791_v5  ;;  %v9800_v11 = vld [vmem:[#allocation5 + $0x3f0] ss:$24 sps:$4 sm:$0xff]   ;;  %v9801_v12 = vld [vmem:[#allocation5 + $0xc4] ss:$24 sps:$4 sm:$0xff]   ;;  %v9805_v14 = vld [vmem:[#allocation5 + $0xc0] ss:$24 sps:$4 sm:$0xff]  }
  0x7d   :  { %v9803_v13 = vld [vmem:[#allocation5 + $0x3c4] ss:$24 sps:$4 sm:$0xff]   ;;  %v9806_v15 = vld [vmem:[#allocation5 + $0x3c0] ss:$24 sps:$4 sm:$0xff]   ;;  %v9807_v16 = vld [vmem:[#allocation5 + $0x94] ss:$24 sps:$4 sm:$0xff]  }
  0x7e   :  { %1981 = vmatpush1.bf16.msra.mxu0 %v9793_v6  ;;  %v9809_v17 = vld [vmem:[#allocation5 + $0x394] ss:$24 sps:$4 sm:$0xff]   ;;  %v9811_v18 = vld [vmem:[#allocation5 + $0x90] ss:$24 sps:$4 sm:$0xff]   ;;  %v9813_v20 = vld [vmem:[#allocation5 + $0x64] ss:$24 sps:$4 sm:$0xff]  }
  0x7f   :  { %2032 = vmatpush1.bf16.msra.mxu1 %v9794_v7  ;;  %1982 = vmatprep.subr.bf16.mxu0 %v9795_v8  ;;  %v9812_v19 = vld [vmem:[#allocation5 + $0x390] ss:$24 sps:$4 sm:$0xff]   ;;  %v9815_v21 = vld [vmem:[#allocation5 + $0x364] ss:$24 sps:$4 sm:$0xff]   ;;  %v9817_v22 = vld [vmem:[#allocation5 + $0x60] ss:$24 sps:$4 sm:$0xff]  }
  0x80   :  { %2033 = vmatprep.subr.bf16.mxu1 %v9797_v9  ;;  %v9818_v23 = vld [vmem:[#allocation5 + $0x360] ss:$24 sps:$4 sm:$0xff]   ;;  %v9819_v24 = vld [vmem:[#allocation5 + $0x34] ss:$24 sps:$4 sm:$0xff]   ;;  %v9823_v26 = vld [vmem:[#allocation5 + $0x30] ss:$24 sps:$4 sm:$0xff]  }
  0x81   :  { %v9821_v25 = vld [vmem:[#allocation5 + $0x334] ss:$24 sps:$4 sm:$0xff]   ;;  %v9824_v27 = vld [vmem:[#allocation5 + $0x330] ss:$24 sps:$4 sm:$0xff]   ;;  %v9825_v28 = vld [vmem:[#allocation5 + $0x4] ss:$24 sps:$4 sm:$0xff]  }
  0x82   :  { %1983 = vmatpush1.bf16.msra.mxu0 %v9799_v10  ;;  %v9827_v29 = vld [vmem:[#allocation5 + $0x304] ss:$24 sps:$4 sm:$0xff]   ;;  %v9829_v30 = vld [vmem:[#allocation5] ss:$24 sps:$4 sm:$0xff]   ;;  %v9831_v32 = vld [vmem:[#allocation5 + $0x2d4] ss:$24 sps:$4 sm:$0xff]  }
  0x83   :  { %2034 = vmatpush1.bf16.msra.mxu1 %v9800_v11  ;;  %1984 = vmatprep.subr.bf16.mxu0 %v9801_v12  ;;  %v9830_v31 = vld [vmem:[#allocation5 + $0x300] ss:$24 sps:$4 sm:$0xff]   ;;  %v9833_v33 = vld [vmem:[#allocation5 + $0x5d4] ss:$24 sps:$4 sm:$0xff]   ;;  %v9835_v34 = vld [vmem:[#allocation5 + $0x2d0] ss:$24 sps:$4 sm:$0xff]  }
  0x84   :  { %2035 = vmatprep.subr.bf16.mxu1 %v9803_v13  ;;  %v9836_v35 = vld [vmem:[#allocation5 + $0x5d0] ss:$24 sps:$4 sm:$0xff]   ;;  %v9837_v36 = vld [vmem:[#allocation5 + $0x2a4] ss:$24 sps:$4 sm:$0xff]   ;;  %v9841_v38 = vld [vmem:[#allocation5 + $0x2a0] ss:$24 sps:$4 sm:$0xff]  }
  0x85   :  { %v9839_v37 = vld [vmem:[#allocation5 + $0x5a4] ss:$24 sps:$4 sm:$0xff]   ;;  %v9842_v39 = vld [vmem:[#allocation5 + $0x5a0] ss:$24 sps:$4 sm:$0xff]   ;;  %v9843_v40 = vld [vmem:[#allocation5 + $0x274] ss:$24 sps:$4 sm:$0xff]  }
  0x86   :  { %1985 = vmatpush1.bf16.msra.mxu0 %v9805_v14  ;;  %v9845_v41 = vld [vmem:[#allocation5 + $0x574] ss:$24 sps:$4 sm:$0xff]   ;;  %v9847_v42 = vld [vmem:[#allocation5 + $0x270] ss:$24 sps:$4 sm:$0xff]   ;;  %v9849_v44 = vld [vmem:[#allocation5 + $0x244] ss:$24 sps:$4 sm:$0xff]  }
  0x87   :  { %2036 = vmatpush1.bf16.msra.mxu1 %v9806_v15  ;;  %1986 = vmatprep.subr.bf16.mxu0 %v9807_v16  ;;  %v9848_v43 = vld [vmem:[#allocation5 + $0x570] ss:$24 sps:$4 sm:$0xff]   ;;  %v9851_v45 = vld [vmem:[#allocation5 + $0x544] ss:$24 sps:$4 sm:$0xff]   ;;  %v9853_v46 = vld [vmem:[#allocation5 + $0x240] ss:$24 sps:$4 sm:$0xff]  }
  0x88   :  { %2037 = vmatprep.subr.bf16.mxu1 %v9809_v17  ;;  %v9854_v47 = vld [vmem:[#allocation5 + $0x540] ss:$24 sps:$4 sm:$0xff]   ;;  %v11664_v48 = vld [vmem:[#allocation2 + $0x4] ss:$24 sps:$4 sm:$0xff]   ;;  %v9859_v52 = vld [vmem:[#allocation5 + $0x210] ss:$24 sps:$4 sm:$0xff]  }
  0x89   :  { %v9855_v49 = vld [vmem:[#allocation5 + $0x214] ss:$24 sps:$4 sm:$0xff]   ;;  %v11666_v50 = vld [vmem:[#allocation2 + $0xc] ss:$24 sps:$4 sm:$0xff]   ;;  %2010 = vmatprep.mubr.bf16.mxu0 %v11664_v48  ;;  %v9860_v53 = vld [vmem:[#allocation5 + $0x510] ss:$24 sps:$4 sm:$0xff]  }
  0x8a   :  { %1987 = vmatpush1.bf16.msra.mxu0 %v9811_v18  ;;  %v9857_v51 = vld [vmem:[#allocation5 + $0x514] ss:$24 sps:$4 sm:$0xff]   ;;  %2061 = vmatprep.mubr.bf16.mxu1 %v11666_v50  ;;  %v9861_v54 = vld [vmem:[#allocation5 + $0x1e4] ss:$24 sps:$4 sm:$0xff]   ;;  %v9865_v56 = vld [vmem:[#allocation5 + $0x1e0] ss:$24 sps:$4 sm:$0xff]  }
  0x8b   :  { %2038 = vmatpush1.bf16.msra.mxu1 %v9812_v19  ;;  %1988 = vmatprep.subr.bf16.mxu0 %v9813_v20  ;;  %v9863_v55 = vld [vmem:[#allocation5 + $0x4e4] ss:$24 sps:$4 sm:$0xff]   ;;  %v9866_v57 = vld [vmem:[#allocation5 + $0x4e0] ss:$24 sps:$4 sm:$0xff]   ;;  %v9867_v58 = vld [vmem:[#allocation5 + $0x1b4] ss:$24 sps:$4 sm:$0xff]  }
  0x8c   :  { %2039 = vmatprep.subr.bf16.mxu1 %v9815_v21  ;;  %v9869_v59 = vld [vmem:[#allocation5 + $0x4b4] ss:$24 sps:$4 sm:$0xff]   ;;  %v9871_v60 = vld [vmem:[#allocation5 + $0x1b0] ss:$24 sps:$4 sm:$0xff]   ;;  %v9873_v62 = vld [vmem:[#allocation5 + $0x184] ss:$24 sps:$4 sm:$0xff]  }
  0x8d   :  { %v9872_v61 = vld [vmem:[#allocation5 + $0x4b0] ss:$24 sps:$4 sm:$0xff]   ;;  %v9875_v63 = vld [vmem:[#allocation5 + $0x484] ss:$24 sps:$4 sm:$0xff]   ;;  %v9877_v0 = vld [vmem:[#allocation5 + $0x180] ss:$24 sps:$4 sm:$0xff]  }
  0x8e   :  { %1989 = vmatpush1.bf16.msra.mxu0 %v9817_v22  ;;  %v9878_v1 = vld [vmem:[#allocation5 + $0x480] ss:$24 sps:$4 sm:$0xff]   ;;  %v9887_v2 = vld [vmem:[#allocation5 + $0x754] ss:$24 sps:$4 sm:$0xff]   ;;  %v9885_v6 = vld [vmem:[#allocation5 + $0x750] ss:$24 sps:$4 sm:$0xff]  }
  0x8f   :  { %2040 = vmatpush1.bf16.msra.mxu1 %v9818_v23  ;;  %1990 = vmatprep.subr.bf16.mxu0 %v9819_v24  ;;  %v9890_v3 = vld [vmem:[#allocation5 + $0x15c] ss:$24 sps:$4 sm:$0xff]   ;;  %v11670_v4 = vld [vmem:[#allocation2] ss:$24 sps:$4 sm:$0xff]   ;;  %v9896_v9 = vld [vmem:[#allocation5 + $0x12c] ss:$24 sps:$4 sm:$0xff]  }
  0x90   :  { %2041 = vmatprep.subr.bf16.mxu1 %v9821_v25  ;;  %v11672_v5 = vld [vmem:[#allocation2 + $0x8] ss:$24 sps:$4 sm:$0xff]   ;;  %v9893_v8 = vld [vmem:[#allocation5 + $0x724] ss:$24 sps:$4 sm:$0xff]   ;;  %v9899_v12 = vld [vmem:[#allocation5 + $0x6f4] ss:$24 sps:$4 sm:$0xff]  }
  0x91   :  { %v9888_v7 = vld [vmem:[#allocation5 + $0x158] ss:$24 sps:$4 sm:$0xff]   ;;  %v9894_v11 = vld [vmem:[#allocation5 + $0x128] ss:$24 sps:$4 sm:$0xff]   ;;  %v9902_v13 = vld [vmem:[#allocation5 + $0xfc] ss:$24 sps:$4 sm:$0xff]  }
  0x92   :  { %1991 = vmatpush1.bf16.msra.mxu0 %v9823_v26  ;;  %v9891_v10 = vld [vmem:[#allocation5 + $0x720] ss:$24 sps:$4 sm:$0xff]   ;;  %v9897_v14 = vld [vmem:[#allocation5 + $0x6f0] ss:$24 sps:$4 sm:$0xff]   ;;  %v9905_v16 = vld [vmem:[#allocation5 + $0x6c4] ss:$24 sps:$4 sm:$0xff]  }
  0x93   :  { %2042 = vmatpush1.bf16.msra.mxu1 %v9824_v27  ;;  %1992 = vmatprep.subr.bf16.mxu0 %v9825_v28  ;;  %v9900_v15 = vld [vmem:[#allocation5 + $0xf8] ss:$24 sps:$4 sm:$0xff]   ;;  %v9908_v17 = vld [vmem:[#allocation5 + $0xcc] ss:$24 sps:$4 sm:$0xff]   ;;  %v9906_v19 = vld [vmem:[#allocation5 + $0xc8] ss:$24 sps:$4 sm:$0xff]  }
  0x94   :  { %2043 = vmatprep.subr.bf16.mxu1 %v9827_v29  ;;  %v9903_v18 = vld [vmem:[#allocation5 + $0x6c0] ss:$24 sps:$4 sm:$0xff]   ;;  %v9911_v20 = vld [vmem:[#allocation5 + $0x694] ss:$24 sps:$4 sm:$0xff]   ;;  %v9909_v22 = vld [vmem:[#allocation5 + $0x690] ss:$24 sps:$4 sm:$0xff]  }
  0x95   :  { %v9914_v21 = vld [vmem:[#allocation5 + $0x9c] ss:$24 sps:$4 sm:$0xff]   ;;  %v9912_v23 = vld [vmem:[#allocation5 + $0x98] ss:$24 sps:$4 sm:$0xff]   ;;  %v196_v24 = vld [vmem:[#allocation2 + $0x30] sm:$0xff]  ;;  %s11558_s8 = smov [#allocation19]  }
  0x96   :  { %1993 = vmatpush1.bf16.msra.mxu0 %v9829_v30  ;;  %v9917_v25 = vld [vmem:[#allocation5 + $0x664] ss:$24 sps:$4 sm:$0xff]   ;;  %v11676_v27 = vcombine.high %v196_v24, %v196_v24  ;;  %v11678_v28 = vcombine.low %v196_v24, %v196_v24  ;;  %v197_v29 = vld [vmem:[#allocation2 + $0x38] sm:$0xff]  ;;  %v9915_v30 = vld [vmem:[#allocation5 + $0x660] ss:$24 sps:$4 sm:$0xff]   ;;  %s8607_s9 = sshll.u32 %s11558_s8, 4  ;;  %s8608_s9 = int_to_ptr.vmem [resolvable:$true] %s8607_s9 }
  0x97   :  { %2044 = vmatpush1.bf16.msra.mxu1 %v9830_v31  ;;  %1994 = vmatprep.subr.bf16.mxu0 %v9831_v32  ;;  %v9920_v26 = vld [vmem:[#allocation5 + $0x6c] ss:$24 sps:$4 sm:$0xff]   ;;  %v9918_v31 = vld [vmem:[#allocation5 + $0x68] ss:$24 sps:$4 sm:$0xff]   ;;  %v11681_v32 = vcombine.high %v197_v29, %v197_v29  ;;  %s11509_s11 = scalar_lea.vmem %s8608_s9, 384  ;;  %p11514_p9 = scmp.lt.s32.totalorder %s8608_s9, %s8608_s9 }
  0x98   :  { %2045 = vmatprep.subr.bf16.mxu1 %v9833_v33  ;;  %v11683_v33 = vcombine.low %v197_v29, %v197_v29  ;;  %v9997_v24 = vld [vmem:[#allocation5 + $0x728] ss:$24 sps:$4 sm:$0xff]   ;;  %p11510_p8 = scmp.ne.s32.totalorder %s8608_s9, %s11509_s11  ;;  %p11515_p10 = scmp.lt.s32.totalorder %s11509_s11, %s11509_s11 }
  0x9a   :  { %1995 = vmatpush2.bf16.msra.mxu0 %v9835_v34  ;;  %v9923_v34 = vld [vmem:[#allocation5 + $0x634] ss:$24 sps:$4 sm:$0xff]   ;;  %p11516_p11 = por %p11515_p10, %p11514_p9 }
  0x9b   :  { %2046 = vmatpush2.bf16.msra.mxu1 %v9836_v35  ;;  %1996 = vmatprep.subr.bf16.mxu0 %v9837_v36  ;;  %v9926_v35 = vld [vmem:[#allocation5 + $0x3c] ss:$24 sps:$4 sm:$0xff]   ;;  %v9921_v36 = vld [vmem:[#allocation5 + $0x630] ss:$24 sps:$4 sm:$0xff]  }
  0x9c   :  { %2047 = vmatprep.subr.bf16.mxu1 %v9839_v37  ;;  %v9924_v37 = vld [vmem:[#allocation5 + $0x38] ss:$24 sps:$4 sm:$0xff]   ;;  %p11517_p12 = pnand %p11516_p11, %p11510_p8 }
  0x9e   :  { %1997 = vmatpush2.bf16.msra.mxu0 %v9841_v38  ;;  %v9929_v38 = vld [vmem:[#allocation5 + $0x604] ss:$24 sps:$4 sm:$0xff]  }
  0x9f   :  { %2048 = vmatpush2.bf16.msra.mxu1 %v9842_v39  ;;  %1998 = vmatprep.subr.bf16.mxu0 %v9843_v40  ;;  %v9932_v39 = vld [vmem:[#allocation5 + $0xc] ss:$24 sps:$4 sm:$0xff]  }
  0xa0   :  { %2049 = vmatprep.subr.bf16.mxu1 %v9845_v41  ;;  %v11688_v40 = vld [vmem:[#allocation2 + $0x14] ss:$24 sps:$4 sm:$0xff]   ;;  %v9927_v41 = vld [vmem:[#allocation5 + $0x600] ss:$24 sps:$4 sm:$0xff]  }
  0xa2   :  { %1999 = vmatpush2.bf16.msra.mxu0 %v9847_v42  ;;  %v9930_v42 = vld [vmem:[#allocation5 + $0x8] ss:$24 sps:$4 sm:$0xff]  }
  0xa3   :  { %2050 = vmatpush2.bf16.msra.mxu1 %v9848_v43  ;;  %2000 = vmatprep.subr.bf16.mxu0 %v9849_v44  ;;  %v9935_v43 = vld [vmem:[#allocation5 + $0x8d4] ss:$24 sps:$4 sm:$0xff]  }
  0xa4   :  { %2051 = vmatprep.subr.bf16.mxu1 %v9851_v45  ;;  %v9938_v44 = vld [vmem:[#allocation5 + $0x2dc] ss:$24 sps:$4 sm:$0xff]   ;;  %v9933_v45 = vld [vmem:[#allocation5 + $0x8d0] ss:$24 sps:$4 sm:$0xff]  }
  0xa6   :  { %2001 = vmatpush2.bf16.msra.mxu0 %v9853_v46  ;;  %v9936_v46 = vld [vmem:[#allocation5 + $0x2d8] ss:$24 sps:$4 sm:$0xff]  }
  0xa7   :  { %2052 = vmatpush2.bf16.msra.mxu1 %v9854_v47  ;;  %2002 = vmatprep.subr.bf16.mxu0 %v9855_v49  ;;  %v9941_v47 = vld [vmem:[#allocation5 + $0x8a4] ss:$24 sps:$4 sm:$0xff]  }
  0xa8   :  { %2053 = vmatprep.subr.bf16.mxu1 %v9857_v51  ;;  %v9944_v49 = vld [vmem:[#allocation5 + $0x2ac] ss:$24 sps:$4 sm:$0xff]   ;;  %v9939_v51 = vld [vmem:[#allocation5 + $0x8a0] ss:$24 sps:$4 sm:$0xff]  }
  0xaa   :  { %2003 = vmatpush2.bf16.msra.mxu0 %v9859_v52  ;;  %v9947_v52 = vld [vmem:[#allocation5 + $0x874] ss:$24 sps:$4 sm:$0xff]  }
  0xab   :  { %2054 = vmatpush2.bf16.msra.mxu1 %v9860_v53  ;;  %2004 = vmatprep.subr.bf16.mxu0 %v9861_v54  ;;  %v9950_v53 = vld [vmem:[#allocation5 + $0x27c] ss:$24 sps:$4 sm:$0xff]   ;;  %v9945_v54 = vld [vmem:[#allocation5 + $0x870] ss:$24 sps:$4 sm:$0xff]  }
  0xac   :  { %2055 = vmatprep.subr.bf16.mxu1 %v9863_v55  ;;  %v9948_v55 = vld [vmem:[#allocation5 + $0x278] ss:$24 sps:$4 sm:$0xff]  }
  0xae   :  { %2005 = vmatpush2.bf16.msra.mxu0 %v9865_v56  ;;  %v9953_v56 = vld [vmem:[#allocation5 + $0x844] ss:$24 sps:$4 sm:$0xff]  }
  0xaf   :  { %2056 = vmatpush2.bf16.msra.mxu1 %v9866_v57  ;;  %2006 = vmatprep.subr.bf16.mxu0 %v9867_v58  ;;  %v9956_v57 = vld [vmem:[#allocation5 + $0x24c] ss:$24 sps:$4 sm:$0xff]   ;;  %v9951_v58 = vld [vmem:[#allocation5 + $0x840] ss:$24 sps:$4 sm:$0xff]  }
  0xb0   :  { %2057 = vmatprep.subr.bf16.mxu1 %v9869_v59  ;;  %v9954_v59 = vld [vmem:[#allocation5 + $0x248] ss:$24 sps:$4 sm:$0xff]  }
  0xb2   :  { %2007 = vmatpush2.bf16.msra.mxu0 %v9871_v60  ;;  %v9959_v60 = vld [vmem:[#allocation5 + $0x814] ss:$24 sps:$4 sm:$0xff]  }
  0xb3   :  { %2058 = vmatpush2.bf16.msra.mxu1 %v9872_v61  ;;  %2008 = vmatprep.subr.bf16.mxu0 %v9873_v62  ;;  %v9962_v61 = vld [vmem:[#allocation5 + $0x21c] ss:$24 sps:$4 sm:$0xff]   ;;  %v9957_v62 = vld [vmem:[#allocation5 + $0x810] ss:$24 sps:$4 sm:$0xff]  }
  0xb4   :  { %2059 = vmatprep.subr.bf16.mxu1 %v9875_v63  ;;  %v9960_v63 = vld [vmem:[#allocation5 + $0x218] ss:$24 sps:$4 sm:$0xff]  }
  0xb6   :  { %2009 = vmatpush2.bf16.msra.mxu0 %v9877_v0  ;;  %v9967_v0 = vld [vmem:[#allocation5 + $0x7e4] ss:$24 sps:$4 sm:$0xff]  }
  0xb7   :  { %2060 = vmatpush2.bf16.msra.mxu1 %v9878_v1  ;;  %2080 = vmatprep.subr.bf16.mxu0 %v9887_v2  ;;  %v9970_v1 = vld [vmem:[#allocation5 + $0x1ec] ss:$24 sps:$4 sm:$0xff]   ;;  %v9965_v2 = vld [vmem:[#allocation5 + $0x7e0] ss:$24 sps:$4 sm:$0xff]  }
  0xb8   :  { %2131 = vmatprep.subr.bf16.mxu1 %v9890_v3  ;;  %v9968_v3 = vld [vmem:[#allocation5 + $0x1e8] ss:$24 sps:$4 sm:$0xff]  }
  0xb9   :  { %2011 = vmatmul.mubr.bf16.vlgmr.msra.gmra.mxu0 %v11670_v4 }
  0xba   :  { %2062 = vmatmul.mubr.bf16.vlgmr.msra.gmra.mxu1 %v11672_v5  ;;  %2081 = vmatpush1.bf16.msra.mxu0 %v9885_v6  ;;  %v9975_v6 = vld [vmem:[#allocation5 + $0x7b4] ss:$24 sps:$4 sm:$0xff]  }
  0xbb   :  { %2132 = vmatpush1.bf16.msra.mxu1 %v9888_v7  ;;  %2082 = vmatprep.subr.bf16.mxu0 %v9893_v8  ;;  %v9978_v7 = vld [vmem:[#allocation5 + $0x1bc] ss:$24 sps:$4 sm:$0xff]   ;;  %v9973_v8 = vld [vmem:[#allocation5 + $0x7b0] ss:$24 sps:$4 sm:$0xff]  }
  0xbc   :  { %2133 = vmatprep.subr.bf16.mxu1 %v9896_v9  ;;  %2020 = vmatprep.mubr.bf16.mxu0 %v11676_v27  ;;  %v9976_v9 = vld [vmem:[#allocation5 + $0x1b8] ss:$24 sps:$4 sm:$0xff]  }
  0xbd   :  { %2071 = vmatprep.mubr.bf16.mxu1 %v11681_v32 }
  0xbe   :  { %2083 = vmatpush1.bf16.msra.mxu0 %v9891_v10  ;;  %v9981_v10 = vld [vmem:[#allocation5 + $0x784] ss:$24 sps:$4 sm:$0xff]  }
  0xbf   :  { %2134 = vmatpush1.bf16.msra.mxu1 %v9894_v11  ;;  %2084 = vmatprep.subr.bf16.mxu0 %v9899_v12  ;;  %v9984_v11 = vld [vmem:[#allocation5 + $0x18c] ss:$24 sps:$4 sm:$0xff]   ;;  %v9979_v12 = vld [vmem:[#allocation5 + $0x780] ss:$24 sps:$4 sm:$0xff]  }
  0xc0   :  { %2135 = vmatprep.subr.bf16.mxu1 %v9902_v13  ;;  %v9982_v13 = vld [vmem:[#allocation5 + $0x188] ss:$24 sps:$4 sm:$0xff]  }
  0xc1   :  { %2021 = vmatmul.mubr.bf16.gmra.mxu0 %v11678_v28 }
  0xc2   :  { %2085 = vmatpush1.bf16.msra.mxu0 %v9897_v14  ;;  %2072 = vmatmul.mubr.bf16.gmra.mxu1 %v11683_v33  ;;  %v9990_v14 = vld [vmem:[#allocation5 + $0x45c] ss:$24 sps:$4 sm:$0xff]  }
  0xc3   :  { %2136 = vmatpush1.bf16.msra.mxu1 %v9900_v15  ;;  %2086 = vmatprep.subr.bf16.mxu0 %v9905_v16  ;;  %v9993_v15 = vld [vmem:[#allocation5 + $0x75c] ss:$24 sps:$4 sm:$0xff]   ;;  %v11692_v16 = vld [vmem:[#allocation2 + $0x10] ss:$24 sps:$4 sm:$0xff]  }
  0xc4   :  { %2137 = vmatprep.subr.bf16.mxu1 %v9908_v17  ;;  %2163 = vmatprep.mubr.bf16.mxu1 %v11664_v48  ;;  %v9942_v48 = vld [vmem:[#allocation5 + $0x2a8] ss:$24 sps:$4 sm:$0xff]   ;;  %v9988_v17 = vld [vmem:[#allocation5 + $0x458] ss:$24 sps:$4 sm:$0xff]  }
  0xc5   :  { %2112 = vmatprep.mubr.bf16.mxu0 %v11688_v40 }
  0xc6   :  { %2087 = vmatpush1.bf16.msra.mxu0 %v9903_v18  ;;  %v198_v18 = vld [vmem:[#allocation2 + $0x40] sm:$0xff] }
  0xc7   :  { %2138 = vmatpush1.bf16.msra.mxu1 %v9906_v19  ;;  %2088 = vmatprep.subr.bf16.mxu0 %v9911_v20  ;;  %v9991_v19 = vld [vmem:[#allocation5 + $0x758] ss:$24 sps:$4 sm:$0xff]   ;;  %v9996_v20 = vld [vmem:[#allocation5 + $0x42c] ss:$24 sps:$4 sm:$0xff]   ;;  %v11700_v29 = vcombine.low %v198_v18, %v198_v18 }
  0xc8   :  { %2139 = vmatprep.subr.bf16.mxu1 %v9914_v21  ;;  %v9999_v21 = vld [vmem:[#allocation5 + $0x72c] ss:$24 sps:$4 sm:$0xff]  }
  0xca   :  { %2089 = vmatpush1.bf16.msra.mxu0 %v9909_v22  ;;  %v11694_v22 = vcombine.high %v198_v18, %v198_v18  ;;  %v10074_v18 = vld [vmem:[#allocation5 + $0x4b8] ss:$24 sps:$4 sm:$0xff]  }
  0xcb   :  { %2140 = vmatpush1.bf16.msra.mxu1 %v9912_v23  ;;  %2090 = vmatprep.subr.bf16.mxu0 %v9917_v25  ;;  %v9994_v23 = vld [vmem:[#allocation5 + $0x428] ss:$24 sps:$4 sm:$0xff]   ;;  %v10004_v25 = vld [vmem:[#allocation5 + $0x3fc] ss:$24 sps:$4 sm:$0xff]  }
  0xcc   :  { %2141 = vmatprep.subr.bf16.mxu1 %v9920_v26  ;;  %v10007_v26 = vld [vmem:[#allocation5 + $0x6fc] ss:$24 sps:$4 sm:$0xff]  }
  0xce   :  { %2091 = vmatpush1.bf16.msra.mxu0 %v9915_v30  ;;  %v10002_v30 = vld [vmem:[#allocation5 + $0x3f8] ss:$24 sps:$4 sm:$0xff]  }
  0xcf   :  { %2142 = vmatpush1.bf16.msra.mxu1 %v9918_v31  ;;  %2092 = vmatprep.subr.bf16.mxu0 %v9923_v34  ;;  %v10005_v31 = vld [vmem:[#allocation5 + $0x6f8] ss:$24 sps:$4 sm:$0xff]   ;;  %v10010_v34 = vld [vmem:[#allocation5 + $0x3cc] ss:$24 sps:$4 sm:$0xff]  }
  0xd0   :  { %2143 = vmatprep.subr.bf16.mxu1 %v9926_v35  ;;  %v10008_v35 = vld [vmem:[#allocation5 + $0x3c8] ss:$24 sps:$4 sm:$0xff]  }
  0xd2   :  { %2093 = vmatpush1.bf16.msra.mxu0 %v9921_v36  ;;  %v10011_v36 = vld [vmem:[#allocation5 + $0x6c8] ss:$24 sps:$4 sm:$0xff]  }
  0xd3   :  { %2144 = vmatpush1.bf16.msra.mxu1 %v9924_v37  ;;  %2094 = vmatprep.subr.bf16.mxu0 %v9929_v38  ;;  %v10016_v37 = vld [vmem:[#allocation5 + $0x39c] ss:$24 sps:$4 sm:$0xff]  }
  0xd4   :  { %2145 = vmatprep.subr.bf16.mxu1 %v9932_v39  ;;  %v10019_v38 = vld [vmem:[#allocation5 + $0x69c] ss:$24 sps:$4 sm:$0xff]   ;;  %v10014_v39 = vld [vmem:[#allocation5 + $0x398] ss:$24 sps:$4 sm:$0xff]  }
  0xd6   :  { %2095 = vmatpush1.bf16.msra.mxu0 %v9927_v41  ;;  %v10017_v41 = vld [vmem:[#allocation5 + $0x698] ss:$24 sps:$4 sm:$0xff]  }
  0xd7   :  { %2146 = vmatpush1.bf16.msra.mxu1 %v9930_v42  ;;  %2096 = vmatprep.subr.bf16.mxu0 %v9935_v43  ;;  %v10022_v42 = vld [vmem:[#allocation5 + $0x36c] ss:$24 sps:$4 sm:$0xff]  }
  0xd8   :  { %2147 = vmatprep.subr.bf16.mxu1 %v9938_v44  ;;  %v10025_v43 = vld [vmem:[#allocation5 + $0x66c] ss:$24 sps:$4 sm:$0xff]   ;;  %v10020_v44 = vld [vmem:[#allocation5 + $0x368] ss:$24 sps:$4 sm:$0xff]  }
  0xda   :  { %2097 = vmatpush2.bf16.msra.mxu0 %v9933_v45  ;;  %v10023_v45 = vld [vmem:[#allocation5 + $0x668] ss:$24 sps:$4 sm:$0xff]  }
  0xdb   :  { %2148 = vmatpush2.bf16.msra.mxu1 %v9936_v46  ;;  %2098 = vmatprep.subr.bf16.mxu0 %v9941_v47  ;;  %v10028_v46 = vld [vmem:[#allocation5 + $0x33c] ss:$24 sps:$4 sm:$0xff]  }
  0xdc   :  { %2149 = vmatprep.subr.bf16.mxu1 %v9944_v49  ;;  %v10031_v47 = vld [vmem:[#allocation5 + $0x63c] ss:$24 sps:$4 sm:$0xff]   ;;  %v10026_v49 = vld [vmem:[#allocation5 + $0x338] ss:$24 sps:$4 sm:$0xff]  }
  0xde   :  { %2099 = vmatpush2.bf16.msra.mxu0 %v9939_v51  ;;  %v10037_v51 = vld [vmem:[#allocation5 + $0x60c] ss:$24 sps:$4 sm:$0xff]  }
  0xdf   :  { %2150 = vmatpush2.bf16.msra.mxu1 %v9942_v48  ;;  %2100 = vmatprep.subr.bf16.mxu0 %v9947_v52  ;;  %v10032_v48 = vld [vmem:[#allocation5 + $0x308] ss:$24 sps:$4 sm:$0xff]  }
  0xe0   :  { %2151 = vmatprep.subr.bf16.mxu1 %v9950_v53  ;;  %v10035_v52 = vld [vmem:[#allocation5 + $0x608] ss:$24 sps:$4 sm:$0xff]   ;;  %v10040_v53 = vld [vmem:[#allocation5 + $0x5dc] ss:$24 sps:$4 sm:$0xff]  }
  0xe2   :  { %2101 = vmatpush2.bf16.msra.mxu0 %v9945_v54  ;;  %v10043_v54 = vld [vmem:[#allocation5 + $0x8dc] ss:$24 sps:$4 sm:$0xff]  }
  0xe3   :  { %2152 = vmatpush2.bf16.msra.mxu1 %v9948_v55  ;;  %2102 = vmatprep.subr.bf16.mxu0 %v9953_v56  ;;  %v10038_v55 = vld [vmem:[#allocation5 + $0x5d8] ss:$24 sps:$4 sm:$0xff]  }
  0xe4   :  { %2153 = vmatprep.subr.bf16.mxu1 %v9956_v57  ;;  %v10041_v56 = vld [vmem:[#allocation5 + $0x8d8] ss:$24 sps:$4 sm:$0xff]   ;;  %v10046_v57 = vld [vmem:[#allocation5 + $0x5ac] ss:$24 sps:$4 sm:$0xff]  }
  0xe6   :  { %2103 = vmatpush2.bf16.msra.mxu0 %v9951_v58  ;;  %v10049_v58 = vld [vmem:[#allocation5 + $0x8ac] ss:$24 sps:$4 sm:$0xff]  }
  0xe7   :  { %2154 = vmatpush2.bf16.msra.mxu1 %v9954_v59  ;;  %2104 = vmatprep.subr.bf16.mxu0 %v9959_v60  ;;  %v10044_v59 = vld [vmem:[#allocation5 + $0x5a8] ss:$24 sps:$4 sm:$0xff]  }
  0xe8   :  { %2155 = vmatprep.subr.bf16.mxu1 %v9962_v61  ;;  %v10047_v60 = vld [vmem:[#allocation5 + $0x8a8] ss:$24 sps:$4 sm:$0xff]   ;;  %v10052_v61 = vld [vmem:[#allocation5 + $0x57c] ss:$24 sps:$4 sm:$0xff]  }
  0xea   :  { %2105 = vmatpush2.bf16.msra.mxu0 %v9957_v62  ;;  %v10055_v62 = vld [vmem:[#allocation5 + $0x87c] ss:$24 sps:$4 sm:$0xff]  }
  0xeb   :  { %2156 = vmatpush2.bf16.msra.mxu1 %v9960_v63  ;;  %2106 = vmatprep.subr.bf16.mxu0 %v9967_v0  ;;  %v10050_v63 = vld [vmem:[#allocation5 + $0x578] ss:$24 sps:$4 sm:$0xff]  }
  0xec   :  { %2157 = vmatprep.subr.bf16.mxu1 %v9970_v1  ;;  %v10053_v0 = vld [vmem:[#allocation5 + $0x878] ss:$24 sps:$4 sm:$0xff]   ;;  %v10058_v1 = vld [vmem:[#allocation5 + $0x54c] ss:$24 sps:$4 sm:$0xff]  }
  0xee   :  { %2107 = vmatpush2.bf16.msra.mxu0 %v9965_v2  ;;  %v10061_v2 = vld [vmem:[#allocation5 + $0x84c] ss:$24 sps:$4 sm:$0xff]  }
  0xef   :  { %2158 = vmatpush2.bf16.msra.mxu1 %v9968_v3  ;;  %2108 = vmatprep.subr.bf16.mxu0 %v9975_v6  ;;  %v10056_v3 = vld [vmem:[#allocation5 + $0x548] ss:$24 sps:$4 sm:$0xff]  }
  0xf0   :  { %2159 = vmatprep.subr.bf16.mxu1 %v9978_v7  ;;  %v10059_v6 = vld [vmem:[#allocation5 + $0x848] ss:$24 sps:$4 sm:$0xff]   ;;  %v10064_v7 = vld [vmem:[#allocation5 + $0x51c] ss:$24 sps:$4 sm:$0xff]  }
  0xf2   :  { %2109 = vmatpush2.bf16.msra.mxu0 %v9973_v8  ;;  %v10067_v8 = vld [vmem:[#allocation5 + $0x81c] ss:$24 sps:$4 sm:$0xff]  }
  0xf3   :  { %2160 = vmatpush2.bf16.msra.mxu1 %v9976_v9  ;;  %2110 = vmatprep.subr.bf16.mxu0 %v9981_v10  ;;  %v10062_v9 = vld [vmem:[#allocation5 + $0x518] ss:$24 sps:$4 sm:$0xff]  }
  0xf4   :  { %2161 = vmatprep.subr.bf16.mxu1 %v9984_v11  ;;  %v10065_v10 = vld [vmem:[#allocation5 + $0x818] ss:$24 sps:$4 sm:$0xff]   ;;  %v10070_v11 = vld [vmem:[#allocation5 + $0x4ec] ss:$24 sps:$4 sm:$0xff]  }
  0xf6   :  { %2111 = vmatpush2.bf16.msra.mxu0 %v9979_v12  ;;  %v10073_v12 = vld [vmem:[#allocation5 + $0x7ec] ss:$24 sps:$4 sm:$0xff]  }
  0xf7   :  { %2162 = vmatpush2.bf16.msra.mxu1 %v9982_v13  ;;  %2182 = vmatprep.subr.bf16.mxu0 %v9990_v14  ;;  %v10068_v13 = vld [vmem:[#allocation5 + $0x4e8] ss:$24 sps:$4 sm:$0xff]  }
  0xf8   :  { %2233 = vmatprep.subr.bf16.mxu1 %v9993_v15  ;;  %v10071_v14 = vld [vmem:[#allocation5 + $0x7e8] ss:$24 sps:$4 sm:$0xff]   ;;  %v10076_v15 = vld [vmem:[#allocation5 + $0x4bc] ss:$24 sps:$4 sm:$0xff]  }
  0xf9   :  { %2113 = vmatmul.mubr.bf16.vlgmr.msra.gmra.mxu0 %v11692_v16 }
  0xfa   :  { %2164 = vmatmul.mubr.bf16.vlgmr.msra.gmra.mxu1 %v11670_v4  ;;  %2183 = vmatpush1.bf16.msra.mxu0 %v9988_v17  ;;  %v10013_v4 = vld [vmem:[#allocation5 + $0x6cc] ss:$24 sps:$4 sm:$0xff]   ;;  %v10079_v17 = vld [vmem:[#allocation5 + $0x7bc] ss:$24 sps:$4 sm:$0xff]  }
  0xfb   :  { %2234 = vmatpush1.bf16.msra.mxu1 %v9991_v19  ;;  %2184 = vmatprep.subr.bf16.mxu0 %v9996_v20  ;;  %v10077_v19 = vld [vmem:[#allocation5 + $0x7b8] ss:$24 sps:$4 sm:$0xff]   ;;  %v10082_v20 = vld [vmem:[#allocation5 + $0x48c] ss:$24 sps:$4 sm:$0xff]  }
  0xfc   :  { %2235 = vmatprep.subr.bf16.mxu1 %v9999_v21  ;;  %2122 = vmatprep.mubr.bf16.mxu0 %v11694_v22  ;;  %v10085_v21 = vld [vmem:[#allocation5 + $0x78c] ss:$24 sps:$4 sm:$0xff]  }
  0xfd   :  { %2173 = vmatprep.mubr.bf16.mxu1 %v11676_v27 }
  0xfe   :  { %2185 = vmatpush1.bf16.msra.mxu0 %v9994_v23  ;;  %v10080_v23 = vld [vmem:[#allocation5 + $0x488] ss:$24 sps:$4 sm:$0xff]  }
  0xff   :  { %2236 = vmatpush1.bf16.msra.mxu1 %v9997_v24  ;;  %2186 = vmatprep.subr.bf16.mxu0 %v10004_v25  ;;  %v10083_v24 = vld [vmem:[#allocation5 + $0x788] ss:$24 sps:$4 sm:$0xff]   ;;  %v10088_v25 = vld [vmem:[#allocation5 + $0x164] ss:$24 sps:$4 sm:$0xff]  }
 0x100   :  { %2237 = vmatprep.subr.bf16.mxu1 %v10007_v26  ;;  %v10091_v26 = vld [vmem:[#allocation5 + $0x464] ss:$24 sps:$4 sm:$0xff]  }
 0x101   :  { %2123 = vmatmul.mubr.bf16.gmra.mxu0 %v11700_v29 }
 0x102   :  { %2174 = vmatmul.mubr.bf16.gmra.mxu1 %v11678_v28  ;;  %2187 = vmatpush1.bf16.msra.mxu0 %v10002_v30  ;;  %v10086_v30 = vld [vmem:[#allocation5 + $0x160] ss:$24 sps:$4 sm:$0xff]  }
 0x103   :  { %2238 = vmatpush1.bf16.msra.mxu1 %v10005_v31  ;;  %2188 = vmatprep.subr.bf16.mxu0 %v10010_v34  ;;  %v10089_v31 = vld [vmem:[#allocation5 + $0x460] ss:$24 sps:$4 sm:$0xff]   ;;  %v10094_v34 = vld [vmem:[#allocation5 + $0x134] ss:$24 sps:$4 sm:$0xff]  }
 0x104   :  { %2239 = vmatprep.subr.bf16.mxu1 %v10013_v4  ;;  %2214 = vmatprep.mubr.bf16.mxu0 %v11666_v50  ;;  %v10029_v50 = vld [vmem:[#allocation5 + $0x638] ss:$24 sps:$4 sm:$0xff]   ;;  %v10097_v4 = vld [vmem:[#allocation5 + $0x434] ss:$24 sps:$4 sm:$0xff]  }
 0x105   :  { %2265 = vmatprep.mubr.bf16.mxu1 %v11688_v40  ;;  %v10034_v40 = vld [vmem:[#allocation5 + $0x30c] ss:$24 sps:$4 sm:$0xff]  }
 0x106   :  { %2189 = vmatpush1.bf16.msra.mxu0 %v10008_v35  ;;  %v10092_v35 = vld [vmem:[#allocation5 + $0x130] ss:$24 sps:$4 sm:$0xff]  }
 0x107   :  { %2240 = vmatpush1.bf16.msra.mxu1 %v10011_v36  ;;  %2190 = vmatprep.subr.bf16.mxu0 %v10016_v37  ;;  %v10095_v36 = vld [vmem:[#allocation5 + $0x430] ss:$24 sps:$4 sm:$0xff]   ;;  %v10100_v37 = vld [vmem:[#allocation5 + $0x104] ss:$24 sps:$4 sm:$0xff]  }
 0x108   :  { %2241 = vmatprep.subr.bf16.mxu1 %v10019_v38  ;;  %v10103_v38 = vld [vmem:[#allocation5 + $0x404] ss:$24 sps:$4 sm:$0xff]  }
 0x10a   :  { %2191 = vmatpush1.bf16.msra.mxu0 %v10014_v39  ;;  %v10098_v39 = vld [vmem:[#allocation5 + $0x100] ss:$24 sps:$4 sm:$0xff]  }
 0x10b   :  { %2242 = vmatpush1.bf16.msra.mxu1 %v10017_v41  ;;  %2192 = vmatprep.subr.bf16.mxu0 %v10022_v42  ;;  %v10101_v41 = vld [vmem:[#allocation5 + $0x400] ss:$24 sps:$4 sm:$0xff]   ;;  %v10106_v42 = vld [vmem:[#allocation5 + $0xd4] ss:$24 sps:$4 sm:$0xff]  }
 0x10c   :  { %2243 = vmatprep.subr.bf16.mxu1 %v10025_v43  ;;  %v10107_v43 = vld [vmem:[#allocation5 + $0x3d0] ss:$24 sps:$4 sm:$0xff]  }
 0x10e   :  { %2193 = vmatpush1.bf16.msra.mxu0 %v10020_v44  ;;  %v10112_v44 = vld [vmem:[#allocation5 + $0xa4] ss:$24 sps:$4 sm:$0xff]  }
 0x10f   :  { %2244 = vmatpush1.bf16.msra.mxu1 %v10023_v45  ;;  %2194 = vmatprep.subr.bf16.mxu0 %v10028_v46  ;;  %v10115_v45 = vld [vmem:[#allocation5 + $0x3a4] ss:$24 sps:$4 sm:$0xff]  }
 0x110   :  { %2245 = vmatprep.subr.bf16.mxu1 %v10031_v47  ;;  %v11302_v46 = vld [vmem:[#allocation2 + $0x4] ss:$24 sps:$4 sm:$0xff]  }
 0x111   :  { %v11303_v47 = vld [vmem:[#allocation2 + $0xc] ss:$24 sps:$4 sm:$0xff]  }
 0x112   :  { %2195 = vmatpush1.bf16.msra.mxu0 %v10026_v49  ;;  %v10110_v49 = vld [vmem:[#allocation5 + $0xa0] ss:$24 sps:$4 sm:$0xff]  }
 0x113   :  { %2246 = vmatpush1.bf16.msra.mxu1 %v10029_v50  ;;  %2196 = vmatprep.subr.bf16.mxu0 %v10034_v40  ;;  %v10113_v50 = vld [vmem:[#allocation5 + $0x3a0] ss:$24 sps:$4 sm:$0xff]   ;;  %v10118_v40 = vld [vmem:[#allocation5 + $0x74] ss:$24 sps:$4 sm:$0xff]  }
 0x114   :  { %2247 = vmatprep.subr.bf16.mxu1 %v10037_v51  ;;  %v10121_v51 = vld [vmem:[#allocation5 + $0x374] ss:$24 sps:$4 sm:$0xff]  }
 0x116   :  { %2197 = vmatpush1.bf16.msra.mxu0 %v10032_v48  ;;  %v10116_v48 = vld [vmem:[#allocation5 + $0x70] ss:$24 sps:$4 sm:$0xff]  }
 0x117   :  { %2248 = vmatpush1.bf16.msra.mxu1 %v10035_v52  ;;  %2198 = vmatprep.subr.bf16.mxu0 %v10040_v53  ;;  %v10119_v52 = vld [vmem:[#allocation5 + $0x370] ss:$24 sps:$4 sm:$0xff]   ;;  %v10124_v53 = vld [vmem:[#allocation5 + $0x44] ss:$24 sps:$4 sm:$0xff]  }
 0x118   :  { %2249 = vmatprep.subr.bf16.mxu1 %v10043_v54  ;;  %v10127_v54 = vld [vmem:[#allocation5 + $0x344] ss:$24 sps:$4 sm:$0xff]  }
 0x11a   :  { %2199 = vmatpush2.bf16.msra.mxu0 %v10038_v55  ;;  %v10122_v55 = vld [vmem:[#allocation5 + $0x40] ss:$24 sps:$4 sm:$0xff]  }
 0x11b   :  { %2250 = vmatpush2.bf16.msra.mxu1 %v10041_v56  ;;  %2200 = vmatprep.subr.bf16.mxu0 %v10046_v57  ;;  %v10125_v56 = vld [vmem:[#allocation5 + $0x340] ss:$24 sps:$4 sm:$0xff]   ;;  %v10130_v57 = vld [vmem:[#allocation5 + $0x14] ss:$24 sps:$4 sm:$0xff]  }
 0x11c   :  { %2251 = vmatprep.subr.bf16.mxu1 %v10049_v58  ;;  %v10133_v58 = vld [vmem:[#allocation5 + $0x314] ss:$24 sps:$4 sm:$0xff]  }
 0x11e   :  { %2201 = vmatpush2.bf16.msra.mxu0 %v10044_v59  ;;  %v10128_v59 = vld [vmem:[#allocation5 + $0x10] ss:$24 sps:$4 sm:$0xff]  }
 0x11f   :  { %2252 = vmatpush2.bf16.msra.mxu1 %v10047_v60  ;;  %2202 = vmatprep.subr.bf16.mxu0 %v10052_v61  ;;  %v10131_v60 = vld [vmem:[#allocation5 + $0x310] ss:$24 sps:$4 sm:$0xff]   ;;  %v10136_v61 = vld [vmem:[#allocation5 + $0x2e4] ss:$24 sps:$4 sm:$0xff]  }
 0x120   :  { %2253 = vmatprep.subr.bf16.mxu1 %v10055_v62  ;;  %v10139_v62 = vld [vmem:[#allocation5 + $0x5e4] ss:$24 sps:$4 sm:$0xff]  }
 0x122   :  { %2203 = vmatpush2.bf16.msra.mxu0 %v10050_v63  ;;  %v10134_v63 = vld [vmem:[#allocation5 + $0x2e0] ss:$24 sps:$4 sm:$0xff]  }
 0x123   :  { %2254 = vmatpush2.bf16.msra.mxu1 %v10053_v0  ;;  %2204 = vmatprep.subr.bf16.mxu0 %v10058_v1  ;;  %v10137_v0 = vld [vmem:[#allocation5 + $0x5e0] ss:$24 sps:$4 sm:$0xff]   ;;  %v10142_v1 = vld [vmem:[#allocation5 + $0x2b4] ss:$24 sps:$4 sm:$0xff]  }
 0x124   :  { %2255 = vmatprep.subr.bf16.mxu1 %v10061_v2  ;;  %v10145_v2 = vld [vmem:[#allocation5 + $0x5b4] ss:$24 sps:$4 sm:$0xff]  }
 0x126   :  { %2205 = vmatpush2.bf16.msra.mxu0 %v10056_v3  ;;  %v10140_v3 = vld [vmem:[#allocation5 + $0x2b0] ss:$24 sps:$4 sm:$0xff]  }
 0x127   :  { %2256 = vmatpush2.bf16.msra.mxu1 %v10059_v6  ;;  %2206 = vmatprep.subr.bf16.mxu0 %v10064_v7  ;;  %v10143_v6 = vld [vmem:[#allocation5 + $0x5b0] ss:$24 sps:$4 sm:$0xff]   ;;  %v10148_v7 = vld [vmem:[#allocation5 + $0x284] ss:$24 sps:$4 sm:$0xff]  }
 0x128   :  { %2257 = vmatprep.subr.bf16.mxu1 %v10067_v8  ;;  %v10151_v8 = vld [vmem:[#allocation5 + $0x584] ss:$24 sps:$4 sm:$0xff]  }
 0x12a   :  { %2207 = vmatpush2.bf16.msra.mxu0 %v10062_v9  ;;  %v10146_v9 = vld [vmem:[#allocation5 + $0x280] ss:$24 sps:$4 sm:$0xff]  }
 0x12b   :  { %2258 = vmatpush2.bf16.msra.mxu1 %v10065_v10  ;;  %2208 = vmatprep.subr.bf16.mxu0 %v10070_v11  ;;  %v10149_v10 = vld [vmem:[#allocation5 + $0x580] ss:$24 sps:$4 sm:$0xff]   ;;  %v10154_v11 = vld [vmem:[#allocation5 + $0x254] ss:$24 sps:$4 sm:$0xff]  }
 0x12c   :  { %2259 = vmatprep.subr.bf16.mxu1 %v10073_v12  ;;  %v10157_v12 = vld [vmem:[#allocation5 + $0x554] ss:$24 sps:$4 sm:$0xff]  }
 0x12e   :  { %2209 = vmatpush2.bf16.msra.mxu0 %v10068_v13  ;;  %v10152_v13 = vld [vmem:[#allocation5 + $0x250] ss:$24 sps:$4 sm:$0xff]  }
 0x12f   :  { %2260 = vmatpush2.bf16.msra.mxu1 %v10071_v14  ;;  %2210 = vmatprep.subr.bf16.mxu0 %v10076_v15  ;;  %v10155_v14 = vld [vmem:[#allocation5 + $0x550] ss:$24 sps:$4 sm:$0xff]   ;;  %v10160_v15 = vld [vmem:[#allocation5 + $0x224] ss:$24 sps:$4 sm:$0xff]  }
 0x130   :  { %2261 = vmatprep.subr.bf16.mxu1 %v10079_v17  ;;  %v10163_v17 = vld [vmem:[#allocation5 + $0x524] ss:$24 sps:$4 sm:$0xff]  }
 0x132   :  { %2211 = vmatpush2.bf16.msra.mxu0 %v10074_v18  ;;  %v10158_v18 = vld [vmem:[#allocation5 + $0x220] ss:$24 sps:$4 sm:$0xff]  }
 0x133   :  { %2262 = vmatpush2.bf16.msra.mxu1 %v10077_v19  ;;  %2212 = vmatprep.subr.bf16.mxu0 %v10082_v20  ;;  %v10161_v19 = vld [vmem:[#allocation5 + $0x520] ss:$24 sps:$4 sm:$0xff]   ;;  %v10166_v20 = vld [vmem:[#allocation5 + $0x1f4] ss:$24 sps:$4 sm:$0xff]  }
 0x134   :  { %2263 = vmatprep.subr.bf16.mxu1 %v10085_v21  ;;  %v10169_v21 = vld [vmem:[#allocation5 + $0x4f4] ss:$24 sps:$4 sm:$0xff]  }
 0x136   :  { %2213 = vmatpush2.bf16.msra.mxu0 %v10080_v23  ;;  %v10164_v23 = vld [vmem:[#allocation5 + $0x1f0] ss:$24 sps:$4 sm:$0xff]  }
 0x137   :  { %2264 = vmatpush2.bf16.msra.mxu1 %v10083_v24  ;;  %2284 = vmatprep.subr.bf16.mxu0 %v10088_v25  ;;  %v10167_v24 = vld [vmem:[#allocation5 + $0x4f0] ss:$24 sps:$4 sm:$0xff]   ;;  %v10172_v25 = vld [vmem:[#allocation5 + $0x1c4] ss:$24 sps:$4 sm:$0xff]  }
 0x138   :  { %2335 = vmatprep.subr.bf16.mxu1 %v10091_v26  ;;  %v10175_v26 = vld [vmem:[#allocation5 + $0x4c4] ss:$24 sps:$4 sm:$0xff]  }
 0x139   :  { %2215 = vmatmul.mubr.bf16.vlgmr.msra.gmra.mxu0 %v11672_v5  ;;  %v10109_v5 = vld [vmem:[#allocation5 + $0x3d4] ss:$24 sps:$4 sm:$0xff]  }
 0x13a   :  { %2266 = vmatmul.mubr.bf16.vlgmr.msra.gmra.mxu1 %v11692_v16  ;;  %2285 = vmatpush1.bf16.msra.mxu0 %v10086_v30  ;;  %v10104_v16 = vld [vmem:[#allocation5 + $0xd0] ss:$24 sps:$4 sm:$0xff]   ;;  %v10170_v30 = vld [vmem:[#allocation5 + $0x1c0] ss:$24 sps:$4 sm:$0xff]  }
 0x13b   :  { %2336 = vmatpush1.bf16.msra.mxu1 %v10089_v31  ;;  %2286 = vmatprep.subr.bf16.mxu0 %v10094_v34  ;;  %v10173_v31 = vld [vmem:[#allocation5 + $0x4c0] ss:$24 sps:$4 sm:$0xff]   ;;  %v10178_v34 = vld [vmem:[#allocation5 + $0x194] ss:$24 sps:$4 sm:$0xff]  }
 0x13c   :  { %2337 = vmatprep.subr.bf16.mxu1 %v10097_v4  ;;  %2224 = vmatprep.mubr.bf16.mxu0 %v11681_v32  ;;  %v10181_v4 = vld [vmem:[#allocation5 + $0x494] ss:$24 sps:$4 sm:$0xff]  }
 0x13d   :  { %2275 = vmatprep.mubr.bf16.mxu1 %v11694_v22 }
 0x13e   :  { %2287 = vmatpush1.bf16.msra.mxu0 %v10092_v35  ;;  %v10176_v35 = vld [vmem:[#allocation5 + $0x190] ss:$24 sps:$4 sm:$0xff]  }
 0x13f   :  { %2338 = vmatpush1.bf16.msra.mxu1 %v10095_v36  ;;  %2288 = vmatprep.subr.bf16.mxu0 %v10100_v37  ;;  %v10179_v36 = vld [vmem:[#allocation5 + $0x490] ss:$24 sps:$4 sm:$0xff]   ;;  %v10184_v37 = vld [vmem:[#allocation5 + $0x764] ss:$24 sps:$4 sm:$0xff]  }
 0x140   :  { %2339 = vmatprep.subr.bf16.mxu1 %v10103_v38  ;;  %v10217_v38 = vld [vmem:[#allocation8 + $0x154] ss:$24 sps:$4 sm:$0xff]  }
 0x141   :  { %2225 = vmatmul.mubr.bf16.gmra.mxu0 %v11683_v33 }
 0x142   :  { %2276 = vmatmul.mubr.bf16.gmra.mxu1 %v11700_v29  ;;  %2289 = vmatpush1.bf16.msra.mxu0 %v10098_v39  ;;  %v10182_v39 = vld [vmem:[#allocation5 + $0x760] ss:$24 sps:$4 sm:$0xff]  }
 0x143   :  { %2340 = vmatpush1.bf16.msra.mxu1 %v10101_v41  ;;  %2290 = vmatprep.subr.bf16.mxu0 %v10106_v42  ;;  %v10215_v41 = vld [vmem:[#allocation8 + $0x150] ss:$24 sps:$4 sm:$0xff]  }
 0x144   :  { %2341 = vmatprep.subr.bf16.mxu1 %v10109_v5  ;;  %2316 = vmatprep.mubr.bf16.mxu0 %v11302_v46  ;;  %v10187_v42 = vld [vmem:[#allocation5 + $0x734] ss:$24 sps:$4 sm:$0xff]   ;;  %v11305_v46 = vld [vmem:[#allocation2 + $0x8] ss:$24 sps:$4 sm:$0xff]  }
 0x145   :  { %2367 = vmatprep.mubr.bf16.mxu1 %v11303_v47  ;;  %v10223_v5 = vld [vmem:[#allocation8 + $0x124] ss:$24 sps:$4 sm:$0xff]  }
 0x146   :  { %2291 = vmatpush1.bf16.msra.mxu0 %v10104_v16  ;;  %v10185_v16 = vld [vmem:[#allocation5 + $0x730] ss:$24 sps:$4 sm:$0xff]   ;;  %v10190_v47 = vld [vmem:[#allocation5 + $0x704] ss:$24 sps:$4 sm:$0xff]  }
 0x147   :  { %2342 = vmatpush1.bf16.msra.mxu1 %v10107_v43  ;;  %2292 = vmatprep.subr.bf16.mxu0 %v10112_v44 }
 0x148   :  { %2343 = vmatprep.subr.bf16.mxu1 %v10115_v45  ;;  %v11304_v45 = vld [vmem:[#allocation2] ss:$24 sps:$4 sm:$0xff]  }
 0x14a   :  { %2293 = vmatpush1.bf16.msra.mxu0 %v10110_v49 }
 0x14b   :  { %2344 = vmatpush1.bf16.msra.mxu1 %v10113_v50  ;;  %2294 = vmatprep.subr.bf16.mxu0 %v10118_v40  ;;  %v10221_v50 = vld [vmem:[#allocation8 + $0x120] ss:$24 sps:$4 sm:$0xff]   ;;  %v10229_v40 = vld [vmem:[#allocation8 + $0xf4] ss:$24 sps:$4 sm:$0xff]  }
 0x14c   :  { %2345 = vmatprep.subr.bf16.mxu1 %v10121_v51  ;;  %v10188_v51 = vld [vmem:[#allocation5 + $0x700] ss:$24 sps:$4 sm:$0xff]  }
 0x14e   :  { %2295 = vmatpush1.bf16.msra.mxu0 %v10116_v48  ;;  %v10227_v48 = vld [vmem:[#allocation8 + $0xf0] ss:$24 sps:$4 sm:$0xff]  }
 0x14f   :  { %2346 = vmatpush1.bf16.msra.mxu1 %v10119_v52  ;;  %2296 = vmatprep.subr.bf16.mxu0 %v10124_v53  ;;  %v10193_v52 = vld [vmem:[#allocation5 + $0x6d4] ss:$24 sps:$4 sm:$0xff]  }
 0x150   :  { %2347 = vmatprep.subr.bf16.mxu1 %v10127_v54  ;;  %v10235_v53 = vld [vmem:[#allocation8 + $0xc4] ss:$24 sps:$4 sm:$0xff]  }
 0x151   :  { %v10191_v54 = vld [vmem:[#allocation5 + $0x6d0] ss:$24 sps:$4 sm:$0xff]  }
 0x152   :  { %2297 = vmatpush1.bf16.msra.mxu0 %v10122_v55  ;;  %v10233_v55 = vld [vmem:[#allocation8 + $0xc0] ss:$24 sps:$4 sm:$0xff]  }
 0x153   :  { %2348 = vmatpush1.bf16.msra.mxu1 %v10125_v56  ;;  %2298 = vmatprep.subr.bf16.mxu0 %v10130_v57  ;;  %v10196_v56 = vld [vmem:[#allocation5 + $0x6a4] ss:$24 sps:$4 sm:$0xff]  }
 0x154   :  { %2349 = vmatprep.subr.bf16.mxu1 %v10133_v58  ;;  %v10194_v58 = vld [vmem:[#allocation5 + $0x6a0] ss:$24 sps:$4 sm:$0xff]  }
 0x156   :  { %2299 = vmatpush1.bf16.msra.mxu0 %v10128_v59  ;;  %v10239_v59 = vld [vmem:[#allocation8 + $0x90] ss:$24 sps:$4 sm:$0xff]  }
 0x157   :  { %2350 = vmatpush1.bf16.msra.mxu1 %v10131_v60  ;;  %2300 = vmatprep.subr.bf16.mxu0 %v10136_v61  ;;  %v11306_v60 = vld [vmem:[#allocation2 + $0x14] ss:$24 sps:$4 sm:$0xff]  }
 0x158   :  { %2351 = vmatprep.subr.bf16.mxu1 %v10139_v62  ;;  %v10199_v61 = vld [vmem:[#allocation5 + $0x674] ss:$24 sps:$4 sm:$0xff]  }
 0x15a   :  { %2301 = vmatpush2.bf16.msra.mxu0 %v10134_v63  ;;  %v10197_v63 = vld [vmem:[#allocation5 + $0x670] ss:$24 sps:$4 sm:$0xff]  }
 0x15b   :  { %2352 = vmatpush2.bf16.msra.mxu1 %v10137_v0  ;;  %2302 = vmatprep.subr.bf16.mxu0 %v10142_v1  ;;  %v10245_v0 = vld [vmem:[#allocation8 + $0x60] ss:$24 sps:$4 sm:$0xff]  }
 0x15c   :  { %2353 = vmatprep.subr.bf16.mxu1 %v10145_v2  ;;  %v10202_v1 = vld [vmem:[#allocation5 + $0x644] ss:$24 sps:$4 sm:$0xff]  }
 0x15e   :  { %2303 = vmatpush2.bf16.msra.mxu0 %v10140_v3 }
 0x15f   :  { %2354 = vmatpush2.bf16.msra.mxu1 %v10143_v6  ;;  %2304 = vmatprep.subr.bf16.mxu0 %v10148_v7  ;;  %v10250_v6 = vld [vmem:[#allocation8 + $0x34] ss:$24 sps:$4 sm:$0xff]  }
 0x160   :  { %2355 = vmatprep.subr.bf16.mxu1 %v10151_v8  ;;  %v10200_v7 = vld [vmem:[#allocation5 + $0x640] ss:$24 sps:$4 sm:$0xff]  }
 0x162   :  { %2305 = vmatpush2.bf16.msra.mxu0 %v10146_v9  ;;  %v10248_v9 = vld [vmem:[#allocation8 + $0x30] ss:$24 sps:$4 sm:$0xff]  }
 0x163   :  { %2356 = vmatpush2.bf16.msra.mxu1 %v10149_v10  ;;  %2306 = vmatprep.subr.bf16.mxu0 %v10154_v11  ;;  %v10205_v10 = vld [vmem:[#allocation5 + $0x614] ss:$24 sps:$4 sm:$0xff]  }
 0x164   :  { %2357 = vmatprep.subr.bf16.mxu1 %v10157_v12 }
 0x166   :  { %2307 = vmatpush2.bf16.msra.mxu0 %v10152_v13 }
 0x167   :  { %2358 = vmatpush2.bf16.msra.mxu1 %v10155_v14  ;;  %2308 = vmatprep.subr.bf16.mxu0 %v10160_v15  ;;  %v10253_v14 = vld [vmem:[#allocation8 + $0x4] ss:$24 sps:$4 sm:$0xff]  }
 0x168   :  { %2359 = vmatprep.subr.bf16.mxu1 %v10163_v17  ;;  %v10203_v15 = vld [vmem:[#allocation5 + $0x610] ss:$24 sps:$4 sm:$0xff]  }
 0x16a   :  { %2309 = vmatpush2.bf16.msra.mxu0 %v10158_v18  ;;  %v10251_v18 = vld [vmem:[#allocation8] ss:$24 sps:$4 sm:$0xff]  }
 0x16b   :  { %2360 = vmatpush2.bf16.msra.mxu1 %v10161_v19  ;;  %2310 = vmatprep.subr.bf16.mxu0 %v10166_v20  ;;  %v10208_v19 = vld [vmem:[#allocation5 + $0x8e4] ss:$24 sps:$4 sm:$0xff]  }
 0x16c   :  { %2361 = vmatprep.subr.bf16.mxu1 %v10169_v21 }
 0x16e   :  { %2311 = vmatpush2.bf16.msra.mxu0 %v10164_v23  ;;  %v10256_v23 = vld [vmem:[#allocation8 + $0x2d4] ss:$24 sps:$4 sm:$0xff]  }
 0x16f   :  { %2362 = vmatpush2.bf16.msra.mxu1 %v10167_v24  ;;  %2312 = vmatprep.subr.bf16.mxu0 %v10172_v25  ;;  %v10206_v25 = vld [vmem:[#allocation5 + $0x8e0] ss:$24 sps:$4 sm:$0xff]  }
 0x170   :  { %2363 = vmatprep.subr.bf16.mxu1 %v10175_v26  ;;  %v10254_v26 = vld [vmem:[#allocation8 + $0x2d0] ss:$24 sps:$4 sm:$0xff]  }
 0x172   :  { %2313 = vmatpush2.bf16.msra.mxu0 %v10170_v30  ;;  %v10211_v30 = vld [vmem:[#allocation5 + $0x8b4] ss:$24 sps:$4 sm:$0xff]  }
 0x173   :  { %2364 = vmatpush2.bf16.msra.mxu1 %v10173_v31  ;;  %2314 = vmatprep.subr.bf16.mxu0 %v10178_v34  ;;  %v10259_v31 = vld [vmem:[#allocation8 + $0x2a4] ss:$24 sps:$4 sm:$0xff]  }
 0x174   :  { %2365 = vmatprep.subr.bf16.mxu1 %v10181_v4  ;;  %v10209_v34 = vld [vmem:[#allocation5 + $0x8b0] ss:$24 sps:$4 sm:$0xff]   ;;  %v10214_v4 = vld [vmem:[#allocation5 + $0x884] ss:$24 sps:$4 sm:$0xff]  }
 0x176   :  { %2315 = vmatpush2.bf16.msra.mxu0 %v10176_v35  ;;  %v10257_v35 = vld [vmem:[#allocation8 + $0x2a0] ss:$24 sps:$4 sm:$0xff]  }
 0x177   :  { %2366 = vmatpush2.bf16.msra.mxu1 %v10179_v36  ;;  %2386 = vmatprep.subr.bf16.mxu0 %v10184_v37  ;;  %v10262_v36 = vld [vmem:[#allocation8 + $0x274] ss:$24 sps:$4 sm:$0xff]  }
 0x178   :  { %4391 = vmatprep.subr.bf16.mxu1 %v10217_v38  ;;  %v10212_v37 = vld [vmem:[#allocation5 + $0x880] ss:$24 sps:$4 sm:$0xff]  }
 0x179   :  { %v2012_v43 = vpop.f32.mrf.mxu0  ;;  %2317 = vmatmul.mubr.bf16.vlgmr.msra.gmra.mxu0 %v11304_v45  ;;  %v10260_v38 = vld [vmem:[#allocation8 + $0x270] ss:$24 sps:$4 sm:$0xff]  }
 0x17a   :  { %v2063_v44 = vpop.f32.mrf.mxu1  ;;  %2368 = vmatmul.mubr.bf16.vlgmr.msra.gmra.mxu1 %v11305_v46  ;;  %2387 = vmatpush1.bf16.msra.mxu0 %v10182_v39  ;;  %v10220_v39 = vld [vmem:[#allocation5 + $0x854] ss:$24 sps:$4 sm:$0xff]   ;;  %v10224_v45 = vld [vmem:[#allocation5 + $0x820] ss:$24 sps:$4 sm:$0xff]  }
 0x17b   :  { %v11712_v49 = vadd.f32 %v2063_v44, %v2012_v43  ;;  %4392 = vmatpush1.bf16.msra.mxu1 %v10215_v41  ;;  %2388 = vmatprep.subr.bf16.mxu0 %v10187_v42  ;;  %v11718_v57 = vpop.f32.mrf.mxu0  ;;  %v10265_v41 = vld [vmem:[#allocation8 + $0x244] ss:$24 sps:$4 sm:$0xff]   ;;  %v10268_v44 = vld [vmem:[#allocation8 + $0x214] ss:$24 sps:$4 sm:$0xff]  }
 0x17c   :  { %4393 = vmatprep.subr.bf16.mxu1 %v10223_v5  ;;  %2326 = vmatprep.mubr.bf16.mxu0 %v11676_v27  ;;  %v11720_v27 = vpop.f32.mrf.mxu1  ;;  %v10218_v42 = vld [vmem:[#allocation5 + $0x850] ss:$24 sps:$4 sm:$0xff]   ;;  %v165_v5 = vlaneseq  ;;  %v10226_v43 = vld [vmem:[#allocation5 + $0x824] ss:$24 sps:$4 sm:$0xff]  }
 0x17d   :  { %2377 = vmatprep.mubr.bf16.mxu1 %v11681_v32  ;;  %v10241_v32 = vld [vmem:[#allocation8 + $0x94] ss:$24 sps:$4 sm:$0xff]   ;;  %v11722_v62 = vpop.f32.mrf.mxu0 }
 0x17e   :  { %2389 = vmatpush1.bf16.msra.mxu0 %v10185_v16  ;;  %v10263_v16 = vld [vmem:[#allocation8 + $0x240] ss:$24 sps:$4 sm:$0xff]   ;;  %v11738_v46 = vshrl.u32 %v165_v5, 7 }
 0x17f   :  { %4394 = vmatpush1.bf16.msra.mxu1 %v10221_v50  ;;  %2390 = vmatprep.subr.bf16.mxu0 %v10190_v47  ;;  %v11726_v2 = vpop.f32.mrf.mxu0  ;;  %v10266_v47 = vld [vmem:[#allocation8 + $0x210] ss:$24 sps:$4 sm:$0xff]   ;;  %v11781_v5 = vld [vmem:[#allocation7] sm:$0x3f] }
 0x180   :  { %4395 = vmatprep.subr.bf16.mxu1 %v10229_v40  ;;  %v167_v50 = vadd.s32 8, %v11738_v46  ;;  %v10232_v40 = vld [vmem:[#allocation5 + $0x7f4] ss:$24 sps:$4 sm:$0xff]   ;;  %vm169_vm0 = vcmp.eq.s32.totalorder %v11738_v46, 0  ;;  %vm2473_vm2 = vcmp.lt.s32.totalorder %v11738_v46, 1  ;;  %vm2528_vm3 = vcmp.lt.s32.totalorder %v11738_v46, 7 }
 0x181   :  { %2327 = vmatmul.mubr.bf16.gmra.mxu0 %v11678_v28  ;;  %v11724_v28 = vpop.f32.mrf.mxu1  ;;  %v11730_v8 = vpop.f32.mrf.mxu0 }
 0x182   :  { %2378 = vmatmul.mubr.bf16.gmra.mxu1 %v11683_v33  ;;  %2391 = vmatpush1.bf16.msra.mxu0 %v10188_v51  ;;  %v10247_v33 = vld [vmem:[#allocation8 + $0x64] ss:$24 sps:$4 sm:$0xff]   ;;  %vm173_vm1 = vcmp.eq.s32.totalorder %v167_v50, 15 }
 0x183   :  { %4396 = vmatpush1.bf16.msra.mxu1 %v10227_v48  ;;  %2392 = vmatprep.subr.bf16.mxu0 %v10193_v52  ;;  %v11728_v3 = vpop.f32.mrf.mxu1  ;;  %v11734_v12 = vpop.f32.mrf.mxu0  ;;  %v10271_v51 = vld [vmem:[#allocation8 + $0x1e4] ss:$24 sps:$4 sm:$0xff]  }
 0x184   :  { %4397 = vmatprep.subr.bf16.mxu1 %v10235_v53  ;;  %2418 = vmatprep.mubr.bf16.mxu0 %v11306_v60  ;;  %v10230_v48 = vld [vmem:[#allocation5 + $0x7f0] ss:$24 sps:$4 sm:$0xff]   ;;  %v10238_v52 = vld [vmem:[#allocation5 + $0x7c4] ss:$24 sps:$4 sm:$0xff]  }
 0x185   :  { %v11732_v11 = vpop.f32.mrf.mxu1  ;;  %v2026_v17 = vpop.f32.mrf.mxu0  ;;  %v10269_v53 = vld [vmem:[#allocation8 + $0x1e0] ss:$24 sps:$4 sm:$0xff]   ;;  %v10272_v60 = vld [vmem:[#allocation8 + $0x1b0] ss:$24 sps:$4 sm:$0xff]  }
 0x186   :  { %2393 = vmatpush1.bf16.msra.mxu0 %v10191_v54  ;;  %v10274_v54 = vld [vmem:[#allocation8 + $0x1b4] ss:$24 sps:$4 sm:$0xff]  }
 0x187   :  { %4398 = vmatpush1.bf16.msra.mxu1 %v10233_v55  ;;  %2394 = vmatprep.subr.bf16.mxu0 %v10196_v56  ;;  %v11736_v13 = vpop.f32.mrf.mxu1  ;;  %v2027_v21 = vpop.f32.mrf.mxu0  ;;  %v10236_v55 = vld [vmem:[#allocation5 + $0x7c0] ss:$24 sps:$4 sm:$0xff]   ;;  %v11557_v56 = vmov 3.0  }
 0x188   :  { %4399 = vmatprep.subr.bf16.mxu1 %v10241_v32  ;;  %v178_v32 = vsel %vm169_vm0, 2.0, %v11557_v56  ;;  %v2066_v21 = vadd.f32 %v11720_v27, %v11718_v57 }
 0x189   :  { %v2077_v20 = vpop.f32.mrf.mxu1  ;;  %11190 = vrsqrt.f32 %v178_v32 }
 0x18a   :  { %2395 = vmatpush1.bf16.msra.mxu0 %v10194_v58  ;;  %v10244_v58 = vld [vmem:[#allocation5 + $0x794] ss:$24 sps:$4 sm:$0xff]  }
 0x18b   :  { %4400 = vmatpush1.bf16.msra.mxu1 %v10239_v59  ;;  %2396 = vmatprep.subr.bf16.mxu0 %v10199_v61  ;;  %v2078_v24 = vpop.f32.mrf.mxu1  ;;  %v179_v59 = vsel %vm173_vm1, 2.0, %v11557_v56  ;;  %v10277_v61 = vld [vmem:[#allocation8 + $0x184] ss:$24 sps:$4 sm:$0xff]  }
 0x18c   :  { %4401 = vmatprep.subr.bf16.mxu1 %v10247_v33  ;;  %v10242_v33 = vld [vmem:[#allocation5 + $0x790] ss:$24 sps:$4 sm:$0xff]   ;;  %11192 = vrsqrt.f32 %v179_v59 }
 0x18e   :  { %2397 = vmatpush1.bf16.msra.mxu0 %v10197_v63  ;;  %v10275_v63 = vld [vmem:[#allocation8 + $0x180] ss:$24 sps:$4 sm:$0xff]  }
 0x18f   :  { %4402 = vmatpush1.bf16.msra.mxu1 %v10245_v0  ;;  %2398 = vmatprep.subr.bf16.mxu0 %v10202_v1  ;;  %v10280_v0 = vld [vmem:[#allocation8 + $0x454] ss:$24 sps:$4 sm:$0xff]   ;;  %v10278_v1 = vld [vmem:[#allocation8 + $0x450] ss:$24 sps:$4 sm:$0xff]  }
 0x190   :  { %4403 = vmatprep.subr.bf16.mxu1 %v10250_v6  ;;  %v10283_v6 = vld [vmem:[#allocation8 + $0x424] ss:$24 sps:$4 sm:$0xff]  }
 0x192   :  { %2399 = vmatpush1.bf16.msra.mxu0 %v10200_v7 }
 0x193   :  { %4404 = vmatpush1.bf16.msra.mxu1 %v10248_v9  ;;  %2400 = vmatprep.subr.bf16.mxu0 %v10205_v10  ;;  %v11307_v9 = vld [vmem:[#allocation2 + $0x10] ss:$24 sps:$4 sm:$0xff]  }
 0x194   :  { %4405 = vmatprep.subr.bf16.mxu1 %v10253_v14  ;;  %v10281_v14 = vld [vmem:[#allocation8 + $0x420] ss:$24 sps:$4 sm:$0xff]  }
 0x196   :  { %2401 = vmatpush1.bf16.msra.mxu0 %v10203_v15  ;;  %v10286_v15 = vld [vmem:[#allocation8 + $0x3f4] ss:$24 sps:$4 sm:$0xff]   ;;  %v11748_v20 = vpop.eup %11190 }
 0x197   :  { %4406 = vmatpush1.bf16.msra.mxu1 %v10251_v18  ;;  %2402 = vmatprep.subr.bf16.mxu0 %v10208_v19 }
 0x198   :  { %4407 = vmatprep.subr.bf16.mxu1 %v10256_v23  ;;  %v2068_v23 = vadd.f32 %v11724_v28, %v11722_v62  ;;  %v2074_v62 = vadd.f32 %v11732_v11, %v11730_v8  ;;  %v2076_v11 = vadd.f32 %v11736_v13, %v11734_v12 }
 0x199   :  { %v11754_v24 = vpop.eup %11192 }
 0x19a   :  { %2403 = vmatpush2.bf16.msra.mxu0 %v10206_v25 }
 0x19b   :  { %4408 = vmatpush2.bf16.msra.mxu1 %v10254_v26  ;;  %2404 = vmatprep.subr.bf16.mxu0 %v10211_v30 }
 0x19c   :  { %4409 = vmatprep.subr.bf16.mxu1 %v10259_v31  ;;  %v10284_v31 = vld [vmem:[#allocation8 + $0x3f0] ss:$24 sps:$4 sm:$0xff]  }
 0x19e   :  { %2405 = vmatpush2.bf16.msra.mxu0 %v10209_v34  ;;  %v10289_v34 = vld [vmem:[#allocation8 + $0x3c4] ss:$24 sps:$4 sm:$0xff]  }
 0x19f   :  { %4410 = vmatpush2.bf16.msra.mxu1 %v10257_v35  ;;  %2406 = vmatprep.subr.bf16.mxu0 %v10214_v4 }
 0x1a0   :  { %4411 = vmatprep.subr.bf16.mxu1 %v10262_v36 }
 0x1a2   :  { %2407 = vmatpush2.bf16.msra.mxu0 %v10212_v37  ;;  %v10292_v37 = vld [vmem:[#allocation8 + $0x394] ss:$24 sps:$4 sm:$0xff]  }
 0x1a3   :  { %4412 = vmatpush2.bf16.msra.mxu1 %v10260_v38  ;;  %2408 = vmatprep.subr.bf16.mxu0 %v10220_v39 }
 0x1a4   :  { %4413 = vmatprep.subr.bf16.mxu1 %v10265_v41 }
 0x1a6   :  { %2409 = vmatpush2.bf16.msra.mxu0 %v10218_v42 }
 0x1a7   :  { %4414 = vmatpush2.bf16.msra.mxu1 %v10263_v16  ;;  %2410 = vmatprep.subr.bf16.mxu0 %v10226_v43  ;;  %v11786_v43 = vsub.s32 0, %v11738_v46 }
 0x1a8   :  { %4415 = vmatprep.subr.bf16.mxu1 %v10268_v44  ;;  %v10290_v44 = vld [vmem:[#allocation8 + $0x390] ss:$24 sps:$4 sm:$0xff]  }
 0x1a9   :  { %v2588_v59 = vrot.slane %v11781_v5, %v11786_v43 }
 0x1aa   :  { %2411 = vmatpush2.bf16.msra.mxu0 %v10224_v45 }
 0x1ab   :  { %4416 = vmatpush2.bf16.msra.mxu1 %v10266_v47  ;;  %2412 = vmatprep.subr.bf16.mxu0 %v10232_v40 }
 0x1ac   :  { %4417 = vmatprep.subr.bf16.mxu1 %v10271_v51  ;;  %v10295_v51 = vld [vmem:[#allocation8 + $0x364] ss:$24 sps:$4 sm:$0xff]  }
 0x1ae   :  { %2413 = vmatpush2.bf16.msra.mxu0 %v10230_v48 }
 0x1af   :  { %4418 = vmatpush2.bf16.msra.mxu1 %v10269_v53  ;;  %2414 = vmatprep.subr.bf16.mxu0 %v10238_v52 }
 0x1b0   :  { %4419 = vmatprep.subr.bf16.mxu1 %v10274_v54 }
 0x1b2   :  { %2415 = vmatpush2.bf16.msra.mxu0 %v10236_v55 }
 0x1b3   :  { %4420 = vmatpush2.bf16.msra.mxu1 %v10272_v60  ;;  %2416 = vmatprep.subr.bf16.mxu0 %v10244_v58  ;;  %v11796_v60 = vsub.s32 1, %v11738_v46 }
 0x1b4   :  { %4421 = vmatprep.subr.bf16.mxu1 %v10277_v61 }
 0x1b6   :  { %2417 = vmatpush2.bf16.msra.mxu0 %v10242_v33 }
 0x1b7   :  { %4422 = vmatpush2.bf16.msra.mxu1 %v10275_v63  ;;  %4442 = vmatprep.subr.bf16.mxu0 %v10280_v0 }
 0x1b9   :  { %v2114_v7 = vpop.f32.mrf.mxu0  ;;  %2419 = vmatmul.mubr.bf16.vlgmr.msra.gmra.mxu0 %v11307_v9 }
 0x1ba   :  { %v11742_v10 = vpop.f32.mrf.mxu1  ;;  %2428 = vmatprep.mubr.bf16.mxu0 %v11694_v22  ;;  %4443 = vmatpush1.bf16.msra.mxu0 %v10278_v1  ;;  %v2115_v17 = vadd.f32 %v2114_v7, %v11712_v49  ;;  %v2070_v49 = vadd.f32 %v11728_v3, %v11726_v2  ;;  %v10287_v3 = vld [vmem:[#allocation8 + $0x3c0] ss:$24 sps:$4 sm:$0xff]  }
 0x1bb   :  { %v2116_v18 = vpop.f32.mrf.mxu0  ;;  %4444 = vmatprep.subr.bf16.mxu0 %v10283_v6  ;;  %v10293_v1 = vld [vmem:[#allocation8 + $0x360] ss:$24 sps:$4 sm:$0xff]   ;;  %v10298_v6 = vld [vmem:[#allocation8 + $0x334] ss:$24 sps:$4 sm:$0xff]  }
 0x1bc   :  { %v11746_v19 = vpop.f32.mrf.mxu1  ;;  %v2117_v26 = vadd.f32 %v2116_v18, %v2066_v21  ;;  %v11761_v4 = vmul.f32 %v11748_v20, %v2115_v17 }
 0x1bd   :  { %v2118_v22 = vpop.f32.mrf.mxu0 }
 0x1be   :  { %v11756_v25 = vpop.f32.mrf.mxu1  ;;  %v2119_v30 = vadd.f32 %v2118_v22, %v2068_v23  ;;  %4445 = vmatpush1.bf16.msra.mxu0 %v10281_v14  ;;  %v11773_v38 = vmul.f32 %v11748_v20, %v2117_v26  ;;  %v2455_v42 = vrot.slane %v11761_v4, 7  ;;  %v2510_v61 = vrot.slane %v11761_v4, 1 }
 0x1bf   :  { %v2120_v57 = vpop.f32.mrf.mxu0  ;;  %4446 = vmatprep.subr.bf16.mxu0 %v10286_v15 }
 0x1c0   :  { %v11763_v27 = vpop.f32.mrf.mxu1  ;;  %v2443_v28 = vmul.f32 %v11754_v24, %v2119_v30  ;;  %v2121_v35 = vadd.f32 %v2120_v57, %v2070_v49  ;;  %v2456_v48 = vrot.slane %v11773_v38, 7  ;;  %v2511_v17 = vrot.slane %v11773_v38, 1 }
 0x1c1   :  { %v2124_v2 = vpop.f32.mrf.mxu0  ;;  %2429 = vmatmul.mubr.bf16.gmra.mxu0 %v11700_v29 }
 0x1c2   :  { %v11770_v36 = vpop.f32.mrf.mxu1  ;;  %v2461_v39 = vrot.slane %v2443_v28, 7  ;;  %v11776_v41 = vmul.f32 %v11754_v24, %v2121_v35  ;;  %v2125_v8 = vadd.f32 %v2124_v2, %v2074_v62  ;;  %4447 = vmatpush1.bf16.msra.mxu0 %v10284_v31  ;;  %v2516_v52 = vrot.slane %v2443_v28, 1  ;;  %v10296_v62 = vld [vmem:[#allocation8 + $0x330] ss:$24 sps:$4 sm:$0xff]  }
 0x1c3   :  { %v2126_v29 = vpop.f32.mrf.mxu0  ;;  %4448 = vmatprep.subr.bf16.mxu0 %v10289_v34 }
 0x1c4   :  { %v11783_v16 = vpop.f32.mrf.mxu1  ;;  %v2480_v45 = vsel %vm2473_vm2, %v2455_v42, %v2461_v39  ;;  %v2462_v47 = vrot.slane %v11776_v41, 7  ;;  %v2449_v50 = vmul.f32 0.0, %v2125_v8  ;;  %v2127_v40 = vadd.f32 %v2126_v29, %v2076_v11 }
 0x1c5   :  { %v2128_v12 = vpop.f32.mrf.mxu0  ;;  %v2498_v58 = vadd.f32 %v2480_v45, %v2443_v28  ;;  %v2535_v18 = vsel %vm2528_vm3, %v2510_v61, %v2516_v52  ;;  %v2517_v21 = vrot.slane %v11776_v41, 1  ;;  %v10301_v28 = vld [vmem:[#allocation8 + $0x304] ss:$24 sps:$4 sm:$0xff]  }
 0x1c6   :  { %v2179_v13 = vpop.f32.mrf.mxu1  ;;  %4449 = vmatpush1.bf16.msra.mxu0 %v10287_v3  ;;  %v2467_v53 = vrot.slane %v2449_v50, 7  ;;  %v2522_v54 = vrot.slane %v2449_v50, 1  ;;  %v2450_v55 = vmul.f32 0.0, %v2127_v40  ;;  %v2481_v33 = vsel %vm2473_vm2, %v2456_v48, %v2462_v47  ;;  %v10304_v40 = vld [vmem:[#allocation8 + $0x5d4] ss:$24 sps:$4 sm:$0xff]  }
 0x1c7   :  { %v2129_v56 = vpop.f32.mrf.mxu0  ;;  %4450 = vmatprep.subr.bf16.mxu0 %v10292_v37  ;;  %v2499_v22 = vadd.f32 %v2481_v33, %v11776_v41  ;;  %v2592_v37 = vrot.slane %v11781_v5, %v11796_v60 }
 0x1c8   :  { %v2180_v32 = vpop.f32.mrf.mxu1  ;;  %v2486_v63 = vsel %vm2473_vm2, %v2467_v53, %v2455_v42  ;;  %v2529_v0 = vsel %vm2528_vm3, %v2516_v52, %v2522_v54  ;;  %v2474_v7 = vsel %vm2473_vm2, %v2461_v39, %v2467_v53  ;;  %v2468_v15 = vrot.slane %v2450_v55, 7  ;;  %v10302_v53 = vld [vmem:[#allocation8 + $0x5d0] ss:$24 sps:$4 sm:$0xff]   ;;  %v10305_v56 = vld [vmem:[#allocation8 + $0x5a0] ss:$24 sps:$4 sm:$0xff]  }
 0x1c9   :  { %v2492_v9 = vadd.f32 %v2486_v63, %v11761_v4  ;;  %v2553_v14 = vadd.f32 %v2529_v0, %v2498_v58  ;;  %v2523_v23 = vrot.slane %v2450_v55, 1  ;;  %v2504_v31 = vadd.f32 %v2474_v7, %v2449_v50  ;;  %v10299_v50 = vld [vmem:[#allocation8 + $0x300] ss:$24 sps:$4 sm:$0xff]   ;;  %v10310_v32 = vld [vmem:[#allocation8 + $0x574] ss:$24 sps:$4 sm:$0xff]  }
 0x1ca   :  { %4451 = vmatpush1.bf16.msra.mxu0 %v10290_v44  ;;  %v2475_v30 = vsel %vm2473_vm2, %v2462_v47, %v2468_v15  ;;  %v2487_v34 = vsel %vm2473_vm2, %v2468_v15, %v2456_v48  ;;  %v2536_v39 = vsel %vm2528_vm3, %v2511_v17, %v2517_v21  ;;  %v2541_v42 = vsel %vm2528_vm3, %v2522_v54, %v2510_v61  ;;  %v10307_v54 = vld [vmem:[#allocation8 + $0x5a4] ss:$24 sps:$4 sm:$0xff]   ;;  %v10308_v58 = vld [vmem:[#allocation8 + $0x570] ss:$24 sps:$4 sm:$0xff]   ;;  %v10311_v0 = vld [vmem:[#allocation8 + $0x540] ss:$24 sps:$4 sm:$0xff]  }
 0x1cb   :  { %4452 = vmatprep.subr.bf16.mxu0 %v10295_v51  ;;  %v2547_v49 = vadd.f32 %v2535_v18, %v2492_v9  ;;  %v2571_v26 = vmul.f32 %v11754_v24, %v2553_v14  ;;  %v2505_v4 = vadd.f32 %v2475_v30, %v2450_v55  ;;  %v2530_v57 = vsel %vm2528_vm3, %v2517_v21, %v2523_v23  ;;  %v10313_v61 = vld [vmem:[#allocation8 + $0x544] ss:$24 sps:$4 sm:$0xff]   ;;  %v10376_v18 = vld [vmem:[#allocation8 + $0x754] ss:$24 sps:$4 sm:$0xff]  }
 0x1cc   :  { %v2493_v2 = vadd.f32 %v2487_v34, %v11773_v38  ;;  %v2542_v3 = vsel %vm2528_vm3, %v2523_v23, %v2511_v17  ;;  %v2554_v8 = vadd.f32 %v2530_v57, %v2499_v22  ;;  %v2559_v38 = vadd.f32 %v2541_v42, %v2504_v31  ;;  %v10374_v17 = vld [vmem:[#allocation8 + $0x750] ss:$24 sps:$4 sm:$0xff]   ;;  %v10319_v23 = vld [vmem:[#allocation8 + $0x4e4] ss:$24 sps:$4 sm:$0xff]   ;;  %4493 = vmatprep.subr.bf16.mxu1 %v10376_v18  ;;  %v10317_v22 = vld [vmem:[#allocation8 + $0x4e0] ss:$24 sps:$4 sm:$0xff]  }
 0x1cd   :  { %v2565_v35 = vmul.f32 %v11748_v20, %v2547_v49  ;;  %v2621_v41 = vadd.f32 %v2588_v59, %v2571_v26  ;;  %v2560_v11 = vadd.f32 %v2542_v3, %v2505_v4  ;;  %v10380_v49 = vld [vmem:[#allocation8 + $0x720] ss:$24 sps:$4 sm:$0xff]   ;;  %v10382_v26 = vld [vmem:[#allocation8 + $0x724] ss:$24 sps:$4 sm:$0xff]   ;;  %v10322_v31 = vld [vmem:[#allocation8 + $0x4b4] ss:$24 sps:$4 sm:$0xff]  }
 0x1ce   :  { %4453 = vmatpush1.bf16.msra.mxu0 %v10293_v1  ;;  %v2548_v44 = vadd.f32 %v2536_v39, %v2493_v2  ;;  %v2572_v45 = vmul.f32 %v11754_v24, %v2554_v8  ;;  %v2577_v52 = vmul.f32 0.0, %v2559_v38  ;;  %v10316_v1 = vld [vmem:[#allocation8 + $0x514] ss:$24 sps:$4 sm:$0xff]   ;;  %v10320_v34 = vld [vmem:[#allocation8 + $0x4b0] ss:$24 sps:$4 sm:$0xff]  }
 0x1cf   :  { %4454 = vmatprep.subr.bf16.mxu0 %v10298_v6  ;;  %v2615_v29 = vadd.f32 %v2588_v59, %v2565_v35  ;;  %v2578_v47 = vmul.f32 0.0, %v2560_v11  ;;  %11194 = vtanh.f32 %v2621_v41  ;;  %v10386_v57 = vld [vmem:[#allocation8 + $0x6f0] ss:$24 sps:$4 sm:$0xff]   ;;  %v10323_v35 = vld [vmem:[#allocation8 + $0x480] ss:$24 sps:$4 sm:$0xff]  }
 0x1d0   :  { %v2566_v12 = vmul.f32 %v11748_v20, %v2548_v44  ;;  %v2622_v13 = vadd.f32 %v2592_v37, %v2572_v45  ;;  %v2627_v55 = vadd.f32 %v2588_v59, %v2577_v52  ;;  %v10314_v59 = vld [vmem:[#allocation8 + $0x510] ss:$24 sps:$4 sm:$0xff]   ;;  %v10392_v2 = vld [vmem:[#allocation8 + $0x6c0] ss:$24 sps:$4 sm:$0xff]   ;;  %v10394_v3 = vld [vmem:[#allocation8 + $0x6c4] ss:$24 sps:$4 sm:$0xff]  }
 0x1d1   :  { %v2628_v51 = vadd.f32 %v2592_v37, %v2578_v47  ;;  %11196 = vtanh.f32 %v2615_v29  ;;  %v10398_v39 = vld [vmem:[#allocation8 + $0x690] ss:$24 sps:$4 sm:$0xff]   ;;  %v10400_v41 = vld [vmem:[#allocation8 + $0x694] ss:$24 sps:$4 sm:$0xff]   ;;  %v10404_v42 = vld [vmem:[#allocation8 + $0x660] ss:$24 sps:$4 sm:$0xff]  }
 0x1d2   :  { %4455 = vmatpush1.bf16.msra.mxu0 %v10296_v62  ;;  %v2616_v48 = vadd.f32 %v2592_v37, %v2566_v12  ;;  %11198 = vtanh.f32 %v2622_v13  ;;  %v10388_v62 = vld [vmem:[#allocation8 + $0x6f4] ss:$24 sps:$4 sm:$0xff]   ;;  %v10406_v29 = vld [vmem:[#allocation8 + $0x664] ss:$24 sps:$4 sm:$0xff]  }
 0x1d3   :  { %4456 = vmatprep.subr.bf16.mxu0 %v10301_v28  ;;  %v10325_v28 = vld [vmem:[#allocation8 + $0x484] ss:$24 sps:$4 sm:$0xff]   ;;  %v10412_v13 = vld [vmem:[#allocation8 + $0x634] ss:$24 sps:$4 sm:$0xff]  }
 0x1d4   :  { %11200 = vtanh.f32 %v2616_v48  ;;  %v10328_v37 = vld [vmem:[#allocation8 + $0x15c] ss:$24 sps:$4 sm:$0xff]   ;;  %v10410_v48 = vld [vmem:[#allocation8 + $0x630] ss:$24 sps:$4 sm:$0xff]  }
 0x1d5   :  { %11202 = vtanh.f32 %v2628_v51 }
 0x1d6   :  { %4457 = vmatpush1.bf16.msra.mxu0 %v10299_v50  ;;  %11204 = vtanh.f32 %v2627_v55 }
 0x1d7   :  { %4458 = vmatprep.subr.bf16.mxu0 %v10304_v40 }
 0x1da   :  { %4459 = vmatpush2.bf16.msra.mxu0 %v10302_v53 }
 0x1db   :  { %4460 = vmatprep.subr.bf16.mxu0 %v10307_v54 }
 0x1dc   :  { %v11195_v33 = vpop.eup %11194 }
 0x1de   :  { %4461 = vmatpush2.bf16.msra.mxu0 %v10305_v56  ;;  %v11197_v63 = vpop.eup %11196 }
 0x1df   :  { %4462 = vmatprep.subr.bf16.mxu0 %v10310_v32  ;;  %v11199_v6 = vpop.eup %11198  ;;  %v11834_v15 = vpack.c.bf16 %v11195_v33, %v11197_v63  ;;  %v10416_v63 = vld [vmem:[#allocation8 + $0x600] ss:$24 sps:$4 sm:$0xff]  }
 0x1e1   :  { %v11201_v7 = vpop.eup %11200 }
 0x1e2   :  { %4463 = vmatpush2.bf16.msra.mxu0 %v10308_v58  ;;  %v11203_v9 = vpop.eup %11202  ;;  %v11832_v14 = vpack.c.bf16 %v11199_v6, %v11201_v7  ;;  %v11852_v7 = vsub.s32 2, %v11738_v46 }
 0x1e3   :  { %4464 = vmatprep.subr.bf16.mxu0 %v10313_v61  ;;  %v11837_v21 = vpack.c.bf16 %v11203_v9, %v11203_v9  ;;  %v11205_v30 = vpop.eup %11204 }
 0x1e4   :  { %4423 = vmatprep.mubr.bf16.mxu1 %v11832_v14  ;;  %v11841_v4 = vpack.c.bf16 %v11205_v30, %v11205_v30 }
 0x1e5   :  { %4424 = vmatmul.mubr.bf16.vlgmr.msra.gmra.mxu1 %v11834_v15 }
 0x1e6   :  { %4465 = vmatpush2.bf16.msra.mxu0 %v10311_v0  ;;  %4433 = vmatprep.mubr.bf16.mxu1 %v11837_v21 }
 0x1e7   :  { %4466 = vmatprep.subr.bf16.mxu0 %v10316_v1  ;;  %4494 = vmatpush1.bf16.msra.mxu1 %v10374_v17 }
 0x1e8   :  { %4495 = vmatprep.subr.bf16.mxu1 %v10382_v26  ;;  %v10424_v26 = vld [vmem:[#allocation8 + $0x8d4] ss:$24 sps:$4 sm:$0xff]  }
 0x1ea   :  { %4467 = vmatpush2.bf16.msra.mxu0 %v10314_v59 }
 0x1eb   :  { %4468 = vmatprep.subr.bf16.mxu0 %v10319_v23  ;;  %4496 = vmatpush1.bf16.msra.mxu1 %v10380_v49 }
 0x1ec   :  { %4497 = vmatprep.subr.bf16.mxu1 %v10388_v62 }
 0x1ed   :  { %4434 = vmatmul.mubr.bf16.gmra.mxu1 %v11841_v4 }
 0x1ee   :  { %4469 = vmatpush2.bf16.msra.mxu0 %v10317_v22 }
 0x1ef   :  { %4470 = vmatprep.subr.bf16.mxu0 %v10322_v31  ;;  %4498 = vmatpush1.bf16.msra.mxu1 %v10386_v57  ;;  %v10422_v57 = vld [vmem:[#allocation8 + $0x8d0] ss:$24 sps:$4 sm:$0xff]  }
 0x1f0   :  { %4499 = vmatprep.subr.bf16.mxu1 %v10394_v3 }
 0x1f2   :  { %4471 = vmatpush2.bf16.msra.mxu0 %v10320_v34 }
 0x1f3   :  { %4472 = vmatprep.subr.bf16.mxu0 %v10325_v28  ;;  %4500 = vmatpush1.bf16.msra.mxu1 %v10392_v2 }
 0x1f4   :  { %4501 = vmatprep.subr.bf16.mxu1 %v10400_v41  ;;  %v11863_v41 = vrot.slane %v11781_v5, %v11852_v7 }
 0x1f6   :  { %4473 = vmatpush2.bf16.msra.mxu0 %v10323_v35 }
 0x1f7   :  { %4544 = vmatprep.subr.bf16.mxu0 %v10328_v37  ;;  %4502 = vmatpush1.bf16.msra.mxu1 %v10398_v39 }
 0x1f8   :  { %4503 = vmatprep.subr.bf16.mxu1 %v10406_v29 }
 0x1f9   :  { %v2216_v8 = vpop.f32.mrf.mxu0 }
 0x1fa   :  { %v2267_v11 = vpop.f32.mrf.mxu1  ;;  %v2217_v44 = vadd.f32 %v2216_v8, %v11742_v10 }
 0x1fb   :  { %v2218_v38 = vpop.f32.mrf.mxu0  ;;  %4504 = vmatpush1.bf16.msra.mxu1 %v10404_v42 }
 0x1fc   :  { %v2269_v45 = vpop.f32.mrf.mxu1  ;;  %v2219_v47 = vadd.f32 %v2218_v38, %v11746_v19  ;;  %v2268_v50 = vadd.f32 %v2267_v11, %v2217_v44  ;;  %4505 = vmatprep.subr.bf16.mxu1 %v10412_v13  ;;  %v10418_v19 = vld [vmem:[#allocation8 + $0x604] ss:$24 sps:$4 sm:$0xff]   ;;  %v11872_v38 = vsub.s32 3, %v11738_v46 }
 0x1fd   :  { %v2220_v40 = vpop.f32.mrf.mxu0  ;;  %v10430_v11 = vld [vmem:[#allocation8 + $0x8a4] ss:$24 sps:$4 sm:$0xff]  }
 0x1fe   :  { %v2271_v12 = vpop.f32.mrf.mxu1  ;;  %v2221_v51 = vadd.f32 %v2220_v40, %v11756_v25  ;;  %v2439_v52 = vmul.f32 %v11748_v20, %v2268_v50  ;;  %v2270_v55 = vadd.f32 %v2269_v45, %v2219_v47  ;;  %v10428_v45 = vld [vmem:[#allocation8 + $0x8a0] ss:$24 sps:$4 sm:$0xff]  }
 0x1ff   :  { %v2222_v53 = vpop.f32.mrf.mxu0  ;;  %4506 = vmatpush1.bf16.msra.mxu1 %v10410_v48 }
 0x200   :  { %v2273_v54 = vpop.f32.mrf.mxu1  ;;  %v2223_v10 = vadd.f32 %v2222_v53, %v11763_v27  ;;  %v2272_v56 = vadd.f32 %v2271_v12, %v2221_v51  ;;  %v2457_v0 = vrot.slane %v2439_v52, 7  ;;  %v2512_v25 = vrot.slane %v2439_v52, 1  ;;  %4507 = vmatprep.subr.bf16.mxu1 %v10418_v19 }
 0x201   :  { %v2226_v32 = vpop.f32.mrf.mxu0  ;;  %v2440_v27 = vmul.f32 %v11748_v20, %v2270_v55 }
 0x202   :  { %v2277_v58 = vpop.f32.mrf.mxu1  ;;  %v2227_v61 = vadd.f32 %v2226_v32, %v11770_v36  ;;  %v2274_v33 = vadd.f32 %v2273_v54, %v2223_v10  ;;  %v2445_v1 = vmul.f32 %v11754_v24, %v2272_v56  ;;  %v10436_v32 = vld [vmem:[#allocation8 + $0x874] ss:$24 sps:$4 sm:$0xff]  }
 0x203   :  { %v2228_v6 = vpop.f32.mrf.mxu0  ;;  %4508 = vmatpush1.bf16.msra.mxu1 %v10416_v63  ;;  %v2513_v54 = vrot.slane %v2440_v27, 1 }
 0x204   :  { %v2279_v9 = vpop.f32.mrf.mxu1  ;;  %v2446_v59 = vmul.f32 %v11754_v24, %v2274_v33  ;;  %v2229_v17 = vadd.f32 %v2228_v6, %v11783_v16  ;;  %v2278_v18 = vadd.f32 %v2277_v58, %v2227_v61  ;;  %v2463_v36 = vrot.slane %v2445_v1, 7  ;;  %4509 = vmatprep.subr.bf16.mxu1 %v10424_v26  ;;  %v10434_v33 = vld [vmem:[#allocation8 + $0x870] ss:$24 sps:$4 sm:$0xff]  }
 0x205   :  { %v2518_v23 = vrot.slane %v2445_v1, 1  ;;  %v2230_v22 = vpop.f32.mrf.mxu0  ;;  %v2458_v16 = vrot.slane %v2440_v27, 7 }
 0x206   :  { %v2281_v49 = vpop.f32.mrf.mxu1  ;;  %v2464_v30 = vrot.slane %v2446_v59, 7  ;;  %v2451_v31 = vmul.f32 0.0, %v2278_v18  ;;  %v2280_v34 = vadd.f32 %v2279_v9, %v2229_v17  ;;  %v2482_v62 = vsel %vm2473_vm2, %v2457_v0, %v2463_v36 }
 0x207   :  { %v2537_v28 = vsel %vm2528_vm3, %v2512_v25, %v2518_v23  ;;  %v2231_v35 = vpop.f32.mrf.mxu0  ;;  %v2500_v3 = vadd.f32 %v2482_v62, %v2445_v1  ;;  %4510 = vmatpush2.bf16.msra.mxu1 %v10422_v57  ;;  %v2519_v13 = vrot.slane %v2446_v59, 1  ;;  %v2600_v1 = vrot.slane %v11781_v5, %v11872_v38  ;;  %v10440_v5 = vld [vmem:[#allocation8 + $0x840] ss:$24 sps:$4 sm:$0xff]   ;;  %v10448_v57 = vld [vmem:[#allocation8 + $0x814] ss:$24 sps:$4 sm:$0xff]  }
 0x208   :  { %v2282_v2 = vpop.f32.mrf.mxu1  ;;  %v2469_v37 = vrot.slane %v2451_v31, 7  ;;  %v2524_v39 = vrot.slane %v2451_v31, 1  ;;  %v2452_v8 = vmul.f32 0.0, %v2280_v34  ;;  %v2483_v42 = vsel %vm2473_vm2, %v2458_v16, %v2464_v30  ;;  %4511 = vmatprep.subr.bf16.mxu1 %v10430_v11  ;;  %v10452_v35 = vld [vmem:[#allocation8 + $0x7e0] ss:$24 sps:$4 sm:$0xff]  }
 0x209   :  { %v2501_v55 = vadd.f32 %v2483_v42, %v2446_v59  ;;  %v2538_v6 = vsel %vm2528_vm3, %v2513_v54, %v2519_v13  ;;  %v10454_v2 = vld [vmem:[#allocation8 + $0x7e4] ss:$24 sps:$4 sm:$0xff]   ;;  %v10464_v42 = vld [vmem:[#allocation8 + $0x780] ss:$24 sps:$4 sm:$0xff]  }
 0x20a   :  { %v2476_v29 = vsel %vm2473_vm2, %v2463_v36, %v2469_v37  ;;  %v2488_v44 = vsel %vm2473_vm2, %v2469_v37, %v2457_v0  ;;  %v2531_v40 = vsel %vm2528_vm3, %v2518_v23, %v2524_v39  ;;  %v2543_v12 = vsel %vm2528_vm3, %v2524_v39, %v2512_v25  ;;  %v10460_v37 = vld [vmem:[#allocation8 + $0x7b4] ss:$24 sps:$4 sm:$0xff]  }
 0x20b   :  { %v2494_v47 = vadd.f32 %v2488_v44, %v2439_v52  ;;  %v2506_v50 = vadd.f32 %v2476_v29, %v2451_v31  ;;  %v2555_v51 = vadd.f32 %v2531_v40, %v2500_v3  ;;  %v2470_v48 = vrot.slane %v2452_v8, 7  ;;  %4512 = vmatpush2.bf16.msra.mxu1 %v10428_v45  ;;  %v10458_v3 = vld [vmem:[#allocation8 + $0x7b0] ss:$24 sps:$4 sm:$0xff]   ;;  %v10466_v29 = vld [vmem:[#allocation8 + $0x784] ss:$24 sps:$4 sm:$0xff]  }
 0x20c   :  { %v2525_v53 = vrot.slane %v2452_v8, 1  ;;  %4513 = vmatprep.subr.bf16.mxu1 %v10436_v32  ;;  %v10326_v45 = vld [vmem:[#allocation8 + $0x158] ss:$24 sps:$4 sm:$0xff]   ;;  %v10340_v32 = vld [vmem:[#allocation8 + $0x9c] ss:$24 sps:$4 sm:$0xff]  }
 0x20d   :  { %v2549_v10 = vadd.f32 %v2537_v28, %v2494_v47  ;;  %v2561_v56 = vadd.f32 %v2543_v12, %v2506_v50  ;;  %v2573_v52 = vmul.f32 %v11754_v24, %v2555_v51  ;;  %v2477_v58 = vsel %vm2473_vm2, %v2464_v30, %v2470_v48  ;;  %v10446_v28 = vld [vmem:[#allocation8 + $0x810] ss:$24 sps:$4 sm:$0xff]   ;;  %v10331_v12 = vld [vmem:[#allocation8 + $0x12c] ss:$24 sps:$4 sm:$0xff]  }
 0x20e   :  { %v2489_v19 = vsel %vm2473_vm2, %v2470_v48, %v2458_v16  ;;  %v2532_v61 = vsel %vm2528_vm3, %v2519_v13, %v2525_v53  ;;  %v2507_v25 = vadd.f32 %v2477_v58, %v2452_v8  ;;  %v2544_v59 = vsel %vm2528_vm3, %v2525_v53, %v2513_v54  ;;  %v10329_v51 = vld [vmem:[#allocation8 + $0x128] ss:$24 sps:$4 sm:$0xff]   ;;  %v10334_v48 = vld [vmem:[#allocation8 + $0xfc] ss:$24 sps:$4 sm:$0xff]   ;;  %v10332_v54 = vld [vmem:[#allocation8 + $0xf8] ss:$24 sps:$4 sm:$0xff]  }
 0x20f   :  { %v2567_v63 = vmul.f32 %v11748_v20, %v2549_v10  ;;  %v2495_v0 = vadd.f32 %v2489_v19, %v2440_v27  ;;  %v2623_v9 = vadd.f32 %v11863_v41, %v2573_v52  ;;  %v2556_v17 = vadd.f32 %v2532_v61, %v2501_v55  ;;  %4514 = vmatpush2.bf16.msra.mxu1 %v10434_v33  ;;  %v10442_v27 = vld [vmem:[#allocation8 + $0x844] ss:$24 sps:$4 sm:$0xff]   ;;  %v10338_v52 = vld [vmem:[#allocation8 + $0x98] ss:$24 sps:$4 sm:$0xff]   ;;  %v10341_v33 = vld [vmem:[#allocation8 + $0x68] ss:$24 sps:$4 sm:$0xff]  }
 0x210   :  { %v2562_v23 = vadd.f32 %v2544_v59, %v2507_v25  ;;  %4515 = vmatprep.subr.bf16.mxu1 %v10442_v27  ;;  %v2579_v62 = vmul.f32 0.0, %v2561_v56  ;;  %v10337_v10 = vld [vmem:[#allocation8 + $0xcc] ss:$24 sps:$4 sm:$0xff]   ;;  %v10335_v56 = vld [vmem:[#allocation8 + $0xc8] ss:$24 sps:$4 sm:$0xff]  }
 0x211   :  { %v2617_v18 = vadd.f32 %v11863_v41, %v2567_v63  ;;  %v2550_v36 = vadd.f32 %v2538_v6, %v2495_v0  ;;  %11206 = vtanh.f32 %v2623_v9  ;;  %v2574_v22 = vmul.f32 %v11754_v24, %v2556_v17  ;;  %v10343_v58 = vld [vmem:[#allocation8 + $0x6c] ss:$24 sps:$4 sm:$0xff]   ;;  %v10346_v0 = vld [vmem:[#allocation8 + $0x3c] ss:$24 sps:$4 sm:$0xff]   ;;  %v10344_v17 = vld [vmem:[#allocation8 + $0x38] ss:$24 sps:$4 sm:$0xff]  }
 0x212   :  { %v2580_v26 = vmul.f32 0.0, %v2562_v23  ;;  %v2629_v16 = vadd.f32 %v11863_v41, %v2579_v62  ;;  %v10472_v41 = vld [vmem:[#allocation8 + $0x45c] ss:$24 sps:$4 sm:$0xff]  }
 0x213   :  { %11208 = vtanh.f32 %v2617_v18  ;;  %v2568_v49 = vmul.f32 %v11748_v20, %v2550_v36  ;;  %v2624_v30 = vadd.f32 %v2600_v1, %v2574_v22  ;;  %4516 = vmatpush2.bf16.msra.mxu1 %v10440_v5  ;;  %v10349_v36 = vld [vmem:[#allocation8 + $0xc] ss:$24 sps:$4 sm:$0xff]   ;;  %v10347_v5 = vld [vmem:[#allocation8 + $0x8] ss:$24 sps:$4 sm:$0xff]  }
 0x214   :  { %v2630_v34 = vadd.f32 %v2600_v1, %v2580_v26  ;;  %4517 = vmatprep.subr.bf16.mxu1 %v10448_v57 }
 0x215   :  { %v2618_v31 = vadd.f32 %v2600_v1, %v2568_v49  ;;  %11210 = vtanh.f32 %v2624_v30  ;;  %v10352_v30 = vld [vmem:[#allocation8 + $0x2dc] ss:$24 sps:$4 sm:$0xff]  }
 0x217   :  { %11212 = vtanh.f32 %v2618_v31  ;;  %4518 = vmatpush2.bf16.msra.mxu1 %v10446_v28  ;;  %v10350_v28 = vld [vmem:[#allocation8 + $0x2d8] ss:$24 sps:$4 sm:$0xff]  }
 0x218   :  { %11214 = vtanh.f32 %v2630_v34  ;;  %4519 = vmatprep.subr.bf16.mxu1 %v10454_v2 }
 0x219   :  { %11216 = vtanh.f32 %v2629_v16  ;;  %v10355_v16 = vld [vmem:[#allocation8 + $0x2ac] ss:$24 sps:$4 sm:$0xff]  }
 0x21b   :  { %4520 = vmatpush2.bf16.msra.mxu1 %v10452_v35 }
 0x21c   :  { %4521 = vmatprep.subr.bf16.mxu1 %v10460_v37 }
 0x21e   :  { %v11207_v39 = vpop.eup %11206 }
 0x21f   :  { %4522 = vmatpush2.bf16.msra.mxu1 %v10458_v3 }
 0x220   :  { %v11209_v8 = vpop.eup %11208  ;;  %4523 = vmatprep.subr.bf16.mxu1 %v10466_v29  ;;  %v10361_v29 = vld [vmem:[#allocation8 + $0x24c] ss:$24 sps:$4 sm:$0xff]  }
 0x221   :  { %v11897_v11 = vpack.c.bf16 %v11207_v39, %v11209_v8  ;;  %v10353_v39 = vld [vmem:[#allocation8 + $0x2a8] ss:$24 sps:$4 sm:$0xff]   ;;  %v10358_v8 = vld [vmem:[#allocation8 + $0x27c] ss:$24 sps:$4 sm:$0xff]  }
 0x222   :  { %v11211_v44 = vpop.eup %11210 }
 0x223   :  { %4524 = vmatpush2.bf16.msra.mxu1 %v10464_v42  ;;  %v10356_v42 = vld [vmem:[#allocation8 + $0x278] ss:$24 sps:$4 sm:$0xff]  }
 0x224   :  { %v11213_v47 = vpop.eup %11212  ;;  %4595 = vmatprep.subr.bf16.mxu1 %v10472_v41  ;;  %v10365_v41 = vld [vmem:[#allocation8 + $0x1e8] ss:$24 sps:$4 sm:$0xff]  }
 0x225   :  { %v11215_v50 = vpop.eup %11214  ;;  %v11899_v40 = vpack.c.bf16 %v11211_v44, %v11213_v47  ;;  %v10359_v44 = vld [vmem:[#allocation8 + $0x248] ss:$24 sps:$4 sm:$0xff]   ;;  %v10362_v47 = vld [vmem:[#allocation8 + $0x218] ss:$24 sps:$4 sm:$0xff]  }
 0x226   :  { %v11902_v13 = vpack.c.bf16 %v11215_v50, %v11215_v50  ;;  %v11217_v53 = vpop.eup %11216  ;;  %v10367_v50 = vld [vmem:[#allocation8 + $0x1ec] ss:$24 sps:$4 sm:$0xff]  }
 0x227   :  { %4474 = vmatprep.mubr.bf16.mxu0 %v11899_v40  ;;  %v11906_v55 = vpack.c.bf16 %v11217_v53, %v11217_v53  ;;  %v10371_v53 = vld [vmem:[#allocation8 + $0x188] ss:$24 sps:$4 sm:$0xff]  }
 0x228   :  { %4475 = vmatmul.mubr.bf16.vlgmr.msra.gmra.mxu0 %v11897_v11 }
 0x229   :  { %4545 = vmatpush1.bf16.msra.mxu0 %v10326_v45  ;;  %4484 = vmatprep.mubr.bf16.mxu0 %v11902_v13  ;;  %v10364_v45 = vld [vmem:[#allocation8 + $0x21c] ss:$24 sps:$4 sm:$0xff]  }
 0x22a   :  { %4546 = vmatprep.subr.bf16.mxu0 %v10331_v12  ;;  %v10370_v12 = vld [vmem:[#allocation8 + $0x1bc] ss:$24 sps:$4 sm:$0xff]  }
 0x22d   :  { %4547 = vmatpush1.bf16.msra.mxu0 %v10329_v51  ;;  %v10368_v51 = vld [vmem:[#allocation8 + $0x1b8] ss:$24 sps:$4 sm:$0xff]  }
 0x22e   :  { %4548 = vmatprep.subr.bf16.mxu0 %v10334_v48  ;;  %v10373_v48 = vld [vmem:[#allocation8 + $0x18c] ss:$24 sps:$4 sm:$0xff]  }
 0x230   :  { %4485 = vmatmul.mubr.bf16.gmra.mxu0 %v11906_v55 }
 0x231   :  { %4549 = vmatpush1.bf16.msra.mxu0 %v10332_v54  ;;  %4576 = vmatprep.mubr.bf16.mxu0 %v11832_v14  ;;  %v10379_v54 = vld [vmem:[#allocation8 + $0x75c] ss:$24 sps:$4 sm:$0xff]  }
 0x232   :  { %4550 = vmatprep.subr.bf16.mxu0 %v10337_v10  ;;  %v10377_v10 = vld [vmem:[#allocation8 + $0x758] ss:$24 sps:$4 sm:$0xff]  }
 0x235   :  { %4551 = vmatpush1.bf16.msra.mxu0 %v10335_v56  ;;  %v10385_v56 = vld [vmem:[#allocation8 + $0x72c] ss:$24 sps:$4 sm:$0xff]  }
 0x236   :  { %4552 = vmatprep.subr.bf16.mxu0 %v10340_v32  ;;  %v10383_v32 = vld [vmem:[#allocation8 + $0x728] ss:$24 sps:$4 sm:$0xff]  }
 0x239   :  { %4553 = vmatpush1.bf16.msra.mxu0 %v10338_v52  ;;  %v2318_v19 = vpop.f32.mrf.mxu0  ;;  %v10391_v52 = vld [vmem:[#allocation8 + $0x6fc] ss:$24 sps:$4 sm:$0xff]  }
 0x23a   :  { %v2369_v61 = vpop.f32.mrf.mxu1  ;;  %4554 = vmatprep.subr.bf16.mxu0 %v10343_v58  ;;  %v10389_v58 = vld [vmem:[#allocation8 + $0x6f8] ss:$24 sps:$4 sm:$0xff]  }
 0x23b   :  { %v11910_v63 = vadd.f32 %v2369_v61, %v2318_v19  ;;  %v2320_v25 = vpop.f32.mrf.mxu0  ;;  %v10397_v19 = vld [vmem:[#allocation8 + $0x6cc] ss:$24 sps:$4 sm:$0xff]   ;;  %v10395_v61 = vld [vmem:[#allocation8 + $0x6c8] ss:$24 sps:$4 sm:$0xff]  }
 0x23c   :  { %v2371_v1 = vpop.f32.mrf.mxu1 }
 0x23d   :  { %v11912_v6 = vadd.f32 %v2371_v1, %v2320_v25  ;;  %4555 = vmatpush1.bf16.msra.mxu0 %v10341_v33  ;;  %v2322_v9 = vpop.f32.mrf.mxu0  ;;  %v10403_v33 = vld [vmem:[#allocation8 + $0x69c] ss:$24 sps:$4 sm:$0xff]   ;;  %v10409_v25 = vld [vmem:[#allocation8 + $0x66c] ss:$24 sps:$4 sm:$0xff]   ;;  %v10407_v1 = vld [vmem:[#allocation8 + $0x668] ss:$24 sps:$4 sm:$0xff]  }
 0x23e   :  { %v2373_v59 = vpop.f32.mrf.mxu1  ;;  %4556 = vmatprep.subr.bf16.mxu0 %v10346_v0  ;;  %v10401_v0 = vld [vmem:[#allocation8 + $0x698] ss:$24 sps:$4 sm:$0xff]  }
 0x23f   :  { %v11914_v18 = vadd.f32 %v2373_v59, %v2322_v9  ;;  %v2324_v23 = vpop.f32.mrf.mxu0  ;;  %v10415_v9 = vld [vmem:[#allocation8 + $0x63c] ss:$24 sps:$4 sm:$0xff]  }
 0x240   :  { %v2375_v27 = vpop.f32.mrf.mxu1 }
 0x241   :  { %v11916_v22 = vadd.f32 %v2375_v27, %v2324_v23  ;;  %4557 = vmatpush1.bf16.msra.mxu0 %v10344_v17  ;;  %v2328_v49 = vpop.f32.mrf.mxu0  ;;  %v10413_v23 = vld [vmem:[#allocation8 + $0x638] ss:$24 sps:$4 sm:$0xff]  }
 0x242   :  { %v2379_v26 = vpop.f32.mrf.mxu1  ;;  %4558 = vmatprep.subr.bf16.mxu0 %v10349_v36 }
 0x243   :  { %v11918_v31 = vadd.f32 %v2379_v26, %v2328_v49  ;;  %v2330_v34 = vpop.f32.mrf.mxu0  ;;  %v11929_v49 = vsub.s32 4, %v11738_v46  ;;  %v10421_v26 = vld [vmem:[#allocation8 + $0x60c] ss:$24 sps:$4 sm:$0xff]  }
 0x244   :  { %v2381_v57 = vpop.f32.mrf.mxu1 }
 0x245   :  { %v11920_v62 = vadd.f32 %v2381_v57, %v2330_v34  ;;  %4559 = vmatpush1.bf16.msra.mxu0 %v10347_v5  ;;  %v2332_v35 = vpop.f32.mrf.mxu0 }
 0x246   :  { %v2383_v2 = vpop.f32.mrf.mxu1  ;;  %4560 = vmatprep.subr.bf16.mxu0 %v10352_v30 }
 0x247   :  { %v2333_v3 = vpop.f32.mrf.mxu0 }
 0x248   :  { %v2384_v37 = vpop.f32.mrf.mxu1 }
 0x249   :  { %4561 = vmatpush2.bf16.msra.mxu0 %v10350_v28  ;;  %v10419_v37 = vld [vmem:[#allocation8 + $0x608] ss:$24 sps:$4 sm:$0xff]  }
 0x24a   :  { %4562 = vmatprep.subr.bf16.mxu0 %v10355_v16 }
 0x24d   :  { %4563 = vmatpush2.bf16.msra.mxu0 %v10353_v39  ;;  %v10427_v39 = vld [vmem:[#allocation8 + $0x8dc] ss:$24 sps:$4 sm:$0xff]  }
 0x24e   :  { %4564 = vmatprep.subr.bf16.mxu0 %v10358_v8 }
 0x251   :  { %4565 = vmatpush2.bf16.msra.mxu0 %v10356_v42 }
 0x252   :  { %4566 = vmatprep.subr.bf16.mxu0 %v10361_v29 }
 0x255   :  { %4567 = vmatpush2.bf16.msra.mxu0 %v10359_v44 }
 0x256   :  { %4568 = vmatprep.subr.bf16.mxu0 %v10364_v45 }
 0x259   :  { %4569 = vmatpush2.bf16.msra.mxu0 %v10362_v47 }
 0x25a   :  { %4570 = vmatprep.subr.bf16.mxu0 %v10367_v50 }
 0x25d   :  { %4571 = vmatpush2.bf16.msra.mxu0 %v10365_v41 }
 0x25e   :  { %4572 = vmatprep.subr.bf16.mxu0 %v10370_v12  ;;  %v10425_v12 = vld [vmem:[#allocation8 + $0x8d8] ss:$24 sps:$4 sm:$0xff]  }
 0x261   :  { %4573 = vmatpush2.bf16.msra.mxu0 %v10368_v51  ;;  %v10433_v51 = vld [vmem:[#allocation8 + $0x8ac] ss:$24 sps:$4 sm:$0xff]  }
 0x262   :  { %4574 = vmatprep.subr.bf16.mxu0 %v10373_v48 }
 0x265   :  { %4575 = vmatpush2.bf16.msra.mxu0 %v10371_v53 }
 0x266   :  { %4646 = vmatprep.subr.bf16.mxu0 %v10379_v54 }
 0x268   :  { %4577 = vmatmul.mubr.bf16.vlgmr.msra.gmra.mxu0 %v11834_v15 }
 0x269   :  { %4586 = vmatprep.mubr.bf16.mxu0 %v11837_v21  ;;  %4647 = vmatpush1.bf16.msra.mxu0 %v10377_v10 }
 0x26a   :  { %4648 = vmatprep.subr.bf16.mxu0 %v10385_v56 }
 0x26d   :  { %4649 = vmatpush1.bf16.msra.mxu0 %v10383_v32 }
 0x26e   :  { %4650 = vmatprep.subr.bf16.mxu0 %v10391_v52 }
 0x270   :  { %4587 = vmatmul.mubr.bf16.gmra.mxu0 %v11841_v4 }
 0x271   :  { %4651 = vmatpush1.bf16.msra.mxu0 %v10389_v58 }
 0x272   :  { %4652 = vmatprep.subr.bf16.mxu0 %v10397_v19 }
 0x275   :  { %4653 = vmatpush1.bf16.msra.mxu0 %v10395_v61 }
 0x276   :  { %4654 = vmatprep.subr.bf16.mxu0 %v10403_v33  ;;  %v11308_v33 = vld [vmem:[#allocation7] sm:$0x3f] }
 0x279   :  { %4655 = vmatpush1.bf16.msra.mxu0 %v10401_v0  ;;  %v2420_v59 = vpop.f32.mrf.mxu0  ;;  %v2604_v0 = vrot.slane %v11308_v33, %v11929_v49 }
 0x27a   :  { %v2421_v17 = vadd.f32 %v2420_v59, %v11910_v63  ;;  %4656 = vmatprep.subr.bf16.mxu0 %v10409_v25  ;;  %v10431_v25 = vld [vmem:[#allocation8 + $0x8a8] ss:$24 sps:$4 sm:$0xff]  }
 0x27b   :  { %v2422_v36 = vpop.f32.mrf.mxu0 }
 0x27c   :  { %v2441_v27 = vmul.f32 %v11748_v20, %v2421_v17  ;;  %v2423_v5 = vadd.f32 %v2422_v36, %v11912_v6 }
 0x27d   :  { %4657 = vmatpush1.bf16.msra.mxu0 %v10407_v1  ;;  %v2424_v30 = vpop.f32.mrf.mxu0  ;;  %v10439_v1 = vld [vmem:[#allocation8 + $0x87c] ss:$24 sps:$4 sm:$0xff]  }
 0x27e   :  { %v2459_v34 = vrot.slane %v2441_v27, 7  ;;  %v2514_v57 = vrot.slane %v2441_v27, 1  ;;  %v11932_v28 = vmul.f32 %v11748_v20, %v2423_v5  ;;  %v2425_v63 = vadd.f32 %v2424_v30, %v11914_v18  ;;  %4658 = vmatprep.subr.bf16.mxu0 %v10415_v9 }
 0x27f   :  { %v2426_v35 = vpop.f32.mrf.mxu0 }
 0x280   :  { %v2460_v2 = vrot.slane %v11932_v28, 7  ;;  %v2515_v16 = vrot.slane %v11932_v28, 1  ;;  %v2447_v6 = vmul.f32 %v11754_v24, %v2425_v63  ;;  %v2427_v3 = vadd.f32 %v2426_v35, %v11916_v22 }
 0x281   :  { %4659 = vmatpush1.bf16.msra.mxu0 %v10413_v23  ;;  %v2430_v8 = vpop.f32.mrf.mxu0  ;;  %v11960_v63 = vsub.s32 5, %v11738_v46  ;;  %v11179_v46 = vld [vmem:[#allocation14 + $0xa8] sm:$0xff]  }
 0x282   :  { %v2465_v42 = vrot.slane %v2447_v6, 7  ;;  %v2520_v29 = vrot.slane %v2447_v6, 1  ;;  %v2448_v44 = vmul.f32 %v11754_v24, %v2427_v3  ;;  %v2431_v18 = vadd.f32 %v2430_v8, %v11918_v31  ;;  %4660 = vmatprep.subr.bf16.mxu0 %v10421_v26 }
 0x283   :  { %v2432_v45 = vpop.f32.mrf.mxu0 }
 0x284   :  { %v2484_v47 = vsel %vm2473_vm2, %v2459_v34, %v2465_v42  ;;  %v2539_v50 = vsel %vm2528_vm3, %v2514_v57, %v2520_v29  ;;  %v2466_v41 = vrot.slane %v2448_v44, 7  ;;  %v2521_v22 = vrot.slane %v2448_v44, 1 }
 0x285   :  { %v2502_v48 = vadd.f32 %v2484_v47, %v2447_v6  ;;  %v2453_v53 = vmul.f32 0.0, %v2431_v18  ;;  %4661 = vmatpush1.bf16.msra.mxu0 %v10419_v37  ;;  %v2433_v54 = vadd.f32 %v2432_v45, %v11920_v62  ;;  %v2434_v10 = vpop.f32.mrf.mxu0  ;;  %v10437_v37 = vld [vmem:[#allocation8 + $0x878] ss:$24 sps:$4 sm:$0xff]   ;;  %v10445_v18 = vld [vmem:[#allocation8 + $0x84c] ss:$24 sps:$4 sm:$0xff]  }
 0x286   :  { %v2485_v31 = vsel %vm2473_vm2, %v2460_v2, %v2466_v41  ;;  %v2540_v56 = vsel %vm2528_vm3, %v2515_v16, %v2521_v22  ;;  %4662 = vmatprep.subr.bf16.mxu0 %v10427_v39 }
 0x287   :  { %v2503_v32 = vadd.f32 %v2485_v31, %v2448_v44  ;;  %v2471_v52 = vrot.slane %v2453_v53, 7  ;;  %v2526_v58 = vrot.slane %v2453_v53, 1  ;;  %v2454_v19 = vmul.f32 0.0, %v2433_v54  ;;  %v2435_v61 = vpop.f32.mrf.mxu0  ;;  %v10449_v31 = vld [vmem:[#allocation8 + $0x818] ss:$24 sps:$4 sm:$0xff]  }
 0x289   :  { %v2478_v62 = vsel %vm2473_vm2, %v2465_v42, %v2471_v52  ;;  %v2490_v9 = vsel %vm2473_vm2, %v2471_v52, %v2459_v34  ;;  %v2533_v59 = vsel %vm2528_vm3, %v2520_v29, %v2526_v58  ;;  %v2545_v17 = vsel %vm2528_vm3, %v2526_v58, %v2514_v57  ;;  %4663 = vmatpush2.bf16.msra.mxu0 %v10425_v12  ;;  %v10443_v12 = vld [vmem:[#allocation8 + $0x848] ss:$24 sps:$4 sm:$0xff]   ;;  %v10463_v58 = vld [vmem:[#allocation8 + $0x7bc] ss:$24 sps:$4 sm:$0xff]  }
 0x28a   :  { %v2496_v36 = vadd.f32 %v2490_v9, %v2441_v27  ;;  %v2508_v23 = vadd.f32 %v2478_v62, %v2453_v53  ;;  %v2557_v5 = vadd.f32 %v2533_v59, %v2502_v48  ;;  %v2472_v26 = vrot.slane %v2454_v19, 7  ;;  %4664 = vmatprep.subr.bf16.mxu0 %v10433_v51  ;;  %v10451_v48 = vld [vmem:[#allocation8 + $0x81c] ss:$24 sps:$4 sm:$0xff]   ;;  %v10467_v62 = vld [vmem:[#allocation8 + $0x788] ss:$24 sps:$4 sm:$0xff]  }
 0x28b   :  { %v2527_v30 = vrot.slane %v2454_v19, 1 }
 0x28c   :  { %v2551_v35 = vadd.f32 %v2539_v50, %v2496_v36  ;;  %v2563_v6 = vadd.f32 %v2545_v17, %v2508_v23  ;;  %v2575_v34 = vmul.f32 %v11754_v24, %v2557_v5  ;;  %v2479_v3 = vsel %vm2473_vm2, %v2466_v41, %v2472_v26  ;;  %v10475_v17 = vld [vmem:[#allocation8 + $0x464] ss:$24 sps:$4 sm:$0xff]  }
 0x28d   :  { %v2491_v57 = vsel %vm2473_vm2, %v2472_v26, %v2460_v2  ;;  %v2509_v27 = vadd.f32 %v2479_v3, %v2454_v19  ;;  %v2534_v39 = vsel %vm2528_vm3, %v2521_v22, %v2527_v30  ;;  %v2546_v8 = vsel %vm2528_vm3, %v2527_v30, %v2515_v16  ;;  %4665 = vmatpush2.bf16.msra.mxu0 %v10431_v25  ;;  %v10461_v19 = vld [vmem:[#allocation8 + $0x7b8] ss:$24 sps:$4 sm:$0xff]   ;;  %v10478_v5 = vld [vmem:[#allocation8 + $0x42c] ss:$24 sps:$4 sm:$0xff]  }
 0x28e   :  { %v2569_v42 = vmul.f32 %v11748_v20, %v2551_v35  ;;  %v2625_v29 = vadd.f32 %v2604_v0, %v2575_v34  ;;  %v2497_v44 = vadd.f32 %v2491_v57, %v11932_v28  ;;  %4666 = vmatprep.subr.bf16.mxu0 %v10439_v1  ;;  %v2558_v45 = vadd.f32 %v2534_v39, %v2503_v32  ;;  %v10455_v32 = vld [vmem:[#allocation8 + $0x7e8] ss:$24 sps:$4 sm:$0xff]  }
 0x28f   :  { %v2564_v47 = vadd.f32 %v2546_v8, %v2509_v27  ;;  %v2608_v50 = vrot.slane %v11308_v33, %v11960_v63  ;;  %v2581_v10 = vmul.f32 0.0, %v2563_v6  ;;  %v10469_v33 = vld [vmem:[#allocation8 + $0x78c] ss:$24 sps:$4 sm:$0xff]   ;;  %v10473_v30 = vld [vmem:[#allocation8 + $0x460] ss:$24 sps:$4 sm:$0xff]  }
 0x290   :  { %v2619_v2 = vadd.f32 %v2604_v0, %v2569_v42  ;;  %v2552_v41 = vadd.f32 %v2540_v56, %v2497_v44  ;;  %11218 = vtanh.f32 %v2625_v29  ;;  %v2576_v22 = vmul.f32 %v11754_v24, %v2558_v45  ;;  %v10457_v56 = vld [vmem:[#allocation8 + $0x7ec] ss:$24 sps:$4 sm:$0xff]   ;;  %v10476_v34 = vld [vmem:[#allocation8 + $0x428] ss:$24 sps:$4 sm:$0xff]   ;;  %v10482_v42 = vld [vmem:[#allocation8 + $0x3f8] ss:$24 sps:$4 sm:$0xff]  }
 0x291   :  { %v2582_v51 = vmul.f32 0.0, %v2564_v47  ;;  %4667 = vmatpush2.bf16.msra.mxu0 %v10437_v37  ;;  %v2631_v52 = vadd.f32 %v2604_v0, %v2581_v10  ;;  %v10470_v0 = vld [vmem:[#allocation8 + $0x458] ss:$24 sps:$4 sm:$0xff]   ;;  %v10481_v6 = vld [vmem:[#allocation8 + $0x434] ss:$24 sps:$4 sm:$0xff]  }
 0x292   :  { %11220 = vtanh.f32 %v2619_v2  ;;  %v2570_v16 = vmul.f32 %v11748_v20, %v2552_v41  ;;  %4668 = vmatprep.subr.bf16.mxu0 %v10445_v18  ;;  %v2626_v28 = vadd.f32 %v2608_v50, %v2576_v22  ;;  %v10484_v37 = vld [vmem:[#allocation8 + $0x3fc] ss:$24 sps:$4 sm:$0xff]   ;;  %v10479_v27 = vld [vmem:[#allocation8 + $0x430] ss:$24 sps:$4 sm:$0xff]   ;;  %v10490_v18 = vld [vmem:[#allocation8 + $0x3cc] ss:$24 sps:$4 sm:$0xff]  }
 0x293   :  { %v2632_v53 = vadd.f32 %v2608_v50, %v2582_v51  ;;  %v10487_v8 = vld [vmem:[#allocation8 + $0x404] ss:$24 sps:$4 sm:$0xff]   ;;  %v10485_v45 = vld [vmem:[#allocation8 + $0x400] ss:$24 sps:$4 sm:$0xff]   ;;  %v10491_v22 = vld [vmem:[#allocation8 + $0x3d0] ss:$24 sps:$4 sm:$0xff]  }
 0x294   :  { %v2620_v54 = vadd.f32 %v2608_v50, %v2570_v16  ;;  %11222 = vtanh.f32 %v2626_v28  ;;  %v10493_v50 = vld [vmem:[#allocation8 + $0x3d4] ss:$24 sps:$4 sm:$0xff]   ;;  %v10488_v2 = vld [vmem:[#allocation8 + $0x3c8] ss:$24 sps:$4 sm:$0xff]   ;;  %v10499_v16 = vld [vmem:[#allocation8 + $0x3a4] ss:$24 sps:$4 sm:$0xff]  }
 0x295   :  { %4669 = vmatpush2.bf16.msra.mxu0 %v10443_v12  ;;  %v10496_v12 = vld [vmem:[#allocation8 + $0x39c] ss:$24 sps:$4 sm:$0xff]  }
 0x296   :  { %11224 = vtanh.f32 %v2620_v54  ;;  %4670 = vmatprep.subr.bf16.mxu0 %v10451_v48  ;;  %v10494_v48 = vld [vmem:[#allocation8 + $0x398] ss:$24 sps:$4 sm:$0xff]   ;;  %v10505_v10 = vld [vmem:[#allocation8 + $0x374] ss:$24 sps:$4 sm:$0xff]  }
 0x297   :  { %11226 = vtanh.f32 %v2632_v53  ;;  %v10502_v53 = vld [vmem:[#allocation8 + $0x36c] ss:$24 sps:$4 sm:$0xff]   ;;  %v10497_v54 = vld [vmem:[#allocation8 + $0x3a0] ss:$24 sps:$4 sm:$0xff]  }
 0x298   :  { %11228 = vtanh.f32 %v2631_v52  ;;  %v10506_v52 = vld [vmem:[#allocation8 + $0x338] ss:$24 sps:$4 sm:$0xff]  }
 0x299   :  { %4671 = vmatpush2.bf16.msra.mxu0 %v10449_v31  ;;  %v10500_v31 = vld [vmem:[#allocation8 + $0x368] ss:$24 sps:$4 sm:$0xff]  }
 0x29a   :  { %4672 = vmatprep.subr.bf16.mxu0 %v10457_v56  ;;  %v10508_v56 = vld [vmem:[#allocation8 + $0x33c] ss:$24 sps:$4 sm:$0xff]  }
 0x29d   :  { %4673 = vmatpush2.bf16.msra.mxu0 %v10455_v32  ;;  %v11219_v61 = vpop.eup %11218  ;;  %v10503_v32 = vld [vmem:[#allocation8 + $0x370] ss:$24 sps:$4 sm:$0xff]  }
 0x29e   :  { %4674 = vmatprep.subr.bf16.mxu0 %v10463_v58  ;;  %v10514_v58 = vld [vmem:[#allocation8 + $0x30c] ss:$24 sps:$4 sm:$0xff]  }
 0x29f   :  { %v11221_v25 = vpop.eup %11220 }
 0x2a0   :  { %v11976_v1 = vpack.c.bf16 %v11219_v61, %v11221_v25  ;;  %v10517_v61 = vld [vmem:[#allocation8 + $0x314] ss:$24 sps:$4 sm:$0xff]  }
 0x2a1   :  { %4675 = vmatpush2.bf16.msra.mxu0 %v10461_v19  ;;  %v11223_v9 = vpop.eup %11222  ;;  %v10509_v19 = vld [vmem:[#allocation8 + $0x340] ss:$24 sps:$4 sm:$0xff]   ;;  %v10520_v25 = vld [vmem:[#allocation8 + $0x5dc] ss:$24 sps:$4 sm:$0xff]  }
 0x2a2   :  { %4676 = vmatprep.subr.bf16.mxu0 %v10469_v33  ;;  %v10512_v33 = vld [vmem:[#allocation8 + $0x308] ss:$24 sps:$4 sm:$0xff]  }
 0x2a3   :  { %v11225_v59 = vpop.eup %11224 }
 0x2a4   :  { %v11227_v36 = vpop.eup %11226  ;;  %v11978_v23 = vpack.c.bf16 %v11223_v9, %v11225_v59  ;;  %v10523_v9 = vld [vmem:[#allocation8 + $0x5e4] ss:$24 sps:$4 sm:$0xff]   ;;  %v10518_v59 = vld [vmem:[#allocation8 + $0x5d8] ss:$24 sps:$4 sm:$0xff]  }
 0x2a5   :  { %4677 = vmatpush2.bf16.msra.mxu0 %v10467_v62  ;;  %v11982_v26 = vpack.c.bf16 %v11227_v36, %v11227_v36  ;;  %v11984_v35 = vpop.f32.mrf.mxu1  ;;  %v11229_v57 = vpop.eup %11228  ;;  %v10515_v62 = vld [vmem:[#allocation8 + $0x310] ss:$24 sps:$4 sm:$0xff]   ;;  %v10521_v36 = vld [vmem:[#allocation8 + $0x5e0] ss:$24 sps:$4 sm:$0xff]  }
 0x2a6   :  { %4525 = vmatprep.mubr.bf16.mxu1 %v11978_v23  ;;  %4678 = vmatprep.mubr.bf16.mxu0 %v11978_v23  ;;  %v11996_v44 = vpack.c.bf16 %v11229_v57, %v11229_v57  ;;  %v10538_v57 = vld [vmem:[#allocation8 + $0x54c] ss:$24 sps:$4 sm:$0xff]  }
 0x2a7   :  { %4526 = vmatmul.mubr.bf16.vlgmr.msra.gmra.mxu1 %v11976_v1  ;;  %4748 = vmatprep.subr.bf16.mxu0 %v10475_v17  ;;  %v11989_v3 = vpop.f32.mrf.mxu1  ;;  %v10526_v17 = vld [vmem:[#allocation8 + $0x5ac] ss:$24 sps:$4 sm:$0xff]  }
 0x2a8   :  { %4596 = vmatpush1.bf16.msra.mxu1 %v10470_v0  ;;  %4535 = vmatprep.mubr.bf16.mxu1 %v11982_v26  ;;  %v10529_v0 = vld [vmem:[#allocation8 + $0x5b4] ss:$24 sps:$4 sm:$0xff]  }
 0x2a9   :  { %4679 = vmatmul.mubr.bf16.vlgmr.msra.gmra.mxu0 %v11976_v1  ;;  %4597 = vmatprep.subr.bf16.mxu1 %v10478_v5  ;;  %v11992_v39 = vpop.f32.mrf.mxu1  ;;  %v10524_v5 = vld [vmem:[#allocation8 + $0x5a8] ss:$24 sps:$4 sm:$0xff]  }
 0x2aa   :  { %4688 = vmatprep.mubr.bf16.mxu0 %v11982_v26  ;;  %4749 = vmatpush1.bf16.msra.mxu0 %v10473_v30  ;;  %v10532_v30 = vld [vmem:[#allocation8 + $0x57c] ss:$24 sps:$4 sm:$0xff]  }
 0x2ab   :  { %4750 = vmatprep.subr.bf16.mxu0 %v10481_v6  ;;  %v11994_v29 = vpop.f32.mrf.mxu1  ;;  %v10527_v6 = vld [vmem:[#allocation8 + $0x5b0] ss:$24 sps:$4 sm:$0xff]  }
 0x2ac   :  { %4598 = vmatpush1.bf16.msra.mxu1 %v10476_v34  ;;  %v10535_v34 = vld [vmem:[#allocation8 + $0x584] ss:$24 sps:$4 sm:$0xff]  }
 0x2ad   :  { %4599 = vmatprep.subr.bf16.mxu1 %v10484_v37  ;;  %v11998_v47 = vpop.f32.mrf.mxu1  ;;  %v10530_v37 = vld [vmem:[#allocation8 + $0x578] ss:$24 sps:$4 sm:$0xff]  }
 0x2ae   :  { %4751 = vmatpush1.bf16.msra.mxu0 %v10479_v27  ;;  %v10533_v27 = vld [vmem:[#allocation8 + $0x580] ss:$24 sps:$4 sm:$0xff]  }
 0x2af   :  { %4536 = vmatmul.mubr.bf16.gmra.mxu1 %v11996_v44  ;;  %4752 = vmatprep.subr.bf16.mxu0 %v10487_v8  ;;  %v12003_v41 = vpop.f32.mrf.mxu1  ;;  %v10541_v8 = vld [vmem:[#allocation8 + $0x554] ss:$24 sps:$4 sm:$0xff]  }
 0x2b0   :  { %4600 = vmatpush1.bf16.msra.mxu1 %v10482_v42  ;;  %4627 = vmatprep.mubr.bf16.mxu1 %v11899_v40  ;;  %v10536_v42 = vld [vmem:[#allocation8 + $0x548] ss:$24 sps:$4 sm:$0xff]  }
 0x2b1   :  { %4689 = vmatmul.mubr.bf16.gmra.mxu0 %v11996_v44  ;;  %4601 = vmatprep.subr.bf16.mxu1 %v10490_v18  ;;  %v4439_v51 = vpop.f32.mrf.mxu1  ;;  %v10544_v18 = vld [vmem:[#allocation8 + $0x51c] ss:$24 sps:$4 sm:$0xff]  }
 0x2b2   :  { %4753 = vmatpush1.bf16.msra.mxu0 %v10485_v45  ;;  %4780 = vmatprep.mubr.bf16.mxu0 %v11899_v40  ;;  %v10511_v40 = vld [vmem:[#allocation8 + $0x344] ss:$24 sps:$4 sm:$0xff]   ;;  %v10539_v45 = vld [vmem:[#allocation8 + $0x550] ss:$24 sps:$4 sm:$0xff]   ;;  %v10553_v51 = vld [vmem:[#allocation8 + $0x4f4] ss:$24 sps:$4 sm:$0xff]  }
 0x2b3   :  { %4754 = vmatprep.subr.bf16.mxu0 %v10493_v50  ;;  %v4440_v28 = vpop.f32.mrf.mxu1  ;;  %v10547_v50 = vld [vmem:[#allocation8 + $0x524] ss:$24 sps:$4 sm:$0xff]  }
 0x2b4   :  { %4602 = vmatpush1.bf16.msra.mxu1 %v10488_v2  ;;  %v10542_v2 = vld [vmem:[#allocation8 + $0x518] ss:$24 sps:$4 sm:$0xff]  }
 0x2b5   :  { %4603 = vmatprep.subr.bf16.mxu1 %v10496_v12  ;;  %v10550_v12 = vld [vmem:[#allocation8 + $0x4ec] ss:$24 sps:$4 sm:$0xff]   ;;  %v10551_v28 = vld [vmem:[#allocation8 + $0x4f0] ss:$24 sps:$4 sm:$0xff]  }
 0x2b6   :  { %4755 = vmatpush1.bf16.msra.mxu0 %v10491_v22  ;;  %v10545_v22 = vld [vmem:[#allocation8 + $0x520] ss:$24 sps:$4 sm:$0xff]  }
 0x2b7   :  { %4756 = vmatprep.subr.bf16.mxu0 %v10499_v16  ;;  %v10548_v16 = vld [vmem:[#allocation8 + $0x4e8] ss:$24 sps:$4 sm:$0xff]  }
 0x2b8   :  { %4604 = vmatpush1.bf16.msra.mxu1 %v10494_v48  ;;  %v10556_v48 = vld [vmem:[#allocation8 + $0x4bc] ss:$24 sps:$4 sm:$0xff]  }
 0x2b9   :  { %4605 = vmatprep.subr.bf16.mxu1 %v10502_v53  ;;  %v10559_v53 = vld [vmem:[#allocation8 + $0x4c4] ss:$24 sps:$4 sm:$0xff]  }
 0x2ba   :  { %4757 = vmatpush1.bf16.msra.mxu0 %v10497_v54  ;;  %v10554_v54 = vld [vmem:[#allocation8 + $0x4b8] ss:$24 sps:$4 sm:$0xff]  }
 0x2bb   :  { %4758 = vmatprep.subr.bf16.mxu0 %v10505_v10  ;;  %v10562_v10 = vld [vmem:[#allocation8 + $0x48c] ss:$24 sps:$4 sm:$0xff]  }
 0x2bc   :  { %4606 = vmatpush1.bf16.msra.mxu1 %v10500_v31  ;;  %v10557_v31 = vld [vmem:[#allocation8 + $0x4c0] ss:$24 sps:$4 sm:$0xff]  }
 0x2bd   :  { %4607 = vmatprep.subr.bf16.mxu1 %v10508_v56  ;;  %v10565_v56 = vld [vmem:[#allocation8 + $0x494] ss:$24 sps:$4 sm:$0xff]  }
 0x2be   :  { %4759 = vmatpush1.bf16.msra.mxu0 %v10503_v32  ;;  %v10560_v32 = vld [vmem:[#allocation8 + $0x488] ss:$24 sps:$4 sm:$0xff]  }
 0x2bf   :  { %4760 = vmatprep.subr.bf16.mxu0 %v10511_v40  ;;  %v10568_v40 = vld [vmem:[#allocation8 + $0x164] ss:$24 sps:$4 sm:$0xff]  }
 0x2c0   :  { %4608 = vmatpush1.bf16.msra.mxu1 %v10506_v52  ;;  %v10563_v52 = vld [vmem:[#allocation8 + $0x490] ss:$24 sps:$4 sm:$0xff]  }
 0x2c1   :  { %4609 = vmatprep.subr.bf16.mxu1 %v10514_v58  ;;  %v10652_v58 = vld [vmem:[#allocation11 + $0x154] ss:$24 sps:$4 sm:$0xff]  }
 0x2c2   :  { %4761 = vmatpush1.bf16.msra.mxu0 %v10509_v19  ;;  %v10566_v19 = vld [vmem:[#allocation8 + $0x160] ss:$24 sps:$4 sm:$0xff]  }
 0x2c3   :  { %4762 = vmatprep.subr.bf16.mxu0 %v10517_v61  ;;  %v10571_v61 = vld [vmem:[#allocation8 + $0x134] ss:$24 sps:$4 sm:$0xff]  }
 0x2c4   :  { %4610 = vmatpush1.bf16.msra.mxu1 %v10512_v33  ;;  %v10650_v33 = vld [vmem:[#allocation11 + $0x150] ss:$24 sps:$4 sm:$0xff]  }
 0x2c5   :  { %4611 = vmatprep.subr.bf16.mxu1 %v10520_v25  ;;  %v10658_v25 = vld [vmem:[#allocation11 + $0x124] ss:$24 sps:$4 sm:$0xff]  }
 0x2c6   :  { %4763 = vmatpush1.bf16.msra.mxu0 %v10515_v62 }
 0x2c7   :  { %4764 = vmatprep.subr.bf16.mxu0 %v10523_v9  ;;  %v10569_v9 = vld [vmem:[#allocation8 + $0x130] ss:$24 sps:$4 sm:$0xff]  }
 0x2c8   :  { %4612 = vmatpush2.bf16.msra.mxu1 %v10518_v59 }
 0x2c9   :  { %4613 = vmatprep.subr.bf16.mxu1 %v10526_v17  ;;  %v10574_v17 = vld [vmem:[#allocation8 + $0x104] ss:$24 sps:$4 sm:$0xff]  }
 0x2ca   :  { %4765 = vmatpush2.bf16.msra.mxu0 %v10521_v36 }
 0x2cb   :  { %4766 = vmatprep.subr.bf16.mxu0 %v10529_v0  ;;  %v10656_v0 = vld [vmem:[#allocation11 + $0x120] ss:$24 sps:$4 sm:$0xff]  }
 0x2cc   :  { %4614 = vmatpush2.bf16.msra.mxu1 %v10524_v5 }
 0x2cd   :  { %4615 = vmatprep.subr.bf16.mxu1 %v10532_v30  ;;  %v10664_v30 = vld [vmem:[#allocation11 + $0xf4] ss:$24 sps:$4 sm:$0xff]  }
 0x2ce   :  { %4767 = vmatpush2.bf16.msra.mxu0 %v10527_v6 }
 0x2cf   :  { %4768 = vmatprep.subr.bf16.mxu0 %v10535_v34  ;;  %v10572_v34 = vld [vmem:[#allocation8 + $0x100] ss:$24 sps:$4 sm:$0xff]  }
 0x2d0   :  { %4616 = vmatpush2.bf16.msra.mxu1 %v10530_v37 }
 0x2d1   :  { %4617 = vmatprep.subr.bf16.mxu1 %v10538_v57  ;;  %v10662_v57 = vld [vmem:[#allocation11 + $0xf0] ss:$24 sps:$4 sm:$0xff]  }
 0x2d2   :  { %4769 = vmatpush2.bf16.msra.mxu0 %v10533_v27 }
 0x2d3   :  { %4770 = vmatprep.subr.bf16.mxu0 %v10541_v8  ;;  %v10575_v8 = vld [vmem:[#allocation8 + $0xd0] ss:$24 sps:$4 sm:$0xff]  }
 0x2d4   :  { %4618 = vmatpush2.bf16.msra.mxu1 %v10536_v42  ;;  %v10580_v42 = vld [vmem:[#allocation8 + $0xa4] ss:$24 sps:$4 sm:$0xff]  }
 0x2d5   :  { %4619 = vmatprep.subr.bf16.mxu1 %v10544_v18 }
 0x2d6   :  { %4771 = vmatpush2.bf16.msra.mxu0 %v10539_v45  ;;  %v10668_v45 = vld [vmem:[#allocation11 + $0xc0] ss:$24 sps:$4 sm:$0xff]  }
 0x2d7   :  { %4772 = vmatprep.subr.bf16.mxu0 %v10547_v50  ;;  %v10676_v50 = vld [vmem:[#allocation11 + $0x94] ss:$24 sps:$4 sm:$0xff]  }
 0x2d8   :  { %4620 = vmatpush2.bf16.msra.mxu1 %v10542_v2 }
 0x2d9   :  { %4621 = vmatprep.subr.bf16.mxu1 %v10550_v12  ;;  %v10583_v12 = vld [vmem:[#allocation8 + $0x74] ss:$24 sps:$4 sm:$0xff]  }
 0x2da   :  { %4773 = vmatpush2.bf16.msra.mxu0 %v10545_v22 }
 0x2db   :  { %4774 = vmatprep.subr.bf16.mxu0 %v10553_v51  ;;  %v10581_v51 = vld [vmem:[#allocation8 + $0x70] ss:$24 sps:$4 sm:$0xff]  }
 0x2dc   :  { %4622 = vmatpush2.bf16.msra.mxu1 %v10548_v16  ;;  %v10586_v16 = vld [vmem:[#allocation8 + $0x44] ss:$24 sps:$4 sm:$0xff]  }
 0x2dd   :  { %4623 = vmatprep.subr.bf16.mxu1 %v10556_v48  ;;  %v10677_v48 = vld [vmem:[#allocation11 + $0x60] ss:$24 sps:$4 sm:$0xff]  }
 0x2de   :  { %4775 = vmatpush2.bf16.msra.mxu0 %v10551_v28  ;;  %v10584_v28 = vld [vmem:[#allocation8 + $0x40] ss:$24 sps:$4 sm:$0xff]  }
 0x2df   :  { %4776 = vmatprep.subr.bf16.mxu0 %v10559_v53  ;;  %v10589_v53 = vld [vmem:[#allocation8 + $0x14] ss:$24 sps:$4 sm:$0xff]  }
 0x2e0   :  { %4624 = vmatpush2.bf16.msra.mxu1 %v10554_v54  ;;  %v10680_v54 = vld [vmem:[#allocation11 + $0x30] ss:$24 sps:$4 sm:$0xff]  }
 0x2e1   :  { %4625 = vmatprep.subr.bf16.mxu1 %v10562_v10  ;;  %v10685_v10 = vld [vmem:[#allocation11 + $0x4] ss:$24 sps:$4 sm:$0xff]  }
 0x2e2   :  { %4777 = vmatpush2.bf16.msra.mxu0 %v10557_v31  ;;  %v10587_v31 = vld [vmem:[#allocation8 + $0x10] ss:$24 sps:$4 sm:$0xff]  }
 0x2e3   :  { %4778 = vmatprep.subr.bf16.mxu0 %v10565_v56  ;;  %v10592_v56 = vld [vmem:[#allocation8 + $0x2e4] ss:$24 sps:$4 sm:$0xff]  }
 0x2e4   :  { %4626 = vmatpush2.bf16.msra.mxu1 %v10560_v32  ;;  %v10683_v32 = vld [vmem:[#allocation11] ss:$24 sps:$4 sm:$0xff]  }
 0x2e5   :  { %4697 = vmatprep.subr.bf16.mxu1 %v10568_v40  ;;  %v10688_v40 = vld [vmem:[#allocation11 + $0x2d4] ss:$24 sps:$4 sm:$0xff]  }
 0x2e6   :  { %4779 = vmatpush2.bf16.msra.mxu0 %v10563_v52  ;;  %v10590_v52 = vld [vmem:[#allocation8 + $0x2e0] ss:$24 sps:$4 sm:$0xff]  }
 0x2e7   :  { %4628 = vmatmul.mubr.bf16.vlgmr.msra.gmra.mxu1 %v11897_v11  ;;  %6802 = vmatprep.subr.bf16.mxu0 %v10652_v58  ;;  %v10595_v58 = vld [vmem:[#allocation8 + $0x2b4] ss:$24 sps:$4 sm:$0xff]  }
 0x2e8   :  { %4637 = vmatprep.mubr.bf16.mxu1 %v11902_v13  ;;  %4698 = vmatpush1.bf16.msra.mxu1 %v10566_v19  ;;  %v4476_v62 = vpop.f32.mrf.mxu0  ;;  %v10686_v19 = vld [vmem:[#allocation11 + $0x2d0] ss:$24 sps:$4 sm:$0xff]  }
 0x2e9   :  { %4781 = vmatmul.mubr.bf16.vlgmr.msra.gmra.mxu0 %v11897_v11  ;;  %v12010_v59 = vadd.f32 %v4476_v62, %v11984_v35  ;;  %4699 = vmatprep.subr.bf16.mxu1 %v10571_v61  ;;  %v10577_v35 = vld [vmem:[#allocation8 + $0xd4] ss:$24 sps:$4 sm:$0xff]   ;;  %v10689_v62 = vld [vmem:[#allocation11 + $0x2a0] ss:$24 sps:$4 sm:$0xff]  }
 0x2ea   :  { %4790 = vmatprep.mubr.bf16.mxu0 %v11902_v13  ;;  %v4478_v36 = vpop.f32.mrf.mxu0  ;;  %6803 = vmatpush1.bf16.msra.mxu0 %v10650_v33  ;;  %v10691_v61 = vld [vmem:[#allocation11 + $0x2a4] ss:$24 sps:$4 sm:$0xff]  }
 0x2eb   :  { %v12014_v5 = vadd.f32 %v4478_v36, %v11989_v3  ;;  %6804 = vmatprep.subr.bf16.mxu0 %v10658_v25  ;;  %v10670_v3 = vld [vmem:[#allocation11 + $0xc4] ss:$24 sps:$4 sm:$0xff]  }
 0x2ec   :  { %4700 = vmatpush1.bf16.msra.mxu1 %v10569_v9  ;;  %v4480_v6 = vpop.f32.mrf.mxu0  ;;  %v10593_v33 = vld [vmem:[#allocation8 + $0x2b0] ss:$24 sps:$4 sm:$0xff]   ;;  %v10598_v25 = vld [vmem:[#allocation8 + $0x284] ss:$24 sps:$4 sm:$0xff]   ;;  %v10601_v36 = vld [vmem:[#allocation8 + $0x254] ss:$24 sps:$4 sm:$0xff]  }
 0x2ed   :  { %v12017_v11 = vadd.f32 %v4480_v6, %v11992_v39  ;;  %4701 = vmatprep.subr.bf16.mxu1 %v10574_v17  ;;  %v10694_v9 = vld [vmem:[#allocation11 + $0x274] ss:$24 sps:$4 sm:$0xff]  }
 0x2ee   :  { %v4482_v37 = vpop.f32.mrf.mxu0  ;;  %6805 = vmatpush1.bf16.msra.mxu0 %v10656_v0  ;;  %v10596_v17 = vld [vmem:[#allocation8 + $0x280] ss:$24 sps:$4 sm:$0xff]   ;;  %v10599_v6 = vld [vmem:[#allocation8 + $0x250] ss:$24 sps:$4 sm:$0xff]  }
 0x2ef   :  { %4638 = vmatmul.mubr.bf16.gmra.mxu1 %v11906_v55  ;;  %v12021_v13 = vadd.f32 %v4482_v37, %v11994_v29  ;;  %6806 = vmatprep.subr.bf16.mxu0 %v10664_v30  ;;  %v10692_v0 = vld [vmem:[#allocation11 + $0x270] ss:$24 sps:$4 sm:$0xff]   ;;  %v10697_v30 = vld [vmem:[#allocation11 + $0x244] ss:$24 sps:$4 sm:$0xff]   ;;  %v10700_v37 = vld [vmem:[#allocation11 + $0x214] ss:$24 sps:$4 sm:$0xff]  }
 0x2f0   :  { %4702 = vmatpush1.bf16.msra.mxu1 %v10572_v34  ;;  %4729 = vmatprep.mubr.bf16.mxu1 %v11832_v14  ;;  %v4486_v27 = vpop.f32.mrf.mxu0  ;;  %v10578_v14 = vld [vmem:[#allocation8 + $0xa0] ss:$24 sps:$4 sm:$0xff]   ;;  %v10604_v34 = vld [vmem:[#allocation8 + $0x224] ss:$24 sps:$4 sm:$0xff]  }
 0x2f1   :  { %4791 = vmatmul.mubr.bf16.gmra.mxu0 %v11906_v55  ;;  %v12026_v39 = vadd.f32 %v4486_v27, %v11998_v47  ;;  %4703 = vmatprep.subr.bf16.mxu1 %v10577_v35  ;;  %v10674_v55 = vld [vmem:[#allocation11 + $0x90] ss:$24 sps:$4 sm:$0xff]   ;;  %v10679_v47 = vld [vmem:[#allocation11 + $0x64] ss:$24 sps:$4 sm:$0xff]   ;;  %v10695_v35 = vld [vmem:[#allocation11 + $0x240] ss:$24 sps:$4 sm:$0xff]  }
 0x2f2   :  { %v4488_v18 = vpop.f32.mrf.mxu0  ;;  %6807 = vmatpush1.bf16.msra.mxu0 %v10662_v57  ;;  %v10602_v57 = vld [vmem:[#allocation8 + $0x220] ss:$24 sps:$4 sm:$0xff]  }
 0x2f3   :  { %v12029_v29 = vadd.f32 %v4488_v18, %v12003_v41  ;;  %6808 = vmatprep.subr.bf16.mxu0 %v10670_v3  ;;  %v10682_v41 = vld [vmem:[#allocation11 + $0x34] ss:$24 sps:$4 sm:$0xff]   ;;  %v10698_v27 = vld [vmem:[#allocation11 + $0x210] ss:$24 sps:$4 sm:$0xff]  }
 0x2f4   :  { %4704 = vmatpush1.bf16.msra.mxu1 %v10575_v8  ;;  %v4490_v2 = vpop.f32.mrf.mxu0  ;;  %v10607_v3 = vld [vmem:[#allocation8 + $0x1f4] ss:$24 sps:$4 sm:$0xff]   ;;  %v10610_v18 = vld [vmem:[#allocation8 + $0x1c4] ss:$24 sps:$4 sm:$0xff]  }
 0x2f5   :  { %4705 = vmatprep.subr.bf16.mxu1 %v10580_v42  ;;  %v10703_v8 = vld [vmem:[#allocation11 + $0x1e4] ss:$24 sps:$4 sm:$0xff]  }
 0x2f6   :  { %v4491_v22 = vpop.f32.mrf.mxu0  ;;  %6809 = vmatpush1.bf16.msra.mxu0 %v10668_v45  ;;  %v10605_v42 = vld [vmem:[#allocation8 + $0x1f0] ss:$24 sps:$4 sm:$0xff]   ;;  %v10608_v2 = vld [vmem:[#allocation8 + $0x1c0] ss:$24 sps:$4 sm:$0xff]  }
 0x2f7   :  { %6810 = vmatprep.subr.bf16.mxu0 %v10676_v50  ;;  %v10701_v45 = vld [vmem:[#allocation11 + $0x1e0] ss:$24 sps:$4 sm:$0xff]   ;;  %v10706_v50 = vld [vmem:[#allocation11 + $0x1b4] ss:$24 sps:$4 sm:$0xff]   ;;  %v10709_v22 = vld [vmem:[#allocation11 + $0x184] ss:$24 sps:$4 sm:$0xff]  }
 0x2f8   :  { %4706 = vmatpush1.bf16.msra.mxu1 %v10578_v14  ;;  %v10613_v14 = vld [vmem:[#allocation8 + $0x194] ss:$24 sps:$4 sm:$0xff]  }
 0x2f9   :  { %4707 = vmatprep.subr.bf16.mxu1 %v10583_v12  ;;  %v10704_v12 = vld [vmem:[#allocation11 + $0x1b0] ss:$24 sps:$4 sm:$0xff]  }
 0x2fa   :  { %6811 = vmatpush1.bf16.msra.mxu0 %v10674_v55  ;;  %v10611_v55 = vld [vmem:[#allocation8 + $0x190] ss:$24 sps:$4 sm:$0xff]  }
 0x2fb   :  { %6812 = vmatprep.subr.bf16.mxu0 %v10679_v47  ;;  %v10616_v47 = vld [vmem:[#allocation8 + $0x764] ss:$24 sps:$4 sm:$0xff]  }
 0x2fc   :  { %4708 = vmatpush1.bf16.msra.mxu1 %v10581_v51  ;;  %v10707_v51 = vld [vmem:[#allocation11 + $0x180] ss:$24 sps:$4 sm:$0xff]  }
 0x2fd   :  { %4709 = vmatprep.subr.bf16.mxu1 %v10586_v16  ;;  %v10614_v16 = vld [vmem:[#allocation8 + $0x760] ss:$24 sps:$4 sm:$0xff]  }
 0x2fe   :  { %6813 = vmatpush1.bf16.msra.mxu0 %v10677_v48  ;;  %v10619_v48 = vld [vmem:[#allocation8 + $0x734] ss:$24 sps:$4 sm:$0xff]  }
 0x2ff   :  { %6814 = vmatprep.subr.bf16.mxu0 %v10682_v41 }
 0x300   :  { %4710 = vmatpush1.bf16.msra.mxu1 %v10584_v28  ;;  %v10617_v28 = vld [vmem:[#allocation8 + $0x730] ss:$24 sps:$4 sm:$0xff]  }
 0x301   :  { %4711 = vmatprep.subr.bf16.mxu1 %v10589_v53  ;;  %v10622_v53 = vld [vmem:[#allocation8 + $0x704] ss:$24 sps:$4 sm:$0xff]  }
 0x302   :  { %6815 = vmatpush1.bf16.msra.mxu0 %v10680_v54 }
 0x303   :  { %6816 = vmatprep.subr.bf16.mxu0 %v10685_v10 }
 0x304   :  { %4712 = vmatpush1.bf16.msra.mxu1 %v10587_v31  ;;  %v10620_v31 = vld [vmem:[#allocation8 + $0x700] ss:$24 sps:$4 sm:$0xff]  }
 0x305   :  { %4713 = vmatprep.subr.bf16.mxu1 %v10592_v56  ;;  %v10625_v56 = vld [vmem:[#allocation8 + $0x6d4] ss:$24 sps:$4 sm:$0xff]  }
 0x306   :  { %6817 = vmatpush1.bf16.msra.mxu0 %v10683_v32 }
 0x307   :  { %6818 = vmatprep.subr.bf16.mxu0 %v10688_v40  ;;  %v10628_v40 = vld [vmem:[#allocation8 + $0x6a4] ss:$24 sps:$4 sm:$0xff]  }
 0x308   :  { %4714 = vmatpush2.bf16.msra.mxu1 %v10590_v52 }
 0x309   :  { %4715 = vmatprep.subr.bf16.mxu1 %v10595_v58 }
 0x30a   :  { %6819 = vmatpush2.bf16.msra.mxu0 %v10686_v19  ;;  %v10626_v19 = vld [vmem:[#allocation8 + $0x6a0] ss:$24 sps:$4 sm:$0xff]  }
 0x30b   :  { %6820 = vmatprep.subr.bf16.mxu0 %v10691_v61  ;;  %v10631_v61 = vld [vmem:[#allocation8 + $0x674] ss:$24 sps:$4 sm:$0xff]  }
 0x30c   :  { %4716 = vmatpush2.bf16.msra.mxu1 %v10593_v33 }
 0x30d   :  { %4717 = vmatprep.subr.bf16.mxu1 %v10598_v25  ;;  %v10629_v25 = vld [vmem:[#allocation8 + $0x670] ss:$24 sps:$4 sm:$0xff]  }
 0x30e   :  { %6821 = vmatpush2.bf16.msra.mxu0 %v10689_v62  ;;  %v10632_v62 = vld [vmem:[#allocation8 + $0x640] ss:$24 sps:$4 sm:$0xff]  }
 0x30f   :  { %6822 = vmatprep.subr.bf16.mxu0 %v10694_v9  ;;  %v10635_v9 = vld [vmem:[#allocation8 + $0x610] ss:$24 sps:$4 sm:$0xff]  }
 0x310   :  { %4718 = vmatpush2.bf16.msra.mxu1 %v10596_v17  ;;  %v10640_v17 = vld [vmem:[#allocation8 + $0x8e4] ss:$24 sps:$4 sm:$0xff]  }
 0x311   :  { %4719 = vmatprep.subr.bf16.mxu1 %v10601_v36  ;;  %v10638_v36 = vld [vmem:[#allocation8 + $0x8e0] ss:$24 sps:$4 sm:$0xff]  }
 0x312   :  { %6823 = vmatpush2.bf16.msra.mxu0 %v10692_v0  ;;  %v10643_v0 = vld [vmem:[#allocation8 + $0x8b4] ss:$24 sps:$4 sm:$0xff]  }
 0x313   :  { %6824 = vmatprep.subr.bf16.mxu0 %v10697_v30  ;;  %v10641_v30 = vld [vmem:[#allocation8 + $0x8b0] ss:$24 sps:$4 sm:$0xff]  }
 0x314   :  { %4720 = vmatpush2.bf16.msra.mxu1 %v10599_v6  ;;  %v10646_v6 = vld [vmem:[#allocation8 + $0x884] ss:$24 sps:$4 sm:$0xff]  }
 0x315   :  { %4721 = vmatprep.subr.bf16.mxu1 %v10604_v34  ;;  %v10644_v34 = vld [vmem:[#allocation8 + $0x880] ss:$24 sps:$4 sm:$0xff]  }
 0x316   :  { %6825 = vmatpush2.bf16.msra.mxu0 %v10695_v35  ;;  %v10649_v35 = vld [vmem:[#allocation8 + $0x854] ss:$24 sps:$4 sm:$0xff]  }
 0x317   :  { %6826 = vmatprep.subr.bf16.mxu0 %v10700_v37  ;;  %v10647_v37 = vld [vmem:[#allocation8 + $0x850] ss:$24 sps:$4 sm:$0xff]  }
 0x318   :  { %4722 = vmatpush2.bf16.msra.mxu1 %v10602_v57  ;;  %v10655_v57 = vld [vmem:[#allocation8 + $0x824] ss:$24 sps:$4 sm:$0xff]  }
 0x319   :  { %4723 = vmatprep.subr.bf16.mxu1 %v10607_v3  ;;  %v10653_v3 = vld [vmem:[#allocation8 + $0x820] ss:$24 sps:$4 sm:$0xff]  }
 0x31a   :  { %6827 = vmatpush2.bf16.msra.mxu0 %v10698_v27  ;;  %v10661_v27 = vld [vmem:[#allocation8 + $0x7f4] ss:$24 sps:$4 sm:$0xff]  }
 0x31b   :  { %6828 = vmatprep.subr.bf16.mxu0 %v10703_v8  ;;  %v10659_v8 = vld [vmem:[#allocation8 + $0x7f0] ss:$24 sps:$4 sm:$0xff]  }
 0x31c   :  { %4724 = vmatpush2.bf16.msra.mxu1 %v10605_v42  ;;  %v10667_v42 = vld [vmem:[#allocation8 + $0x7c4] ss:$24 sps:$4 sm:$0xff]  }
 0x31d   :  { %4725 = vmatprep.subr.bf16.mxu1 %v10610_v18  ;;  %v10665_v18 = vld [vmem:[#allocation8 + $0x7c0] ss:$24 sps:$4 sm:$0xff]  }
 0x31e   :  { %6829 = vmatpush2.bf16.msra.mxu0 %v10701_v45  ;;  %v10673_v45 = vld [vmem:[#allocation8 + $0x794] ss:$24 sps:$4 sm:$0xff]  }
 0x31f   :  { %6830 = vmatprep.subr.bf16.mxu0 %v10706_v50  ;;  %v10671_v50 = vld [vmem:[#allocation8 + $0x790] ss:$24 sps:$4 sm:$0xff]  }
 0x320   :  { %4726 = vmatpush2.bf16.msra.mxu1 %v10608_v2  ;;  %v10712_v2 = vld [vmem:[#allocation11 + $0x454] ss:$24 sps:$4 sm:$0xff]  }
 0x321   :  { %4727 = vmatprep.subr.bf16.mxu1 %v10613_v14  ;;  %v10710_v14 = vld [vmem:[#allocation11 + $0x450] ss:$24 sps:$4 sm:$0xff]  }
 0x322   :  { %6831 = vmatpush2.bf16.msra.mxu0 %v10704_v12  ;;  %v10715_v12 = vld [vmem:[#allocation11 + $0x424] ss:$24 sps:$4 sm:$0xff]  }
 0x323   :  { %6832 = vmatprep.subr.bf16.mxu0 %v10709_v22 }
 0x324   :  { %4728 = vmatpush2.bf16.msra.mxu1 %v10611_v55 }
 0x325   :  { %4799 = vmatprep.subr.bf16.mxu1 %v10616_v47  ;;  %v10713_v47 = vld [vmem:[#allocation11 + $0x420] ss:$24 sps:$4 sm:$0xff]  }
 0x326   :  { %6833 = vmatpush2.bf16.msra.mxu0 %v10707_v51 }
 0x327   :  { %4730 = vmatmul.mubr.bf16.vlgmr.msra.gmra.mxu1 %v11834_v15 }
 0x328   :  { %4739 = vmatprep.mubr.bf16.mxu1 %v11837_v21  ;;  %4800 = vmatpush1.bf16.msra.mxu1 %v10614_v16  ;;  %v12033_v41 = vpop.f32.mrf.mxu0  ;;  %v10623_v21 = vld [vmem:[#allocation8 + $0x6d0] ss:$24 sps:$4 sm:$0xff]  }
 0x329   :  { %4801 = vmatprep.subr.bf16.mxu1 %v10619_v48  ;;  %v10718_v48 = vld [vmem:[#allocation11 + $0x3f4] ss:$24 sps:$4 sm:$0xff]  }
 0x32a   :  { %v12035_v54 = vpop.f32.mrf.mxu0 }
 0x32c   :  { %4802 = vmatpush1.bf16.msra.mxu1 %v10617_v28  ;;  %v12037_v10 = vpop.f32.mrf.mxu0 }
 0x32d   :  { %4803 = vmatprep.subr.bf16.mxu1 %v10622_v53 }
 0x32e   :  { %v12039_v32 = vpop.f32.mrf.mxu0 }
 0x32f   :  { %4740 = vmatmul.mubr.bf16.gmra.mxu1 %v11841_v4  ;;  %v10634_v4 = vld [vmem:[#allocation8 + $0x644] ss:$24 sps:$4 sm:$0xff]  }
 0x330   :  { %4804 = vmatpush1.bf16.msra.mxu1 %v10620_v31  ;;  %4831 = vmatprep.mubr.bf16.mxu1 %v11978_v23  ;;  %v12043_v15 = vpop.f32.mrf.mxu0  ;;  %v10637_v23 = vld [vmem:[#allocation8 + $0x614] ss:$24 sps:$4 sm:$0xff]  }
 0x331   :  { %4805 = vmatprep.subr.bf16.mxu1 %v10625_v56 }
 0x332   :  { %v12045_v52 = vpop.f32.mrf.mxu0 }
 0x334   :  { %4806 = vmatpush1.bf16.msra.mxu1 %v10623_v21  ;;  %v4592_v58 = vpop.f32.mrf.mxu0 }
 0x335   :  { %4807 = vmatprep.subr.bf16.mxu1 %v10628_v40  ;;  %v10721_v58 = vld [vmem:[#allocation11 + $0x3c4] ss:$24 sps:$4 sm:$0xff]  }
 0x336   :  { %v4593_v33 = vpop.f32.mrf.mxu0 }
 0x338   :  { %4808 = vmatpush1.bf16.msra.mxu1 %v10626_v19 }
 0x339   :  { %4809 = vmatprep.subr.bf16.mxu1 %v10631_v61 }
 0x33c   :  { %4810 = vmatpush1.bf16.msra.mxu1 %v10629_v25 }
 0x33d   :  { %4811 = vmatprep.subr.bf16.mxu1 %v10634_v4 }
 0x340   :  { %4812 = vmatpush1.bf16.msra.mxu1 %v10632_v62 }
 0x341   :  { %4813 = vmatprep.subr.bf16.mxu1 %v10637_v23 }
 0x344   :  { %4814 = vmatpush1.bf16.msra.mxu1 %v10635_v9 }
 0x345   :  { %4815 = vmatprep.subr.bf16.mxu1 %v10640_v17  ;;  %v10719_v17 = vld [vmem:[#allocation11 + $0x3c0] ss:$24 sps:$4 sm:$0xff]  }
 0x348   :  { %4816 = vmatpush2.bf16.msra.mxu1 %v10638_v36 }
 0x349   :  { %4817 = vmatprep.subr.bf16.mxu1 %v10643_v0 }
 0x34c   :  { %4818 = vmatpush2.bf16.msra.mxu1 %v10641_v30 }
 0x34d   :  { %4819 = vmatprep.subr.bf16.mxu1 %v10646_v6  ;;  %v10724_v6 = vld [vmem:[#allocation11 + $0x394] ss:$24 sps:$4 sm:$0xff]  }
 0x350   :  { %4820 = vmatpush2.bf16.msra.mxu1 %v10644_v34 }
 0x351   :  { %4821 = vmatprep.subr.bf16.mxu1 %v10649_v35 }
 0x354   :  { %4822 = vmatpush2.bf16.msra.mxu1 %v10647_v37 }
 0x355   :  { %4823 = vmatprep.subr.bf16.mxu1 %v10655_v57 }
 0x358   :  { %4824 = vmatpush2.bf16.msra.mxu1 %v10653_v3  ;;  %v12077_v3 = vld [vmem:[#allocation10] sm:$0x3f] }
 0x359   :  { %4825 = vmatprep.subr.bf16.mxu1 %v10661_v27 }
 0x35c   :  { %4826 = vmatpush2.bf16.msra.mxu1 %v10659_v8 }
 0x35d   :  { %4827 = vmatprep.subr.bf16.mxu1 %v10667_v42 }
 0x360   :  { %4828 = vmatpush2.bf16.msra.mxu1 %v10665_v18 }
 0x361   :  { %4829 = vmatprep.subr.bf16.mxu1 %v10673_v45 }
 0x364   :  { %4830 = vmatpush2.bf16.msra.mxu1 %v10671_v50  ;;  %v10722_v50 = vld [vmem:[#allocation11 + $0x390] ss:$24 sps:$4 sm:$0xff]  }
 0x365   :  { %6853 = vmatprep.subr.bf16.mxu1 %v10712_v2 }
 0x367   :  { %4832 = vmatmul.mubr.bf16.vlgmr.msra.gmra.mxu1 %v11976_v1  ;;  %v4527_v22 = vpop.f32.mrf.mxu1 }
 0x368   :  { %v4528_v55 = vadd.f32 %v4527_v22, %v12010_v59  ;;  %4841 = vmatprep.mubr.bf16.mxu1 %v11982_v26  ;;  %6854 = vmatpush1.bf16.msra.mxu1 %v10710_v14  ;;  %v10716_v59 = vld [vmem:[#allocation11 + $0x3f0] ss:$24 sps:$4 sm:$0xff]  }
 0x369   :  { %v12050_v51 = vpop.f32.mrf.mxu0  ;;  %v4529_v16 = vpop.f32.mrf.mxu1  ;;  %6855 = vmatprep.subr.bf16.mxu1 %v10715_v12 }
 0x36a   :  { %v4530_v28 = vadd.f32 %v4529_v16, %v12014_v5  ;;  %v4850_v53 = vmul.f32 %v11748_v20, %v4528_v55  ;;  %v10727_v16 = vld [vmem:[#allocation11 + $0x364] ss:$24 sps:$4 sm:$0xff]  }
 0x36b   :  { %v12054_v31 = vpop.f32.mrf.mxu0  ;;  %v4531_v56 = vpop.f32.mrf.mxu1 }
 0x36c   :  { %v4532_v1 = vadd.f32 %v4531_v56, %v12017_v11  ;;  %6856 = vmatpush1.bf16.msra.mxu1 %v10713_v47  ;;  %v12058_v26 = vmul.f32 %v11748_v20, %v4530_v28  ;;  %v4868_v61 = vrot.slane %v4850_v53, 7  ;;  %v4922_v33 = vrot.slane %v4850_v53, 1 }
 0x36d   :  { %v12060_v21 = vpop.f32.mrf.mxu0  ;;  %v4533_v40 = vpop.f32.mrf.mxu1  ;;  %6857 = vmatprep.subr.bf16.mxu1 %v10718_v48 }
 0x36e   :  { %v4856_v19 = vmul.f32 %v11754_v24, %v4532_v1  ;;  %v4534_v5 = vadd.f32 %v4533_v40, %v12021_v13  ;;  %v4869_v36 = vrot.slane %v12058_v26, 7  ;;  %v4923_v0 = vrot.slane %v12058_v26, 1 }
 0x36f   :  { %v12064_v25 = vpop.f32.mrf.mxu0  ;;  %4842 = vmatmul.mubr.bf16.gmra.mxu1 %v11996_v44  ;;  %v4537_v11 = vpop.f32.mrf.mxu1 }
 0x370   :  { %v4874_v4 = vrot.slane %v4856_v19, 7  ;;  %v4928_v62 = vrot.slane %v4856_v19, 1  ;;  %v4857_v23 = vmul.f32 %v11754_v24, %v4534_v5  ;;  %v4538_v9 = vadd.f32 %v4537_v11, %v12026_v39  ;;  %6858 = vmatpush1.bf16.msra.mxu1 %v10716_v59  ;;  %v10725_v11 = vld [vmem:[#allocation11 + $0x360] ss:$24 sps:$4 sm:$0xff]  }
 0x371   :  { %v12071_v13 = vpop.f32.mrf.mxu0  ;;  %v4539_v30 = vpop.f32.mrf.mxu1  ;;  %6859 = vmatprep.subr.bf16.mxu1 %v10721_v58 }
 0x372   :  { %v4892_v44 = vsel %vm2473_vm2, %v4868_v61, %v4874_v4  ;;  %v4946_v34 = vsel %vm2528_vm3, %v4922_v33, %v4928_v62  ;;  %v4875_v35 = vrot.slane %v4857_v23, 7  ;;  %v4929_v37 = vrot.slane %v4857_v23, 1 }
 0x373   :  { %v4910_v39 = vadd.f32 %v4892_v44, %v4856_v19  ;;  %v4862_v57 = vmul.f32 0.0, %v4538_v9  ;;  %v4540_v27 = vadd.f32 %v4539_v30, %v12029_v29  ;;  %v12080_v8 = vpop.f32.mrf.mxu0  ;;  %v4541_v42 = vpop.f32.mrf.mxu1  ;;  %v4999_v29 = vrot.slane %v12077_v3, %v11786_v43  ;;  %v10730_v9 = vld [vmem:[#allocation11 + $0x334] ss:$24 sps:$4 sm:$0xff]  }
 0x374   :  { %v4893_v18 = vsel %vm2473_vm2, %v4869_v36, %v4875_v35  ;;  %v4947_v45 = vsel %vm2528_vm3, %v4923_v0, %v4929_v37  ;;  %6860 = vmatpush1.bf16.msra.mxu1 %v10719_v17 }
 0x375   :  { %v4911_v2 = vadd.f32 %v4893_v18, %v4857_v23  ;;  %v4880_v14 = vrot.slane %v4862_v57, 7  ;;  %v4934_v12 = vrot.slane %v4862_v57, 1  ;;  %v4863_v22 = vmul.f32 0.0, %v4540_v27  ;;  %v4694_v55 = vpop.f32.mrf.mxu0  ;;  %v4542_v47 = vpop.f32.mrf.mxu1  ;;  %6861 = vmatprep.subr.bf16.mxu1 %v10724_v6 }
 0x377   :  { %v4886_v48 = vsel %vm2473_vm2, %v4874_v4, %v4880_v14  ;;  %v4898_v28 = vsel %vm2473_vm2, %v4880_v14, %v4868_v61  ;;  %v4940_v56 = vsel %vm2528_vm3, %v4928_v62, %v4934_v12  ;;  %v4952_v1 = vsel %vm2528_vm3, %v4934_v12, %v4922_v33  ;;  %v4695_v59 = vpop.f32.mrf.mxu0 }
 0x378   :  { %v4904_v40 = vadd.f32 %v4898_v28, %v4850_v53  ;;  %v4916_v58 = vadd.f32 %v4886_v48, %v4862_v57  ;;  %v4964_v19 = vadd.f32 %v4940_v56, %v4910_v39  ;;  %v4881_v5 = vrot.slane %v4863_v22, 7  ;;  %6862 = vmatpush1.bf16.msra.mxu1 %v10722_v50  ;;  %v10728_v57 = vld [vmem:[#allocation11 + $0x330] ss:$24 sps:$4 sm:$0xff]   ;;  %v10737_v28 = vld [vmem:[#allocation11 + $0x5a0] ss:$24 sps:$4 sm:$0xff]  }
 0x379   :  { %v4935_v23 = vrot.slane %v4863_v22, 1  ;;  %6863 = vmatprep.subr.bf16.mxu1 %v10727_v16  ;;  %v10734_v16 = vld [vmem:[#allocation11 + $0x5d0] ss:$24 sps:$4 sm:$0xff]   ;;  %v10742_v56 = vld [vmem:[#allocation11 + $0x574] ss:$24 sps:$4 sm:$0xff]  }
 0x37a   :  { %v4958_v4 = vadd.f32 %v4946_v34, %v4904_v40  ;;  %v4970_v17 = vadd.f32 %v4952_v1, %v4916_v58  ;;  %v4982_v61 = vmul.f32 %v11754_v24, %v4964_v19  ;;  %v4887_v62 = vsel %vm2473_vm2, %v4875_v35, %v4881_v5  ;;  %v10740_v59 = vld [vmem:[#allocation11 + $0x570] ss:$24 sps:$4 sm:$0xff]   ;;  %v10745_v58 = vld [vmem:[#allocation11 + $0x544] ss:$24 sps:$4 sm:$0xff]  }
 0x37b   :  { %v4899_v33 = vsel %vm2473_vm2, %v4881_v5, %v4869_v36  ;;  %v4917_v30 = vadd.f32 %v4887_v62, %v4863_v22  ;;  %v4941_v53 = vsel %vm2528_vm3, %v4929_v37, %v4935_v23  ;;  %v4953_v6 = vsel %vm2528_vm3, %v4935_v23, %v4923_v0  ;;  %v10733_v36 = vld [vmem:[#allocation11 + $0x304] ss:$24 sps:$4 sm:$0xff]  }
 0x37c   :  { %v4976_v44 = vmul.f32 %v11748_v20, %v4958_v4  ;;  %v5032_v39 = vadd.f32 %v4999_v29, %v4982_v61  ;;  %v4905_v34 = vadd.f32 %v4899_v33, %v12058_v26  ;;  %6864 = vmatpush1.bf16.msra.mxu1 %v10725_v11  ;;  %v4965_v27 = vadd.f32 %v4941_v53, %v4911_v2  ;;  %v10731_v26 = vld [vmem:[#allocation11 + $0x300] ss:$24 sps:$4 sm:$0xff]   ;;  %v10736_v2 = vld [vmem:[#allocation11 + $0x5d4] ss:$24 sps:$4 sm:$0xff]   ;;  %v10806_v61 = vld [vmem:[#allocation11 + $0x750] ss:$24 sps:$4 sm:$0xff]  }
 0x37d   :  { %v4971_v42 = vadd.f32 %v4953_v6, %v4917_v30  ;;  %v5003_v35 = vrot.slane %v12077_v3, %v11796_v60  ;;  %6865 = vmatprep.subr.bf16.mxu1 %v10730_v9  ;;  %v4988_v47 = vmul.f32 0.0, %v4970_v17  ;;  %v10743_v11 = vld [vmem:[#allocation11 + $0x540] ss:$24 sps:$4 sm:$0xff]   ;;  %v10748_v9 = vld [vmem:[#allocation11 + $0x514] ss:$24 sps:$4 sm:$0xff]  }
 0x37e   :  { %v5026_v18 = vadd.f32 %v4999_v29, %v4976_v44  ;;  %v4959_v50 = vadd.f32 %v4947_v45, %v4905_v34  ;;  %11230 = vtanh.f32 %v5032_v39  ;;  %v4983_v37 = vmul.f32 %v11754_v24, %v4965_v27  ;;  %v10739_v45 = vld [vmem:[#allocation11 + $0x5a4] ss:$24 sps:$4 sm:$0xff]   ;;  %v10808_v17 = vld [vmem:[#allocation11 + $0x754] ss:$24 sps:$4 sm:$0xff]   ;;  %v10746_v33 = vld [vmem:[#allocation11 + $0x510] ss:$24 sps:$4 sm:$0xff]  }
 0x37f   :  { %v4989_v0 = vmul.f32 0.0, %v4971_v42  ;;  %v5038_v48 = vadd.f32 %v4999_v29, %v4988_v47  ;;  %v10751_v30 = vld [vmem:[#allocation11 + $0x4e4] ss:$24 sps:$4 sm:$0xff]   ;;  %6904 = vmatprep.subr.bf16.mxu0 %v10808_v17  ;;  %v10812_v6 = vld [vmem:[#allocation11 + $0x720] ss:$24 sps:$4 sm:$0xff]  }
 0x380   :  { %11232 = vtanh.f32 %v5026_v18  ;;  %v4977_v14 = vmul.f32 %v11748_v20, %v4959_v50  ;;  %6866 = vmatpush1.bf16.msra.mxu1 %v10728_v57  ;;  %v5033_v12 = vadd.f32 %v5003_v35, %v4983_v37  ;;  %v10814_v53 = vld [vmem:[#allocation11 + $0x724] ss:$24 sps:$4 sm:$0xff]   ;;  %v10749_v39 = vld [vmem:[#allocation11 + $0x4e0] ss:$24 sps:$4 sm:$0xff]   ;;  %v10754_v34 = vld [vmem:[#allocation11 + $0x4b4] ss:$24 sps:$4 sm:$0xff]  }
 0x381   :  { %v5039_v22 = vadd.f32 %v5003_v35, %v4989_v0  ;;  %6867 = vmatprep.subr.bf16.mxu1 %v10733_v36  ;;  %v10820_v57 = vld [vmem:[#allocation11 + $0x6f4] ss:$24 sps:$4 sm:$0xff]   ;;  %v10818_v42 = vld [vmem:[#allocation11 + $0x6f0] ss:$24 sps:$4 sm:$0xff]   ;;  %v10757_v36 = vld [vmem:[#allocation11 + $0x484] ss:$24 sps:$4 sm:$0xff]  }
 0x382   :  { %v5027_v55 = vadd.f32 %v5003_v35, %v4977_v14  ;;  %11234 = vtanh.f32 %v5033_v12  ;;  %v10752_v35 = vld [vmem:[#allocation11 + $0x4b0] ss:$24 sps:$4 sm:$0xff]   ;;  %v10826_v18 = vld [vmem:[#allocation11 + $0x6c4] ss:$24 sps:$4 sm:$0xff]   ;;  %v10824_v50 = vld [vmem:[#allocation11 + $0x6c0] ss:$24 sps:$4 sm:$0xff]  }
 0x383   :  { %v10755_v37 = vld [vmem:[#allocation11 + $0x480] ss:$24 sps:$4 sm:$0xff]   ;;  %v10760_v0 = vld [vmem:[#allocation11 + $0x15c] ss:$24 sps:$4 sm:$0xff]  }
 0x384   :  { %11236 = vtanh.f32 %v5027_v55  ;;  %6868 = vmatpush1.bf16.msra.mxu1 %v10731_v26  ;;  %v10832_v14 = vld [vmem:[#allocation11 + $0x694] ss:$24 sps:$4 sm:$0xff]   ;;  %v10830_v26 = vld [vmem:[#allocation11 + $0x690] ss:$24 sps:$4 sm:$0xff]   ;;  %v10838_v12 = vld [vmem:[#allocation11 + $0x664] ss:$24 sps:$4 sm:$0xff]  }
 0x385   :  { %11238 = vtanh.f32 %v5039_v22  ;;  %6869 = vmatprep.subr.bf16.mxu1 %v10736_v2  ;;  %v10836_v2 = vld [vmem:[#allocation11 + $0x660] ss:$24 sps:$4 sm:$0xff]  }
 0x386   :  { %11240 = vtanh.f32 %v5038_v48 }
 0x388   :  { %6870 = vmatpush2.bf16.msra.mxu1 %v10734_v16 }
 0x389   :  { %6871 = vmatprep.subr.bf16.mxu1 %v10739_v45 }
 0x38b   :  { %v11231_v1 = vpop.eup %11230 }
 0x38c   :  { %6872 = vmatpush2.bf16.msra.mxu1 %v10737_v28  ;;  %v10844_v28 = vld [vmem:[#allocation11 + $0x634] ss:$24 sps:$4 sm:$0xff]  }
 0x38d   :  { %v11233_v40 = vpop.eup %11232  ;;  %6873 = vmatprep.subr.bf16.mxu1 %v10742_v56 }
 0x38e   :  { %v12111_v19 = vpack.c.bf16 %v11231_v1, %v11233_v40 }
 0x38f   :  { %v11235_v5 = vpop.eup %11234 }
 0x390   :  { %6874 = vmatpush2.bf16.msra.mxu1 %v10740_v59  ;;  %v10842_v59 = vld [vmem:[#allocation11 + $0x630] ss:$24 sps:$4 sm:$0xff]  }
 0x391   :  { %v11237_v23 = vpop.eup %11236  ;;  %6875 = vmatprep.subr.bf16.mxu1 %v10745_v58 }
 0x392   :  { %v11239_v29 = vpop.eup %11238  ;;  %v12113_v4 = vpack.c.bf16 %v11235_v5, %v11237_v23  ;;  %v10850_v23 = vld [vmem:[#allocation11 + $0x604] ss:$24 sps:$4 sm:$0xff]  }
 0x393   :  { %v12116_v62 = vpack.c.bf16 %v11239_v29, %v11239_v29  ;;  %v11241_v44 = vpop.eup %11240 }
 0x394   :  { %6834 = vmatprep.mubr.bf16.mxu0 %v12113_v4  ;;  %6876 = vmatpush2.bf16.msra.mxu1 %v10743_v11  ;;  %v12120_v27 = vpack.c.bf16 %v11241_v44, %v11241_v44 }
 0x395   :  { %6835 = vmatmul.mubr.bf16.vlgmr.msra.gmra.mxu0 %v12111_v19  ;;  %6877 = vmatprep.subr.bf16.mxu1 %v10748_v9 }
 0x396   :  { %6844 = vmatprep.mubr.bf16.mxu0 %v12116_v62  ;;  %6905 = vmatpush1.bf16.msra.mxu0 %v10806_v61 }
 0x397   :  { %6906 = vmatprep.subr.bf16.mxu0 %v10814_v53 }
 0x398   :  { %6878 = vmatpush2.bf16.msra.mxu1 %v10746_v33 }
 0x399   :  { %6879 = vmatprep.subr.bf16.mxu1 %v10751_v30 }
 0x39a   :  { %6907 = vmatpush1.bf16.msra.mxu0 %v10812_v6 }
 0x39b   :  { %6908 = vmatprep.subr.bf16.mxu0 %v10820_v57 }
 0x39c   :  { %6880 = vmatpush2.bf16.msra.mxu1 %v10749_v39 }
 0x39d   :  { %6845 = vmatmul.mubr.bf16.gmra.mxu0 %v12120_v27  ;;  %6881 = vmatprep.subr.bf16.mxu1 %v10754_v34 }
 0x39e   :  { %6909 = vmatpush1.bf16.msra.mxu0 %v10818_v42 }
 0x39f   :  { %6910 = vmatprep.subr.bf16.mxu0 %v10826_v18 }
 0x3a0   :  { %6882 = vmatpush2.bf16.msra.mxu1 %v10752_v35 }
 0x3a1   :  { %6883 = vmatprep.subr.bf16.mxu1 %v10757_v36  ;;  %v10856_v36 = vld [vmem:[#allocation11 + $0x8d4] ss:$24 sps:$4 sm:$0xff]  }
 0x3a2   :  { %6911 = vmatpush1.bf16.msra.mxu0 %v10824_v50 }
 0x3a3   :  { %6912 = vmatprep.subr.bf16.mxu0 %v10832_v14 }
 0x3a4   :  { %6884 = vmatpush2.bf16.msra.mxu1 %v10755_v37  ;;  %v10854_v37 = vld [vmem:[#allocation11 + $0x8d0] ss:$24 sps:$4 sm:$0xff]  }
 0x3a5   :  { %6955 = vmatprep.subr.bf16.mxu1 %v10760_v0 }
 0x3a6   :  { %6913 = vmatpush1.bf16.msra.mxu0 %v10830_v26 }
 0x3a7   :  { %v4629_v22 = vpop.f32.mrf.mxu1  ;;  %6914 = vmatprep.subr.bf16.mxu0 %v10838_v12 }
 0x3a8   :  { %v4630_v55 = vadd.f32 %v4629_v22, %v12033_v41 }
 0x3a9   :  { %v4631_v47 = vpop.f32.mrf.mxu1  ;;  %v12124_v16 = vpop.f32.mrf.mxu0 }
 0x3aa   :  { %v4681_v45 = vadd.f32 %v12050_v51, %v4630_v55  ;;  %v4632_v48 = vadd.f32 %v4631_v47, %v12035_v54  ;;  %6915 = vmatpush1.bf16.msra.mxu0 %v10836_v2 }
 0x3ab   :  { %v4633_v56 = vpop.f32.mrf.mxu1  ;;  %v12128_v1 = vpop.f32.mrf.mxu0  ;;  %6916 = vmatprep.subr.bf16.mxu0 %v10844_v28 }
 0x3ac   :  { %v4683_v40 = vadd.f32 %v12054_v31, %v4632_v48  ;;  %v4634_v58 = vadd.f32 %v4633_v56, %v12037_v10  ;;  %v4852_v41 = vmul.f32 %v11748_v20, %v4681_v45  ;;  %v10848_v31 = vld [vmem:[#allocation11 + $0x600] ss:$24 sps:$4 sm:$0xff]   ;;  %v10862_v56 = vld [vmem:[#allocation11 + $0x8a4] ss:$24 sps:$4 sm:$0xff]  }
 0x3ad   :  { %v4635_v5 = vpop.f32.mrf.mxu1  ;;  %v12133_v11 = vpop.f32.mrf.mxu0 }
 0x3ae   :  { %v4685_v51 = vadd.f32 %v12060_v21, %v4634_v58  ;;  %v12137_v54 = vmul.f32 %v11748_v20, %v4683_v40  ;;  %v4636_v9 = vadd.f32 %v4635_v5, %v12039_v32  ;;  %6917 = vmatpush1.bf16.msra.mxu0 %v10842_v59  ;;  %v4870_v33 = vrot.slane %v4852_v41, 7 }
 0x3af   :  { %v4639_v29 = vpop.f32.mrf.mxu1  ;;  %v12140_v17 = vpop.f32.mrf.mxu0  ;;  %6918 = vmatprep.subr.bf16.mxu0 %v10850_v23  ;;  %v4924_v30 = vrot.slane %v4852_v41, 1 }
 0x3b0   :  { %v4858_v10 = vmul.f32 %v11754_v24, %v4685_v51  ;;  %v4640_v61 = vadd.f32 %v4639_v29, %v12043_v15  ;;  %v4687_v21 = vadd.f32 %v12064_v25, %v4636_v9  ;;  %v4871_v57 = vrot.slane %v12137_v54, 7  ;;  %v10860_v51 = vld [vmem:[#allocation11 + $0x8a0] ss:$24 sps:$4 sm:$0xff]  }
 0x3b1   :  { %v4641_v53 = vpop.f32.mrf.mxu1  ;;  %v12145_v6 = vpop.f32.mrf.mxu0 }
 0x3b2   :  { %v4876_v44 = vrot.slane %v4858_v10, 7  ;;  %v4930_v39 = vrot.slane %v4858_v10, 1  ;;  %v4691_v32 = vadd.f32 %v12071_v13, %v4640_v61  ;;  %v4642_v34 = vadd.f32 %v4641_v53, %v12045_v52  ;;  %6919 = vmatpush1.bf16.msra.mxu0 %v10848_v31 }
 0x3b3   :  { %v4859_v42 = vmul.f32 %v11754_v24, %v4687_v21  ;;  %v4643_v35 = vpop.f32.mrf.mxu1  ;;  %v12151_v15 = vpop.f32.mrf.mxu0  ;;  %v4925_v52 = vrot.slane %v12137_v54, 1  ;;  %6920 = vmatprep.subr.bf16.mxu0 %v10856_v36 }
 0x3b4   :  { %v4894_v25 = vsel %vm2473_vm2, %v4870_v33, %v4876_v44  ;;  %v4948_v18 = vsel %vm2528_vm3, %v4924_v30, %v4930_v39  ;;  %v4864_v50 = vmul.f32 0.0, %v4691_v32  ;;  %v4693_v13 = vadd.f32 %v12080_v8, %v4642_v34  ;;  %v10868_v32 = vld [vmem:[#allocation11 + $0x874] ss:$24 sps:$4 sm:$0xff]   ;;  %v10866_v34 = vld [vmem:[#allocation11 + $0x870] ss:$24 sps:$4 sm:$0xff]  }
 0x3b5   :  { %v4912_v0 = vadd.f32 %v4894_v25, %v4858_v10  ;;  %v4877_v14 = vrot.slane %v4859_v42, 7  ;;  %v4931_v26 = vrot.slane %v4859_v42, 1  ;;  %v4644_v12 = vpop.f32.mrf.mxu1  ;;  %v4796_v22 = vpop.f32.mrf.mxu0  ;;  %v5007_v8 = vrot.slane %v12077_v3, %v11852_v7 }
 0x3b6   :  { %v4882_v2 = vrot.slane %v4864_v50, 7  ;;  %v4936_v55 = vrot.slane %v4864_v50, 1  ;;  %v4865_v47 = vmul.f32 0.0, %v4693_v13  ;;  %6921 = vmatpush2.bf16.msra.mxu0 %v10854_v37 }
 0x3b7   :  { %v4895_v45 = vsel %vm2473_vm2, %v4871_v57, %v4877_v14  ;;  %v4949_v48 = vsel %vm2528_vm3, %v4925_v52, %v4931_v26  ;;  %v4797_v28 = vpop.f32.mrf.mxu0  ;;  %6922 = vmatprep.subr.bf16.mxu0 %v10862_v56 }
 0x3b8   :  { %v4913_v59 = vadd.f32 %v4895_v45, %v4859_v42  ;;  %v4888_v40 = vsel %vm2473_vm2, %v4876_v44, %v4882_v2  ;;  %v4900_v58 = vsel %vm2473_vm2, %v4882_v2, %v4870_v33  ;;  %v4942_v5 = vsel %vm2528_vm3, %v4930_v39, %v4936_v55  ;;  %v10878_v45 = vld [vmem:[#allocation11 + $0x810] ss:$24 sps:$4 sm:$0xff]   ;;  %v10886_v28 = vld [vmem:[#allocation11 + $0x7e4] ss:$24 sps:$4 sm:$0xff]  }
 0x3b9   :  { %v4906_v23 = vadd.f32 %v4900_v58, %v4852_v41  ;;  %v4918_v9 = vadd.f32 %v4888_v40, %v4864_v50  ;;  %v4954_v29 = vsel %vm2528_vm3, %v4936_v55, %v4924_v30  ;;  %v4966_v31 = vadd.f32 %v4942_v5, %v4912_v0  ;;  %v10874_v0 = vld [vmem:[#allocation11 + $0x844] ss:$24 sps:$4 sm:$0xff]   ;;  %v10880_v55 = vld [vmem:[#allocation11 + $0x814] ss:$24 sps:$4 sm:$0xff]  }
 0x3ba   :  { %v4883_v10 = vrot.slane %v4865_v47, 7  ;;  %v4937_v61 = vrot.slane %v4865_v47, 1  ;;  %6923 = vmatpush2.bf16.msra.mxu0 %v10860_v51  ;;  %v5011_v50 = vrot.slane %v12077_v3, %v11872_v38  ;;  %v10892_v40 = vld [vmem:[#allocation11 + $0x7b4] ss:$24 sps:$4 sm:$0xff]  }
 0x3bb   :  { %v4960_v21 = vadd.f32 %v4948_v18, %v4906_v23  ;;  %v4972_v53 = vadd.f32 %v4954_v29, %v4918_v9  ;;  %v4984_v44 = vmul.f32 %v11754_v24, %v4966_v31  ;;  %6924 = vmatprep.subr.bf16.mxu0 %v10868_v32  ;;  %v10896_v23 = vld [vmem:[#allocation11 + $0x780] ss:$24 sps:$4 sm:$0xff]   ;;  %v10898_v9 = vld [vmem:[#allocation11 + $0x784] ss:$24 sps:$4 sm:$0xff]  }
 0x3bc   :  { %v4889_v33 = vsel %vm2473_vm2, %v4877_v14, %v4883_v10  ;;  %v4901_v41 = vsel %vm2473_vm2, %v4883_v10, %v4871_v57  ;;  %v4943_v39 = vsel %vm2528_vm3, %v4931_v26, %v4937_v61  ;;  %v4955_v30 = vsel %vm2528_vm3, %v4937_v61, %v4925_v52  ;;  %v10872_v14 = vld [vmem:[#allocation11 + $0x840] ss:$24 sps:$4 sm:$0xff]  }
 0x3bd   :  { %v4978_v42 = vmul.f32 %v11748_v20, %v4960_v21  ;;  %v5034_v35 = vadd.f32 %v5007_v8, %v4984_v44  ;;  %v4907_v36 = vadd.f32 %v4901_v41, %v12137_v54  ;;  %v4919_v25 = vadd.f32 %v4889_v33, %v4865_v47  ;;  %v10904_v21 = vld [vmem:[#allocation11 + $0x45c] ss:$24 sps:$4 sm:$0xff]   ;;  %v10761_v32 = vld [vmem:[#allocation11 + $0x128] ss:$24 sps:$4 sm:$0xff]  }
 0x3be   :  { %v4967_v18 = vadd.f32 %v4943_v39, %v4913_v59  ;;  %6925 = vmatpush2.bf16.msra.mxu0 %v10866_v34  ;;  %v4990_v47 = vmul.f32 0.0, %v4972_v53  ;;  %v10890_v59 = vld [vmem:[#allocation11 + $0x7b0] ss:$24 sps:$4 sm:$0xff]   ;;  %v10763_v53 = vld [vmem:[#allocation11 + $0x12c] ss:$24 sps:$4 sm:$0xff]  }
 0x3bf   :  { %v5028_v13 = vadd.f32 %v5007_v8, %v4978_v42  ;;  %v4961_v57 = vadd.f32 %v4949_v48, %v4907_v36  ;;  %v4973_v37 = vadd.f32 %v4955_v30, %v4919_v25  ;;  %11242 = vtanh.f32 %v5034_v35  ;;  %6926 = vmatprep.subr.bf16.mxu0 %v10874_v0  ;;  %v10884_v48 = vld [vmem:[#allocation11 + $0x7e0] ss:$24 sps:$4 sm:$0xff]   ;;  %v10766_v33 = vld [vmem:[#allocation11 + $0xfc] ss:$24 sps:$4 sm:$0xff]   ;;  %v10769_v34 = vld [vmem:[#allocation11 + $0xcc] ss:$24 sps:$4 sm:$0xff]  }
 0x3c0   :  { %v4985_v52 = vmul.f32 %v11754_v24, %v4967_v18  ;;  %v5040_v56 = vadd.f32 %v5007_v8, %v4990_v47  ;;  %v10758_v8 = vld [vmem:[#allocation11 + $0x158] ss:$24 sps:$4 sm:$0xff]   ;;  %v10767_v42 = vld [vmem:[#allocation11 + $0xc8] ss:$24 sps:$4 sm:$0xff]   ;;  %v10772_v35 = vld [vmem:[#allocation11 + $0x9c] ss:$24 sps:$4 sm:$0xff]  }
 0x3c1   :  { %11244 = vtanh.f32 %v5028_v13  ;;  %v4979_v26 = vmul.f32 %v11748_v20, %v4961_v57  ;;  %v4991_v12 = vmul.f32 0.0, %v4973_v37  ;;  %v10764_v39 = vld [vmem:[#allocation11 + $0xf8] ss:$24 sps:$4 sm:$0xff]   ;;  %v10775_v25 = vld [vmem:[#allocation11 + $0x6c] ss:$24 sps:$4 sm:$0xff]  }
 0x3c2   :  { %v5035_v54 = vadd.f32 %v5011_v50, %v4985_v52  ;;  %6927 = vmatpush2.bf16.msra.mxu0 %v10872_v14  ;;  %v10770_v36 = vld [vmem:[#allocation11 + $0x98] ss:$24 sps:$4 sm:$0xff]   ;;  %v10778_v57 = vld [vmem:[#allocation11 + $0x3c] ss:$24 sps:$4 sm:$0xff]  }
 0x3c3   :  { %v5029_v22 = vadd.f32 %v5011_v50, %v4979_v26  ;;  %v5041_v2 = vadd.f32 %v5011_v50, %v4991_v12  ;;  %6928 = vmatprep.subr.bf16.mxu0 %v10880_v55  ;;  %v10773_v50 = vld [vmem:[#allocation11 + $0x68] ss:$24 sps:$4 sm:$0xff]   ;;  %v10776_v14 = vld [vmem:[#allocation11 + $0x38] ss:$24 sps:$4 sm:$0xff]   ;;  %v10781_v12 = vld [vmem:[#allocation11 + $0xc] ss:$24 sps:$4 sm:$0xff]  }
 0x3c4   :  { %11246 = vtanh.f32 %v5035_v54 }
 0x3c5   :  { %11248 = vtanh.f32 %v5029_v22 }
 0x3c6   :  { %11250 = vtanh.f32 %v5041_v2  ;;  %6929 = vmatpush2.bf16.msra.mxu0 %v10878_v45  ;;  %v10779_v2 = vld [vmem:[#allocation11 + $0x8] ss:$24 sps:$4 sm:$0xff]  }
 0x3c7   :  { %6930 = vmatprep.subr.bf16.mxu0 %v10886_v28  ;;  %11252 = vtanh.f32 %v5040_v56  ;;  %v10787_v28 = vld [vmem:[#allocation11 + $0x2ac] ss:$24 sps:$4 sm:$0xff]  }
 0x3ca   :  { %6931 = vmatpush2.bf16.msra.mxu0 %v10884_v48  ;;  %v10782_v48 = vld [vmem:[#allocation11 + $0x2d8] ss:$24 sps:$4 sm:$0xff]  }
 0x3cb   :  { %6932 = vmatprep.subr.bf16.mxu0 %v10892_v40  ;;  %v10788_v40 = vld [vmem:[#allocation11 + $0x278] ss:$24 sps:$4 sm:$0xff]  }
 0x3cc   :  { %v11243_v58 = vpop.eup %11242 }
 0x3ce   :  { %v11245_v5 = vpop.eup %11244  ;;  %6933 = vmatpush2.bf16.msra.mxu0 %v10890_v59  ;;  %v10790_v59 = vld [vmem:[#allocation11 + $0x27c] ss:$24 sps:$4 sm:$0xff]  }
 0x3cf   :  { %v12188_v51 = vpack.c.bf16 %v11243_v58, %v11245_v5  ;;  %6934 = vmatprep.subr.bf16.mxu0 %v10898_v9  ;;  %v10791_v58 = vld [vmem:[#allocation11 + $0x248] ss:$24 sps:$4 sm:$0xff]   ;;  %v10796_v5 = vld [vmem:[#allocation11 + $0x21c] ss:$24 sps:$4 sm:$0xff]  }
 0x3d0   :  { %v10797_v9 = vld [vmem:[#allocation11 + $0x1e8] ss:$24 sps:$4 sm:$0xff]  }
 0x3d1   :  { %v11247_v29 = vpop.eup %11246 }
 0x3d2   :  { %v11249_v31 = vpop.eup %11248  ;;  %6935 = vmatpush2.bf16.msra.mxu0 %v10896_v23  ;;  %v10799_v23 = vld [vmem:[#allocation11 + $0x1ec] ss:$24 sps:$4 sm:$0xff]  }
 0x3d3   :  { %v11251_v10 = vpop.eup %11250  ;;  %v12190_v61 = vpack.c.bf16 %v11247_v29, %v11249_v31  ;;  %7006 = vmatprep.subr.bf16.mxu0 %v10904_v21  ;;  %v10802_v29 = vld [vmem:[#allocation11 + $0x1bc] ss:$24 sps:$4 sm:$0xff]   ;;  %v10800_v31 = vld [vmem:[#allocation11 + $0x1b8] ss:$24 sps:$4 sm:$0xff]  }
 0x3d4   :  { %v12193_v44 = vpack.c.bf16 %v11251_v10, %v11251_v10  ;;  %v11253_v41 = vpop.eup %11252  ;;  %v10805_v10 = vld [vmem:[#allocation11 + $0x18c] ss:$24 sps:$4 sm:$0xff]   ;;  %v10811_v21 = vld [vmem:[#allocation11 + $0x75c] ss:$24 sps:$4 sm:$0xff]  }
 0x3d5   :  { %6885 = vmatprep.mubr.bf16.mxu1 %v12190_v61  ;;  %v12197_v30 = vpack.c.bf16 %v11253_v41, %v11253_v41  ;;  %v10823_v41 = vld [vmem:[#allocation11 + $0x6fc] ss:$24 sps:$4 sm:$0xff]  }
 0x3d6   :  { %6886 = vmatmul.mubr.bf16.vlgmr.msra.gmra.mxu1 %v12188_v51 }
 0x3d7   :  { %6956 = vmatpush1.bf16.msra.mxu1 %v10758_v8  ;;  %6895 = vmatprep.mubr.bf16.mxu1 %v12193_v44  ;;  %v10803_v8 = vld [vmem:[#allocation11 + $0x188] ss:$24 sps:$4 sm:$0xff]  }
 0x3d8   :  { %6957 = vmatprep.subr.bf16.mxu1 %v10763_v53  ;;  %v10809_v53 = vld [vmem:[#allocation11 + $0x758] ss:$24 sps:$4 sm:$0xff]  }
 0x3db   :  { %6958 = vmatpush1.bf16.msra.mxu1 %v10761_v32  ;;  %v10817_v32 = vld [vmem:[#allocation11 + $0x72c] ss:$24 sps:$4 sm:$0xff]  }
 0x3dc   :  { %6959 = vmatprep.subr.bf16.mxu1 %v10766_v33  ;;  %v10815_v33 = vld [vmem:[#allocation11 + $0x728] ss:$24 sps:$4 sm:$0xff]  }
 0x3de   :  { %6896 = vmatmul.mubr.bf16.gmra.mxu1 %v12197_v30 }
 0x3df   :  { %6960 = vmatpush1.bf16.msra.mxu1 %v10764_v39  ;;  %6987 = vmatprep.mubr.bf16.mxu1 %v12113_v4  ;;  %v10821_v39 = vld [vmem:[#allocation11 + $0x6f8] ss:$24 sps:$4 sm:$0xff]  }
 0x3e0   :  { %6961 = vmatprep.subr.bf16.mxu1 %v10769_v34  ;;  %v10829_v34 = vld [vmem:[#allocation11 + $0x6cc] ss:$24 sps:$4 sm:$0xff]  }
 0x3e3   :  { %6962 = vmatpush1.bf16.msra.mxu1 %v10767_v42  ;;  %v10827_v42 = vld [vmem:[#allocation11 + $0x6c8] ss:$24 sps:$4 sm:$0xff]  }
 0x3e4   :  { %6963 = vmatprep.subr.bf16.mxu1 %v10772_v35  ;;  %v10835_v35 = vld [vmem:[#allocation11 + $0x69c] ss:$24 sps:$4 sm:$0xff]  }
 0x3e7   :  { %6964 = vmatpush1.bf16.msra.mxu1 %v10770_v36  ;;  %v4731_v18 = vpop.f32.mrf.mxu1  ;;  %v10833_v36 = vld [vmem:[#allocation11 + $0x698] ss:$24 sps:$4 sm:$0xff]  }
 0x3e8   :  { %v12202_v13 = vadd.f32 %v12124_v16, %v4731_v18  ;;  %6965 = vmatprep.subr.bf16.mxu1 %v10775_v25  ;;  %v10841_v25 = vld [vmem:[#allocation11 + $0x66c] ss:$24 sps:$4 sm:$0xff]  }
 0x3e9   :  { %v4733_v37 = vpop.f32.mrf.mxu1 }
 0x3ea   :  { %v12205_v0 = vadd.f32 %v12128_v1, %v4733_v37  ;;  %v10784_v1 = vld [vmem:[#allocation11 + $0x2dc] ss:$24 sps:$4 sm:$0xff]  }
 0x3eb   :  { %6966 = vmatpush1.bf16.msra.mxu1 %v10773_v50  ;;  %v4735_v52 = vpop.f32.mrf.mxu1  ;;  %v10839_v50 = vld [vmem:[#allocation11 + $0x668] ss:$24 sps:$4 sm:$0xff]   ;;  %v10847_v37 = vld [vmem:[#allocation11 + $0x63c] ss:$24 sps:$4 sm:$0xff]  }
 0x3ec   :  { %v12208_v26 = vadd.f32 %v12133_v11, %v4735_v52  ;;  %6967 = vmatprep.subr.bf16.mxu1 %v10778_v57 }
 0x3ed   :  { %v4737_v54 = vpop.f32.mrf.mxu1 }
 0x3ee   :  { %v12211_v22 = vadd.f32 %v12140_v17, %v4737_v54  ;;  %v10785_v17 = vld [vmem:[#allocation11 + $0x2a8] ss:$24 sps:$4 sm:$0xff]  }
 0x3ef   :  { %6968 = vmatpush1.bf16.msra.mxu1 %v10776_v14  ;;  %v4741_v16 = vpop.f32.mrf.mxu1 }
 0x3f0   :  { %v12214_v55 = vadd.f32 %v12145_v6, %v4741_v16  ;;  %6969 = vmatprep.subr.bf16.mxu1 %v10781_v12  ;;  %v10793_v6 = vld [vmem:[#allocation11 + $0x24c] ss:$24 sps:$4 sm:$0xff]   ;;  %v10845_v16 = vld [vmem:[#allocation11 + $0x638] ss:$24 sps:$4 sm:$0xff]  }
 0x3f1   :  { %v4743_v47 = vpop.f32.mrf.mxu1 }
 0x3f2   :  { %v12217_v45 = vadd.f32 %v12151_v15, %v4743_v47  ;;  %v10794_v15 = vld [vmem:[#allocation11 + $0x218] ss:$24 sps:$4 sm:$0xff]  }
 0x3f3   :  { %6970 = vmatpush1.bf16.msra.mxu1 %v10779_v2  ;;  %v4745_v11 = vpop.f32.mrf.mxu1 }
 0x3f4   :  { %6971 = vmatprep.subr.bf16.mxu1 %v10784_v1  ;;  %v10853_v1 = vld [vmem:[#allocation11 + $0x60c] ss:$24 sps:$4 sm:$0xff]  }
 0x3f5   :  { %v4746_v56 = vpop.f32.mrf.mxu1 }
 0x3f7   :  { %6972 = vmatpush2.bf16.msra.mxu1 %v10782_v48 }
 0x3f8   :  { %6973 = vmatprep.subr.bf16.mxu1 %v10787_v28 }
 0x3fb   :  { %6974 = vmatpush2.bf16.msra.mxu1 %v10785_v17  ;;  %v10851_v17 = vld [vmem:[#allocation11 + $0x608] ss:$24 sps:$4 sm:$0xff]  }
 0x3fc   :  { %6975 = vmatprep.subr.bf16.mxu1 %v10790_v59 }
 0x3ff   :  { %6976 = vmatpush2.bf16.msra.mxu1 %v10788_v40 }
 0x400   :  { %6977 = vmatprep.subr.bf16.mxu1 %v10793_v6 }
 0x403   :  { %6978 = vmatpush2.bf16.msra.mxu1 %v10791_v58  ;;  %v10859_v58 = vld [vmem:[#allocation11 + $0x8dc] ss:$24 sps:$4 sm:$0xff]  }
 0x404   :  { %6979 = vmatprep.subr.bf16.mxu1 %v10796_v5 }
 0x407   :  { %6980 = vmatpush2.bf16.msra.mxu1 %v10794_v15 }
 0x408   :  { %6981 = vmatprep.subr.bf16.mxu1 %v10799_v23 }
 0x40b   :  { %6982 = vmatpush2.bf16.msra.mxu1 %v10797_v9 }
 0x40c   :  { %6983 = vmatprep.subr.bf16.mxu1 %v10802_v29 }
 0x40f   :  { %6984 = vmatpush2.bf16.msra.mxu1 %v10800_v31 }
 0x410   :  { %6985 = vmatprep.subr.bf16.mxu1 %v10805_v10 }
 0x413   :  { %6986 = vmatpush2.bf16.msra.mxu1 %v10803_v8 }
 0x414   :  { %7057 = vmatprep.subr.bf16.mxu1 %v10811_v21 }
 0x416   :  { %6988 = vmatmul.mubr.bf16.vlgmr.msra.gmra.mxu1 %v12111_v19 }
 0x417   :  { %6997 = vmatprep.mubr.bf16.mxu1 %v12116_v62  ;;  %7058 = vmatpush1.bf16.msra.mxu1 %v10809_v53  ;;  %v10857_v53 = vld [vmem:[#allocation11 + $0x8d8] ss:$24 sps:$4 sm:$0xff]  }
 0x418   :  { %7059 = vmatprep.subr.bf16.mxu1 %v10817_v32 }
 0x41b   :  { %7060 = vmatpush1.bf16.msra.mxu1 %v10815_v33 }
 0x41c   :  { %7061 = vmatprep.subr.bf16.mxu1 %v10823_v41  ;;  %v10865_v41 = vld [vmem:[#allocation11 + $0x8ac] ss:$24 sps:$4 sm:$0xff]  }
 0x41e   :  { %6998 = vmatmul.mubr.bf16.gmra.mxu1 %v12120_v27 }
 0x41f   :  { %7062 = vmatpush1.bf16.msra.mxu1 %v10821_v39 }
 0x420   :  { %7063 = vmatprep.subr.bf16.mxu1 %v10829_v34 }
 0x423   :  { %7064 = vmatpush1.bf16.msra.mxu1 %v10827_v42 }
 0x424   :  { %7065 = vmatprep.subr.bf16.mxu1 %v10835_v35 }
 0x427   :  { %7066 = vmatpush1.bf16.msra.mxu1 %v10833_v36  ;;  %v4833_v18 = vpop.f32.mrf.mxu1 }
 0x428   :  { %v4834_v57 = vadd.f32 %v4833_v18, %v12202_v13  ;;  %7067 = vmatprep.subr.bf16.mxu1 %v10841_v25  ;;  %v5015_v25 = vrot.slane %v12077_v3, %v11929_v49 }
 0x429   :  { %v4835_v52 = vpop.f32.mrf.mxu1 }
 0x42a   :  { %v4836_v14 = vadd.f32 %v4835_v52, %v12205_v0  ;;  %v4854_v12 = vmul.f32 %v11748_v20, %v4834_v57 }
 0x42b   :  { %7068 = vmatpush1.bf16.msra.mxu1 %v10839_v50  ;;  %v4837_v54 = vpop.f32.mrf.mxu1 }
 0x42c   :  { %v4838_v2 = vadd.f32 %v4837_v54, %v12208_v26  ;;  %7069 = vmatprep.subr.bf16.mxu1 %v10847_v37  ;;  %v12227_v47 = vmul.f32 %v11748_v20, %v4836_v14  ;;  %v4872_v28 = vrot.slane %v4854_v12, 7  ;;  %v4926_v56 = vrot.slane %v4854_v12, 1  ;;  %v10863_v37 = vld [vmem:[#allocation11 + $0x8a8] ss:$24 sps:$4 sm:$0xff]  }
 0x42d   :  { %v4839_v11 = vpop.f32.mrf.mxu1 }
 0x42e   :  { %v4860_v13 = vmul.f32 %v11754_v24, %v4838_v2  ;;  %v4840_v48 = vadd.f32 %v4839_v11, %v12211_v22  ;;  %v4873_v5 = vrot.slane %v12227_v47, 7  ;;  %v4927_v15 = vrot.slane %v12227_v47, 1  ;;  %v10871_v2 = vld [vmem:[#allocation11 + $0x87c] ss:$24 sps:$4 sm:$0xff]  }
 0x42f   :  { %7070 = vmatpush1.bf16.msra.mxu1 %v10845_v16  ;;  %v4843_v0 = vpop.f32.mrf.mxu1 }
 0x430   :  { %v4878_v59 = vrot.slane %v4860_v13, 7  ;;  %v4932_v40 = vrot.slane %v4860_v13, 1  ;;  %v4861_v6 = vmul.f32 %v11754_v24, %v4840_v48  ;;  %v4844_v26 = vadd.f32 %v4843_v0, %v12214_v55  ;;  %7071 = vmatprep.subr.bf16.mxu1 %v10853_v1 }
 0x431   :  { %v4845_v23 = vpop.f32.mrf.mxu1 }
 0x432   :  { %v4896_v22 = vsel %vm2473_vm2, %v4872_v28, %v4878_v59  ;;  %v4950_v9 = vsel %vm2528_vm3, %v4926_v56, %v4932_v40  ;;  %v4879_v29 = vrot.slane %v4861_v6, 7  ;;  %v4933_v31 = vrot.slane %v4861_v6, 1 }
 0x433   :  { %v4914_v10 = vadd.f32 %v4896_v22, %v4860_v13  ;;  %v4866_v8 = vmul.f32 0.0, %v4844_v26  ;;  %7072 = vmatpush1.bf16.msra.mxu1 %v10851_v17  ;;  %v4846_v55 = vadd.f32 %v4845_v23, %v12217_v45  ;;  %v4847_v21 = vpop.f32.mrf.mxu1 }
 0x434   :  { %v4897_v32 = vsel %vm2473_vm2, %v4873_v5, %v4879_v29  ;;  %v4951_v33 = vsel %vm2528_vm3, %v4927_v15, %v4933_v31  ;;  %7073 = vmatprep.subr.bf16.mxu1 %v10859_v58  ;;  %v10877_v58 = vld [vmem:[#allocation11 + $0x84c] ss:$24 sps:$4 sm:$0xff]  }
 0x435   :  { %v4915_v39 = vadd.f32 %v4897_v32, %v4861_v6  ;;  %v4884_v34 = vrot.slane %v4866_v8, 7  ;;  %v4938_v42 = vrot.slane %v4866_v8, 1  ;;  %v4867_v35 = vmul.f32 0.0, %v4846_v55  ;;  %v4848_v36 = vpop.f32.mrf.mxu1 }
 0x436   :  { %v10901_v36 = vld [vmem:[#allocation11 + $0x78c] ss:$24 sps:$4 sm:$0xff]  }
 0x437   :  { %v4890_v45 = vsel %vm2473_vm2, %v4878_v59, %v4884_v34  ;;  %v4902_v18 = vsel %vm2473_vm2, %v4884_v34, %v4872_v28  ;;  %v4944_v50 = vsel %vm2528_vm3, %v4932_v40, %v4938_v42  ;;  %v4956_v57 = vsel %vm2528_vm3, %v4938_v42, %v4926_v56  ;;  %7074 = vmatpush2.bf16.msra.mxu1 %v10857_v53  ;;  %v10869_v59 = vld [vmem:[#allocation11 + $0x878] ss:$24 sps:$4 sm:$0xff]   ;;  %v10895_v34 = vld [vmem:[#allocation11 + $0x7bc] ss:$24 sps:$4 sm:$0xff]  }
 0x438   :  { %v4908_v52 = vadd.f32 %v4902_v18, %v4854_v12  ;;  %v4920_v14 = vadd.f32 %v4890_v45, %v4866_v8  ;;  %v4968_v54 = vadd.f32 %v4944_v50, %v4914_v10  ;;  %v4885_v16 = vrot.slane %v4867_v35, 7  ;;  %7075 = vmatprep.subr.bf16.mxu1 %v10865_v41  ;;  %v10875_v10 = vld [vmem:[#allocation11 + $0x848] ss:$24 sps:$4 sm:$0xff]   ;;  %v10893_v42 = vld [vmem:[#allocation11 + $0x7b8] ss:$24 sps:$4 sm:$0xff]  }
 0x439   :  { %v4939_v1 = vrot.slane %v4867_v35, 1  ;;  %v10887_v41 = vld [vmem:[#allocation11 + $0x7e8] ss:$24 sps:$4 sm:$0xff]  }
 0x43a   :  { %v4962_v11 = vadd.f32 %v4950_v9, %v4908_v52  ;;  %v4974_v13 = vadd.f32 %v4956_v57, %v4920_v14  ;;  %v4986_v48 = vmul.f32 %v11754_v24, %v4968_v54  ;;  %v4891_v28 = vsel %vm2473_vm2, %v4879_v29, %v4885_v16  ;;  %v10899_v50 = vld [vmem:[#allocation11 + $0x788] ss:$24 sps:$4 sm:$0xff]   ;;  %v10907_v52 = vld [vmem:[#allocation11 + $0x464] ss:$24 sps:$4 sm:$0xff]  }
 0x43b   :  { %v4903_v0 = vsel %vm2473_vm2, %v4885_v16, %v4873_v5  ;;  %v4921_v56 = vadd.f32 %v4891_v28, %v4867_v35  ;;  %v4945_v12 = vsel %vm2528_vm3, %v4933_v31, %v4939_v1  ;;  %v4957_v17 = vsel %vm2528_vm3, %v4939_v1, %v4927_v15  ;;  %7076 = vmatpush2.bf16.msra.mxu1 %v10863_v37  ;;  %v10910_v16 = vld [vmem:[#allocation11 + $0x42c] ss:$24 sps:$4 sm:$0xff]   ;;  %v10905_v1 = vld [vmem:[#allocation11 + $0x460] ss:$24 sps:$4 sm:$0xff]  }
 0x43c   :  { %v4980_v40 = vmul.f32 %v11748_v20, %v4962_v11  ;;  %v5036_v6 = vadd.f32 %v5015_v25, %v4986_v48  ;;  %v4909_v26 = vadd.f32 %v4903_v0, %v12227_v47  ;;  %7077 = vmatprep.subr.bf16.mxu1 %v10871_v2  ;;  %v4969_v23 = vadd.f32 %v4945_v12, %v4915_v39  ;;  %v10883_v47 = vld [vmem:[#allocation11 + $0x81c] ss:$24 sps:$4 sm:$0xff]   ;;  %v10908_v48 = vld [vmem:[#allocation11 + $0x428] ss:$24 sps:$4 sm:$0xff]  }
 0x43d   :  { %v4975_v22 = vadd.f32 %v4957_v17, %v4921_v56  ;;  %v5019_v5 = vrot.slane %v12077_v3, %v11960_v63  ;;  %v4992_v32 = vmul.f32 0.0, %v4974_v13  ;;  %v10881_v3 = vld [vmem:[#allocation11 + $0x818] ss:$24 sps:$4 sm:$0xff]   ;;  %v10913_v13 = vld [vmem:[#allocation11 + $0x434] ss:$24 sps:$4 sm:$0xff]  }
 0x43e   :  { %v5030_v9 = vadd.f32 %v5015_v25, %v4980_v40  ;;  %v4963_v29 = vadd.f32 %v4951_v33, %v4909_v26  ;;  %11254 = vtanh.f32 %v5036_v6  ;;  %v4987_v31 = vmul.f32 %v11754_v24, %v4969_v23  ;;  %v10889_v33 = vld [vmem:[#allocation11 + $0x7ec] ss:$24 sps:$4 sm:$0xff]   ;;  %v10916_v0 = vld [vmem:[#allocation11 + $0x3fc] ss:$24 sps:$4 sm:$0xff]   ;;  %v10911_v12 = vld [vmem:[#allocation11 + $0x430] ss:$24 sps:$4 sm:$0xff]  }
 0x43f   :  { %v4993_v15 = vmul.f32 0.0, %v4975_v22  ;;  %7078 = vmatpush2.bf16.msra.mxu1 %v10869_v59  ;;  %v5042_v39 = vadd.f32 %v5015_v25, %v4992_v32  ;;  %v10902_v25 = vld [vmem:[#allocation11 + $0x458] ss:$24 sps:$4 sm:$0xff]   ;;  %v10919_v59 = vld [vmem:[#allocation11 + $0x404] ss:$24 sps:$4 sm:$0xff]  }
 0x440   :  { %11256 = vtanh.f32 %v5030_v9  ;;  %v4981_v8 = vmul.f32 %v11748_v20, %v4963_v29  ;;  %7079 = vmatprep.subr.bf16.mxu1 %v10877_v58  ;;  %v5037_v55 = vadd.f32 %v5019_v5, %v4987_v31  ;;  %v10914_v40 = vld [vmem:[#allocation11 + $0x3f8] ss:$24 sps:$4 sm:$0xff]   ;;  %v10922_v58 = vld [vmem:[#allocation11 + $0x3cc] ss:$24 sps:$4 sm:$0xff]   ;;  %v10920_v9 = vld [vmem:[#allocation11 + $0x3c8] ss:$24 sps:$4 sm:$0xff]  }
 0x441   :  { %v5043_v21 = vadd.f32 %v5019_v5, %v4993_v15  ;;  %v10917_v23 = vld [vmem:[#allocation11 + $0x400] ss:$24 sps:$4 sm:$0xff]   ;;  %v10928_v31 = vld [vmem:[#allocation11 + $0x39c] ss:$24 sps:$4 sm:$0xff]   ;;  %v10923_v15 = vld [vmem:[#allocation11 + $0x3d0] ss:$24 sps:$4 sm:$0xff]  }
 0x442   :  { %v5031_v53 = vadd.f32 %v5019_v5, %v4981_v8  ;;  %11258 = vtanh.f32 %v5037_v55  ;;  %v10925_v5 = vld [vmem:[#allocation11 + $0x3d4] ss:$24 sps:$4 sm:$0xff]   ;;  %v10931_v8 = vld [vmem:[#allocation11 + $0x3a4] ss:$24 sps:$4 sm:$0xff]  }
 0x443   :  { %7080 = vmatpush2.bf16.msra.mxu1 %v10875_v10  ;;  %v10937_v32 = vld [vmem:[#allocation11 + $0x374] ss:$24 sps:$4 sm:$0xff]  }
 0x444   :  { %11260 = vtanh.f32 %v5031_v53  ;;  %7081 = vmatprep.subr.bf16.mxu1 %v10883_v47  ;;  %v10926_v47 = vld [vmem:[#allocation11 + $0x398] ss:$24 sps:$4 sm:$0xff]  }
 0x445   :  { %11262 = vtanh.f32 %v5043_v21  ;;  %v10934_v21 = vld [vmem:[#allocation11 + $0x36c] ss:$24 sps:$4 sm:$0xff]   ;;  %v10929_v53 = vld [vmem:[#allocation11 + $0x3a0] ss:$24 sps:$4 sm:$0xff]  }
 0x446   :  { %11264 = vtanh.f32 %v5042_v39  ;;  %v10938_v39 = vld [vmem:[#allocation11 + $0x338] ss:$24 sps:$4 sm:$0xff]  }
 0x447   :  { %7082 = vmatpush2.bf16.msra.mxu1 %v10881_v3  ;;  %v10932_v3 = vld [vmem:[#allocation11 + $0x368] ss:$24 sps:$4 sm:$0xff]  }
 0x448   :  { %7083 = vmatprep.subr.bf16.mxu1 %v10889_v33  ;;  %v10940_v33 = vld [vmem:[#allocation11 + $0x33c] ss:$24 sps:$4 sm:$0xff]  }
 0x44b   :  { %7084 = vmatpush2.bf16.msra.mxu1 %v10887_v41  ;;  %v11255_v35 = vpop.eup %11254  ;;  %v10935_v41 = vld [vmem:[#allocation11 + $0x370] ss:$24 sps:$4 sm:$0xff]  }
 0x44c   :  { %7085 = vmatprep.subr.bf16.mxu1 %v10895_v34  ;;  %v10946_v34 = vld [vmem:[#allocation11 + $0x30c] ss:$24 sps:$4 sm:$0xff]  }
 0x44d   :  { %v11257_v45 = vpop.eup %11256 }
 0x44e   :  { %v12269_v18 = vpack.c.bf16 %v11255_v35, %v11257_v45  ;;  %v10949_v35 = vld [vmem:[#allocation11 + $0x314] ss:$24 sps:$4 sm:$0xff]  }
 0x44f   :  { %7086 = vmatpush2.bf16.msra.mxu1 %v10893_v42  ;;  %v11259_v57 = vpop.eup %11258  ;;  %v10941_v42 = vld [vmem:[#allocation11 + $0x340] ss:$24 sps:$4 sm:$0xff]   ;;  %v10952_v45 = vld [vmem:[#allocation11 + $0x5dc] ss:$24 sps:$4 sm:$0xff]  }
 0x450   :  { %7087 = vmatprep.subr.bf16.mxu1 %v10901_v36  ;;  %v10944_v36 = vld [vmem:[#allocation11 + $0x308] ss:$24 sps:$4 sm:$0xff]  }
 0x451   :  { %v11261_v37 = vpop.eup %11260 }
 0x452   :  { %v11263_v14 = vpop.eup %11262  ;;  %v12271_v54 = vpack.c.bf16 %v11259_v57, %v11261_v37  ;;  %v10955_v57 = vld [vmem:[#allocation11 + $0x5e4] ss:$24 sps:$4 sm:$0xff]   ;;  %v10950_v37 = vld [vmem:[#allocation11 + $0x5d8] ss:$24 sps:$4 sm:$0xff]  }
 0x453   :  { %7088 = vmatpush2.bf16.msra.mxu1 %v10899_v50  ;;  %v12275_v2 = vpack.c.bf16 %v11263_v14, %v11263_v14  ;;  %v11265_v56 = vpop.eup %11264  ;;  %v10947_v50 = vld [vmem:[#allocation11 + $0x310] ss:$24 sps:$4 sm:$0xff]   ;;  %v10953_v14 = vld [vmem:[#allocation11 + $0x5e0] ss:$24 sps:$4 sm:$0xff]  }
 0x454   :  { %6936 = vmatprep.mubr.bf16.mxu0 %v12271_v54  ;;  %7089 = vmatprep.mubr.bf16.mxu1 %v12271_v54  ;;  %v12289_v26 = vpack.c.bf16 %v11265_v56, %v11265_v56  ;;  %v10970_v56 = vld [vmem:[#allocation11 + $0x54c] ss:$24 sps:$4 sm:$0xff]  }
 0x455   :  { %6937 = vmatmul.mubr.bf16.vlgmr.msra.gmra.mxu0 %v12269_v18  ;;  %v12278_v11 = vpop.f32.mrf.mxu0  ;;  %7159 = vmatprep.subr.bf16.mxu1 %v10907_v52  ;;  %v10958_v52 = vld [vmem:[#allocation11 + $0x5ac] ss:$24 sps:$4 sm:$0xff]  }
 0x456   :  { %7007 = vmatpush1.bf16.msra.mxu0 %v10902_v25  ;;  %6946 = vmatprep.mubr.bf16.mxu0 %v12275_v2  ;;  %v10961_v25 = vld [vmem:[#allocation11 + $0x5b4] ss:$24 sps:$4 sm:$0xff]  }
 0x457   :  { %7090 = vmatmul.mubr.bf16.vlgmr.msra.gmra.mxu1 %v12269_v18  ;;  %v12282_v28 = vpop.f32.mrf.mxu0  ;;  %7008 = vmatprep.subr.bf16.mxu0 %v10910_v16  ;;  %v10956_v16 = vld [vmem:[#allocation11 + $0x5a8] ss:$24 sps:$4 sm:$0xff]  }
 0x458   :  { %7099 = vmatprep.mubr.bf16.mxu1 %v12275_v2  ;;  %7160 = vmatpush1.bf16.msra.mxu1 %v10905_v1  ;;  %v10964_v1 = vld [vmem:[#allocation11 + $0x57c] ss:$24 sps:$4 sm:$0xff]  }
 0x459   :  { %v12285_v17 = vpop.f32.mrf.mxu0  ;;  %7161 = vmatprep.subr.bf16.mxu1 %v10913_v13  ;;  %v10959_v13 = vld [vmem:[#allocation11 + $0x5b0] ss:$24 sps:$4 sm:$0xff]  }
 0x45a   :  { %7009 = vmatpush1.bf16.msra.mxu0 %v10908_v48  ;;  %v10967_v48 = vld [vmem:[#allocation11 + $0x584] ss:$24 sps:$4 sm:$0xff]  }
 0x45b   :  { %v12287_v6 = vpop.f32.mrf.mxu0  ;;  %7010 = vmatprep.subr.bf16.mxu0 %v10916_v0  ;;  %v10962_v0 = vld [vmem:[#allocation11 + $0x578] ss:$24 sps:$4 sm:$0xff]  }
 0x45c   :  { %7162 = vmatpush1.bf16.msra.mxu1 %v10911_v12  ;;  %v10965_v12 = vld [vmem:[#allocation11 + $0x580] ss:$24 sps:$4 sm:$0xff]  }
 0x45d   :  { %6947 = vmatmul.mubr.bf16.gmra.mxu0 %v12289_v26  ;;  %v12292_v22 = vpop.f32.mrf.mxu0  ;;  %7163 = vmatprep.subr.bf16.mxu1 %v10919_v59  ;;  %v10973_v59 = vld [vmem:[#allocation11 + $0x554] ss:$24 sps:$4 sm:$0xff]  }
 0x45e   :  { %7011 = vmatpush1.bf16.msra.mxu0 %v10914_v40  ;;  %7038 = vmatprep.mubr.bf16.mxu0 %v12190_v61  ;;  %v10968_v40 = vld [vmem:[#allocation11 + $0x548] ss:$24 sps:$4 sm:$0xff]  }
 0x45f   :  { %7100 = vmatmul.mubr.bf16.gmra.mxu1 %v12289_v26  ;;  %v12296_v29 = vpop.f32.mrf.mxu0  ;;  %7012 = vmatprep.subr.bf16.mxu0 %v10922_v58  ;;  %v10976_v58 = vld [vmem:[#allocation11 + $0x51c] ss:$24 sps:$4 sm:$0xff]  }
 0x460   :  { %7164 = vmatpush1.bf16.msra.mxu1 %v10917_v23  ;;  %7191 = vmatprep.mubr.bf16.mxu1 %v12190_v61  ;;  %v10943_v61 = vld [vmem:[#allocation11 + $0x344] ss:$24 sps:$4 sm:$0xff]   ;;  %v10971_v23 = vld [vmem:[#allocation11 + $0x550] ss:$24 sps:$4 sm:$0xff]  }
 0x461   :  { %v6850_v10 = vpop.f32.mrf.mxu0  ;;  %7165 = vmatprep.subr.bf16.mxu1 %v10925_v5  ;;  %v10979_v5 = vld [vmem:[#allocation11 + $0x524] ss:$24 sps:$4 sm:$0xff]  }
 0x462   :  { %7013 = vmatpush1.bf16.msra.mxu0 %v10920_v9  ;;  %v10974_v9 = vld [vmem:[#allocation11 + $0x518] ss:$24 sps:$4 sm:$0xff]   ;;  %v10985_v10 = vld [vmem:[#allocation11 + $0x4f4] ss:$24 sps:$4 sm:$0xff]  }
 0x463   :  { %v6851_v55 = vpop.f32.mrf.mxu0  ;;  %7014 = vmatprep.subr.bf16.mxu0 %v10928_v31  ;;  %v10982_v31 = vld [vmem:[#allocation11 + $0x4ec] ss:$24 sps:$4 sm:$0xff]  }
 0x464   :  { %7166 = vmatpush1.bf16.msra.mxu1 %v10923_v15  ;;  %v10977_v15 = vld [vmem:[#allocation11 + $0x520] ss:$24 sps:$4 sm:$0xff]   ;;  %v10983_v55 = vld [vmem:[#allocation11 + $0x4f0] ss:$24 sps:$4 sm:$0xff]  }
 0x465   :  { %7167 = vmatprep.subr.bf16.mxu1 %v10931_v8  ;;  %v10980_v8 = vld [vmem:[#allocation11 + $0x4e8] ss:$24 sps:$4 sm:$0xff]  }
 0x466   :  { %7015 = vmatpush1.bf16.msra.mxu0 %v10926_v47  ;;  %v10988_v47 = vld [vmem:[#allocation11 + $0x4bc] ss:$24 sps:$4 sm:$0xff]  }
 0x467   :  { %7016 = vmatprep.subr.bf16.mxu0 %v10934_v21  ;;  %v10991_v21 = vld [vmem:[#allocation11 + $0x4c4] ss:$24 sps:$4 sm:$0xff]  }
 0x468   :  { %7168 = vmatpush1.bf16.msra.mxu1 %v10929_v53  ;;  %v10986_v53 = vld [vmem:[#allocation11 + $0x4b8] ss:$24 sps:$4 sm:$0xff]  }
 0x469   :  { %7169 = vmatprep.subr.bf16.mxu1 %v10937_v32  ;;  %v10994_v32 = vld [vmem:[#allocation11 + $0x48c] ss:$24 sps:$4 sm:$0xff]  }
 0x46a   :  { %7017 = vmatpush1.bf16.msra.mxu0 %v10932_v3  ;;  %v10989_v3 = vld [vmem:[#allocation11 + $0x4c0] ss:$24 sps:$4 sm:$0xff]  }
 0x46b   :  { %7018 = vmatprep.subr.bf16.mxu0 %v10940_v33  ;;  %v10997_v33 = vld [vmem:[#allocation11 + $0x494] ss:$24 sps:$4 sm:$0xff]  }
 0x46c   :  { %7170 = vmatpush1.bf16.msra.mxu1 %v10935_v41  ;;  %v10992_v41 = vld [vmem:[#allocation11 + $0x488] ss:$24 sps:$4 sm:$0xff]  }
 0x46d   :  { %7171 = vmatprep.subr.bf16.mxu1 %v10943_v61  ;;  %v11000_v61 = vld [vmem:[#allocation11 + $0x164] ss:$24 sps:$4 sm:$0xff]  }
 0x46e   :  { %7019 = vmatpush1.bf16.msra.mxu0 %v10938_v39  ;;  %v10995_v39 = vld [vmem:[#allocation11 + $0x490] ss:$24 sps:$4 sm:$0xff]  }
 0x46f   :  { %7020 = vmatprep.subr.bf16.mxu0 %v10946_v34  ;;  %v10998_v34 = vld [vmem:[#allocation11 + $0x160] ss:$24 sps:$4 sm:$0xff]  }
 0x470   :  { %7172 = vmatpush1.bf16.msra.mxu1 %v10941_v42  ;;  %v11003_v42 = vld [vmem:[#allocation11 + $0x134] ss:$24 sps:$4 sm:$0xff]  }
 0x471   :  { %7173 = vmatprep.subr.bf16.mxu1 %v10949_v35 }
 0x472   :  { %7021 = vmatpush1.bf16.msra.mxu0 %v10944_v36  ;;  %v11001_v36 = vld [vmem:[#allocation11 + $0x130] ss:$24 sps:$4 sm:$0xff]  }
 0x473   :  { %7022 = vmatprep.subr.bf16.mxu0 %v10952_v45 }
 0x474   :  { %7174 = vmatpush1.bf16.msra.mxu1 %v10947_v50  ;;  %v11006_v50 = vld [vmem:[#allocation11 + $0x104] ss:$24 sps:$4 sm:$0xff]  }
 0x475   :  { %7175 = vmatprep.subr.bf16.mxu1 %v10955_v57 }
 0x476   :  { %7023 = vmatpush2.bf16.msra.mxu0 %v10950_v37 }
 0x477   :  { %7024 = vmatprep.subr.bf16.mxu0 %v10958_v52 }
 0x478   :  { %7176 = vmatpush2.bf16.msra.mxu1 %v10953_v14  ;;  %v11004_v14 = vld [vmem:[#allocation11 + $0x100] ss:$24 sps:$4 sm:$0xff]  }
 0x479   :  { %7177 = vmatprep.subr.bf16.mxu1 %v10961_v25 }
 0x47a   :  { %7025 = vmatpush2.bf16.msra.mxu0 %v10956_v16  ;;  %v11009_v16 = vld [vmem:[#allocation11 + $0xd4] ss:$24 sps:$4 sm:$0xff]  }
 0x47b   :  { %7026 = vmatprep.subr.bf16.mxu0 %v10964_v1 }
 0x47c   :  { %7178 = vmatpush2.bf16.msra.mxu1 %v10959_v13 }
 0x47d   :  { %7179 = vmatprep.subr.bf16.mxu1 %v10967_v48 }
 0x47e   :  { %7027 = vmatpush2.bf16.msra.mxu0 %v10962_v0 }
 0x47f   :  { %7028 = vmatprep.subr.bf16.mxu0 %v10970_v56  ;;  %v11015_v56 = vld [vmem:[#allocation11 + $0x74] ss:$24 sps:$4 sm:$0xff]  }
 0x480   :  { %7180 = vmatpush2.bf16.msra.mxu1 %v10965_v12 }
 0x481   :  { %7181 = vmatprep.subr.bf16.mxu1 %v10973_v59  ;;  %v11013_v59 = vld [vmem:[#allocation11 + $0x70] ss:$24 sps:$4 sm:$0xff]  }
 0x482   :  { %7029 = vmatpush2.bf16.msra.mxu0 %v10968_v40  ;;  %v11095_v40 = vld [vmem:[#allocation16 + $0x38] sm:$0xff]  }
 0x483   :  { %7030 = vmatprep.subr.bf16.mxu0 %v10976_v58  ;;  %v11016_v58 = vld [vmem:[#allocation11 + $0x40] ss:$24 sps:$4 sm:$0xff]  }
 0x484   :  { %7182 = vmatpush2.bf16.msra.mxu1 %v10971_v23  ;;  %v11097_v23 = vld [vmem:[#allocation16 + $0x30] sm:$0xff]  }
 0x485   :  { %7183 = vmatprep.subr.bf16.mxu1 %v10979_v5  ;;  %v11098_v5 = vld [vmem:[#allocation16 + $0x68] sm:$0xff]  }
 0x486   :  { %7031 = vmatpush2.bf16.msra.mxu0 %v10974_v9  ;;  %v11019_v9 = vld [vmem:[#allocation11 + $0x10] ss:$24 sps:$4 sm:$0xff]  }
 0x487   :  { %7032 = vmatprep.subr.bf16.mxu0 %v10982_v31  ;;  %v11099_v31 = vld [vmem:[#allocation16 + $0x28] sm:$0xff]  }
 0x488   :  { %7184 = vmatpush2.bf16.msra.mxu1 %v10977_v15  ;;  %v11024_v15 = vld [vmem:[#allocation11 + $0x2e4] ss:$24 sps:$4 sm:$0xff]  }
 0x489   :  { %7185 = vmatprep.subr.bf16.mxu1 %v10985_v10  ;;  %v11100_v10 = vld [vmem:[#allocation16 + $0x60] sm:$0xff]  }
 0x48a   :  { %7033 = vmatpush2.bf16.msra.mxu0 %v10980_v8  ;;  %v11022_v8 = vld [vmem:[#allocation11 + $0x2e0] ss:$24 sps:$4 sm:$0xff]  }
 0x48b   :  { %7034 = vmatprep.subr.bf16.mxu0 %v10988_v47  ;;  %v11101_v47 = vld [vmem:[#allocation16 + $0x20] sm:$0xff]  }
 0x48c   :  { %7186 = vmatpush2.bf16.msra.mxu1 %v10983_v55  ;;  %v11027_v55 = vld [vmem:[#allocation11 + $0x2b4] ss:$24 sps:$4 sm:$0xff]  }
 0x48d   :  { %7187 = vmatprep.subr.bf16.mxu1 %v10991_v21  ;;  %v11102_v21 = vld [vmem:[#allocation16 + $0x58] sm:$0xff]  }
 0x48e   :  { %7035 = vmatpush2.bf16.msra.mxu0 %v10986_v53  ;;  %v11103_v53 = vld [vmem:[#allocation16 + $0x18] sm:$0xff]  }
 0x48f   :  { %7036 = vmatprep.subr.bf16.mxu0 %v10994_v32  ;;  %v11104_v32 = vld [vmem:[#allocation16 + $0x50] sm:$0xff]  }
 0x490   :  { %7188 = vmatpush2.bf16.msra.mxu1 %v10989_v3  ;;  %v11025_v3 = vld [vmem:[#allocation11 + $0x2b0] ss:$24 sps:$4 sm:$0xff]  }
 0x491   :  { %7189 = vmatprep.subr.bf16.mxu1 %v10997_v33  ;;  %v11030_v33 = vld [vmem:[#allocation11 + $0x284] ss:$24 sps:$4 sm:$0xff]  }
 0x492   :  { %7037 = vmatpush2.bf16.msra.mxu0 %v10992_v41  ;;  %v11105_v41 = vld [vmem:[#allocation16 + $0x10] sm:$0xff]  }
 0x493   :  { %7108 = vmatprep.subr.bf16.mxu0 %v11000_v61  ;;  %v11106_v61 = vld [vmem:[#allocation16 + $0x48] sm:$0xff]  }
 0x494   :  { %7190 = vmatpush2.bf16.msra.mxu1 %v10995_v39  ;;  %v11028_v39 = vld [vmem:[#allocation11 + $0x280] ss:$24 sps:$4 sm:$0xff]  }
 0x495   :  { %7039 = vmatmul.mubr.bf16.vlgmr.msra.gmra.mxu0 %v12188_v51 }
 0x496   :  { %7048 = vmatprep.mubr.bf16.mxu0 %v12193_v44  ;;  %7109 = vmatpush1.bf16.msra.mxu0 %v10998_v34  ;;  %v6887_v35 = vpop.f32.mrf.mxu1  ;;  %v11033_v34 = vld [vmem:[#allocation11 + $0x254] ss:$24 sps:$4 sm:$0xff]  }
 0x497   :  { %7192 = vmatmul.mubr.bf16.vlgmr.msra.gmra.mxu1 %v12188_v51  ;;  %v12303_v45 = vadd.f32 %v6887_v35, %v12278_v11  ;;  %7110 = vmatprep.subr.bf16.mxu0 %v11003_v42  ;;  %v11107_v42 = vld [vmem:[#allocation16 + $0x8] sm:$0xff]   ;;  %v11108_v35 = vld [vmem:[#allocation16 + $0x40] sm:$0xff]  }
 0x498   :  { %7201 = vmatprep.mubr.bf16.mxu1 %v12193_v44  ;;  %v6889_v57 = vpop.f32.mrf.mxu1 }
 0x499   :  { %v12307_v37 = vadd.f32 %v6889_v57, %v12282_v28  ;;  %v11007_v28 = vld [vmem:[#allocation11 + $0xd0] ss:$24 sps:$4 sm:$0xff]  }
 0x49a   :  { %7111 = vmatpush1.bf16.msra.mxu0 %v11001_v36  ;;  %v6891_v52 = vpop.f32.mrf.mxu1  ;;  %v11031_v36 = vld [vmem:[#allocation11 + $0x250] ss:$24 sps:$4 sm:$0xff]  }
 0x49b   :  { %v12310_v25 = vadd.f32 %v6891_v52, %v12285_v17  ;;  %7112 = vmatprep.subr.bf16.mxu0 %v11006_v50  ;;  %v11012_v17 = vld [vmem:[#allocation11 + $0xa4] ss:$24 sps:$4 sm:$0xff]   ;;  %v11034_v52 = vld [vmem:[#allocation11 + $0x220] ss:$24 sps:$4 sm:$0xff]  }
 0x49c   :  { %v6893_v51 = vpop.f32.mrf.mxu1  ;;  %v11036_v50 = vld [vmem:[#allocation11 + $0x224] ss:$24 sps:$4 sm:$0xff]  }
 0x49d   :  { %7049 = vmatmul.mubr.bf16.gmra.mxu0 %v12197_v30  ;;  %v12314_v11 = vadd.f32 %v6893_v51, %v12287_v6  ;;  %v11010_v6 = vld [vmem:[#allocation11 + $0xa0] ss:$24 sps:$4 sm:$0xff]   ;;  %v11109_v57 = vld [vmem:[#allocation16] sm:$0xff]  }
 0x49e   :  { %7113 = vmatpush1.bf16.msra.mxu0 %v11004_v14  ;;  %7140 = vmatprep.mubr.bf16.mxu0 %v12113_v4  ;;  %v6897_v44 = vpop.f32.mrf.mxu1  ;;  %v11094_v4 = vld [vmem:[#allocation16 + $0x78] sm:$0xff]   ;;  %v11039_v14 = vld [vmem:[#allocation11 + $0x1f4] ss:$24 sps:$4 sm:$0xff]  }
 0x49f   :  { %7202 = vmatmul.mubr.bf16.gmra.mxu1 %v12197_v30  ;;  %v12319_v1 = vadd.f32 %v6897_v44, %v12292_v22  ;;  %7114 = vmatprep.subr.bf16.mxu0 %v11009_v16  ;;  %v11018_v30 = vld [vmem:[#allocation11 + $0x44] ss:$24 sps:$4 sm:$0xff]   ;;  %v11037_v16 = vld [vmem:[#allocation11 + $0x1f0] ss:$24 sps:$4 sm:$0xff]   ;;  %v11040_v44 = vld [vmem:[#allocation11 + $0x1c0] ss:$24 sps:$4 sm:$0xff]  }
 0x4a0   :  { %v6899_v13 = vpop.f32.mrf.mxu1  ;;  %9597 = vmatprep.subr.bf16.mxu1 %v11094_v4  ;;  %v11096_v22 = vld [vmem:[#allocation16 + $0x70] sm:$0xff]  }
 0x4a1   :  { %v12322_v48 = vadd.f32 %v6899_v13, %v12296_v29  ;;  %9598 = vmatpush3.bf16.msra.mxu1 %v11095_v40  ;;  %v11021_v29 = vld [vmem:[#allocation11 + $0x14] ss:$24 sps:$4 sm:$0xff]   ;;  %v11042_v51 = vld [vmem:[#allocation11 + $0x1c4] ss:$24 sps:$4 sm:$0xff]  }
 0x4a2   :  { %7115 = vmatpush1.bf16.msra.mxu0 %v11007_v28  ;;  %v6901_v0 = vpop.f32.mrf.mxu1  ;;  %9599 = vmatprep.subr.bf16.mxu1 %v11096_v22  ;;  %v11045_v28 = vld [vmem:[#allocation11 + $0x194] ss:$24 sps:$4 sm:$0xff]   ;;  %v11048_v13 = vld [vmem:[#allocation11 + $0x764] ss:$24 sps:$4 sm:$0xff]  }
 0x4a3   :  { %7116 = vmatprep.subr.bf16.mxu0 %v11012_v17  ;;  %v11043_v17 = vld [vmem:[#allocation11 + $0x190] ss:$24 sps:$4 sm:$0xff]   ;;  %v11046_v0 = vld [vmem:[#allocation11 + $0x760] ss:$24 sps:$4 sm:$0xff]   ;;  %v11054_v4 = vld [vmem:[#allocation11 + $0x704] ss:$24 sps:$4 sm:$0xff]  }
 0x4a4   :  { %v6902_v12 = vpop.f32.mrf.mxu1  ;;  %v11057_v22 = vld [vmem:[#allocation11 + $0x6d4] ss:$24 sps:$4 sm:$0xff]  }
 0x4a5   :  { %9600 = vmatpush3.bf16.msra.mxu1 %v11097_v23  ;;  %v11049_v12 = vld [vmem:[#allocation11 + $0x730] ss:$24 sps:$4 sm:$0xff]   ;;  %v11060_v23 = vld [vmem:[#allocation11 + $0x6a4] ss:$24 sps:$4 sm:$0xff]  }
 0x4a6   :  { %7117 = vmatpush1.bf16.msra.mxu0 %v11010_v6  ;;  %9601 = vmatprep.subr.bf16.mxu1 %v11098_v5  ;;  %v11051_v6 = vld [vmem:[#allocation11 + $0x734] ss:$24 sps:$4 sm:$0xff]  }
 0x4a7   :  { %7118 = vmatprep.subr.bf16.mxu0 %v11015_v56 }
 0x4a9   :  { %9602 = vmatpush3.bf16.msra.mxu1 %v11099_v31  ;;  %v11063_v31 = vld [vmem:[#allocation11 + $0x674] ss:$24 sps:$4 sm:$0xff]  }
 0x4aa   :  { %7119 = vmatpush1.bf16.msra.mxu0 %v11013_v59  ;;  %9603 = vmatprep.subr.bf16.mxu1 %v11100_v10  ;;  %v11110_v10 = vld [vmem:[#allocation16 + $0xf8] sm:$0xff]  }
 0x4ab   :  { %7120 = vmatprep.subr.bf16.mxu0 %v11018_v30  ;;  %v11052_v30 = vld [vmem:[#allocation11 + $0x700] ss:$24 sps:$4 sm:$0xff]  }
 0x4ad   :  { %9604 = vmatpush3.bf16.msra.mxu1 %v11101_v47  ;;  %v11069_v47 = vld [vmem:[#allocation11 + $0x614] ss:$24 sps:$4 sm:$0xff]  }
 0x4ae   :  { %7121 = vmatpush1.bf16.msra.mxu0 %v11016_v58  ;;  %9605 = vmatprep.subr.bf16.mxu1 %v11102_v21  ;;  %v11072_v21 = vld [vmem:[#allocation11 + $0x8e4] ss:$24 sps:$4 sm:$0xff]  }
 0x4af   :  { %7122 = vmatprep.subr.bf16.mxu0 %v11021_v29 }
 0x4b1   :  { %9606 = vmatpush3.bf16.msra.mxu1 %v11103_v53  ;;  %v11070_v53 = vld [vmem:[#allocation11 + $0x8e0] ss:$24 sps:$4 sm:$0xff]  }
 0x4b2   :  { %7123 = vmatpush1.bf16.msra.mxu0 %v11019_v9  ;;  %9607 = vmatprep.subr.bf16.mxu1 %v11104_v32  ;;  %v11058_v9 = vld [vmem:[#allocation11 + $0x6a0] ss:$24 sps:$4 sm:$0xff]   ;;  %v11075_v32 = vld [vmem:[#allocation11 + $0x8b4] ss:$24 sps:$4 sm:$0xff]  }
 0x4b3   :  { %7124 = vmatprep.subr.bf16.mxu0 %v11024_v15 }
 0x4b5   :  { %9608 = vmatpush3.bf16.msra.mxu1 %v11105_v41  ;;  %v11076_v41 = vld [vmem:[#allocation11 + $0x880] ss:$24 sps:$4 sm:$0xff]  }
 0x4b6   :  { %7125 = vmatpush2.bf16.msra.mxu0 %v11022_v8  ;;  %9609 = vmatprep.subr.bf16.mxu1 %v11106_v61  ;;  %v11061_v8 = vld [vmem:[#allocation11 + $0x670] ss:$24 sps:$4 sm:$0xff]   ;;  %v11081_v61 = vld [vmem:[#allocation11 + $0x854] ss:$24 sps:$4 sm:$0xff]  }
 0x4b7   :  { %7126 = vmatprep.subr.bf16.mxu0 %v11027_v55  ;;  %v11067_v55 = vld [vmem:[#allocation11 + $0x610] ss:$24 sps:$4 sm:$0xff]  }
 0x4b9   :  { %9610 = vmatpush3.bf16.msra.mxu1 %v11107_v42  ;;  %v11082_v42 = vld [vmem:[#allocation11 + $0x820] ss:$24 sps:$4 sm:$0xff]  }
 0x4ba   :  { %7127 = vmatpush2.bf16.msra.mxu0 %v11025_v3  ;;  %9611 = vmatprep.subr.bf16.mxu1 %v11108_v35  ;;  %v11073_v3 = vld [vmem:[#allocation11 + $0x8b0] ss:$24 sps:$4 sm:$0xff]   ;;  %v11087_v35 = vld [vmem:[#allocation11 + $0x7f4] ss:$24 sps:$4 sm:$0xff]  }
 0x4bb   :  { %7128 = vmatprep.subr.bf16.mxu0 %v11030_v33  ;;  %v11078_v33 = vld [vmem:[#allocation11 + $0x884] ss:$24 sps:$4 sm:$0xff]  }
 0x4bd   :  { %9612 = vmatpush3.bf16.msra.mxu1 %v11109_v57  ;;  %v11088_v57 = vld [vmem:[#allocation11 + $0x7c0] ss:$24 sps:$4 sm:$0xff]  }
 0x4be   :  { %7129 = vmatpush2.bf16.msra.mxu0 %v11028_v39  ;;  %9625 = vmatprep.subr.bf16.mxu1 %v11110_v10  ;;  %v11079_v39 = vld [vmem:[#allocation11 + $0x850] ss:$24 sps:$4 sm:$0xff]  }
 0x4bf   :  { %7130 = vmatprep.subr.bf16.mxu0 %v11033_v34  ;;  %v11084_v34 = vld [vmem:[#allocation11 + $0x824] ss:$24 sps:$4 sm:$0xff]  }
 0x4c2   :  { %7131 = vmatpush2.bf16.msra.mxu0 %v11031_v36  ;;  %v11085_v36 = vld [vmem:[#allocation11 + $0x7f0] ss:$24 sps:$4 sm:$0xff]  }
 0x4c3   :  { %7132 = vmatprep.subr.bf16.mxu0 %v11036_v50  ;;  %v11090_v50 = vld [vmem:[#allocation11 + $0x7c4] ss:$24 sps:$4 sm:$0xff]  }
 0x4c6   :  { %7133 = vmatpush2.bf16.msra.mxu0 %v11034_v52  ;;  %v11093_v52 = vld [vmem:[#allocation11 + $0x794] ss:$24 sps:$4 sm:$0xff]  }
 0x4c7   :  { %7134 = vmatprep.subr.bf16.mxu0 %v11039_v14  ;;  %v11091_v14 = vld [vmem:[#allocation11 + $0x790] ss:$24 sps:$4 sm:$0xff]  }
 0x4ca   :  { %7135 = vmatpush2.bf16.msra.mxu0 %v11037_v16 }
 0x4cb   :  { %7136 = vmatprep.subr.bf16.mxu0 %v11042_v51 }
 0x4ce   :  { %7137 = vmatpush2.bf16.msra.mxu0 %v11040_v44 }
 0x4cf   :  { %7138 = vmatprep.subr.bf16.mxu0 %v11045_v28 }
 0x4d2   :  { %7139 = vmatpush2.bf16.msra.mxu0 %v11043_v17 }
 0x4d3   :  { %7210 = vmatprep.subr.bf16.mxu0 %v11048_v13 }
 0x4d5   :  { %7141 = vmatmul.mubr.bf16.vlgmr.msra.gmra.mxu0 %v12111_v19 }
 0x4d6   :  { %7150 = vmatprep.mubr.bf16.mxu0 %v12116_v62  ;;  %7211 = vmatpush1.bf16.msra.mxu0 %v11046_v0  ;;  %v12326_v56 = vpop.f32.mrf.mxu1  ;;  %v11055_v62 = vld [vmem:[#allocation11 + $0x6d0] ss:$24 sps:$4 sm:$0xff]  }
 0x4d7   :  { %7212 = vmatprep.subr.bf16.mxu0 %v11051_v6 }
 0x4d8   :  { %v12328_v59 = vpop.f32.mrf.mxu1 }
 0x4da   :  { %7213 = vmatpush1.bf16.msra.mxu0 %v11049_v12  ;;  %v12330_v40 = vpop.f32.mrf.mxu1 }
 0x4db   :  { %7214 = vmatprep.subr.bf16.mxu0 %v11054_v4 }
 0x4dc   :  { %v12332_v58 = vpop.f32.mrf.mxu1 }
 0x4dd   :  { %7151 = vmatmul.mubr.bf16.gmra.mxu0 %v12120_v27  ;;  %v11066_v27 = vld [vmem:[#allocation11 + $0x644] ss:$24 sps:$4 sm:$0xff]  }
 0x4de   :  { %7215 = vmatpush1.bf16.msra.mxu0 %v11052_v30  ;;  %7242 = vmatprep.mubr.bf16.mxu0 %v12271_v54  ;;  %v12336_v19 = vpop.f32.mrf.mxu1  ;;  %v11064_v54 = vld [vmem:[#allocation11 + $0x640] ss:$24 sps:$4 sm:$0xff]  }
 0x4df   :  { %7216 = vmatprep.subr.bf16.mxu0 %v11057_v22 }
 0x4e0   :  { %v12338_v29 = vpop.f32.mrf.mxu1 }
 0x4e2   :  { %7217 = vmatpush1.bf16.msra.mxu0 %v11055_v62  ;;  %v7003_v5 = vpop.f32.mrf.mxu1 }
 0x4e3   :  { %7218 = vmatprep.subr.bf16.mxu0 %v11060_v23 }
 0x4e4   :  { %v7004_v15 = vpop.f32.mrf.mxu1 }
 0x4e6   :  { %7219 = vmatpush1.bf16.msra.mxu0 %v11058_v9 }
 0x4e7   :  { %7220 = vmatprep.subr.bf16.mxu0 %v11063_v31 }
 0x4ea   :  { %7221 = vmatpush1.bf16.msra.mxu0 %v11061_v8 }
 0x4eb   :  { %7222 = vmatprep.subr.bf16.mxu0 %v11066_v27 }
 0x4ee   :  { %7223 = vmatpush1.bf16.msra.mxu0 %v11064_v54 }
 0x4ef   :  { %7224 = vmatprep.subr.bf16.mxu0 %v11069_v47 }
 0x4f2   :  { %7225 = vmatpush1.bf16.msra.mxu0 %v11067_v55 }
 0x4f3   :  { %7226 = vmatprep.subr.bf16.mxu0 %v11072_v21 }
 0x4f6   :  { %7227 = vmatpush2.bf16.msra.mxu0 %v11070_v53  ;;  %v12366_v53 = vld [vmem:[#allocation13] sm:$0x3f] }
 0x4f7   :  { %7228 = vmatprep.subr.bf16.mxu0 %v11075_v32 }
 0x4fa   :  { %7229 = vmatpush2.bf16.msra.mxu0 %v11073_v3 }
 0x4fb   :  { %7230 = vmatprep.subr.bf16.mxu0 %v11078_v33 }
 0x4fe   :  { %7231 = vmatpush2.bf16.msra.mxu0 %v11076_v41 }
 0x4ff   :  { %7232 = vmatprep.subr.bf16.mxu0 %v11081_v61 }
 0x502   :  { %7233 = vmatpush2.bf16.msra.mxu0 %v11079_v39 }
 0x503   :  { %7234 = vmatprep.subr.bf16.mxu0 %v11084_v34 }
 0x506   :  { %7235 = vmatpush2.bf16.msra.mxu0 %v11082_v42 }
 0x507   :  { %7236 = vmatprep.subr.bf16.mxu0 %v11087_v35 }
 0x50a   :  { %7237 = vmatpush2.bf16.msra.mxu0 %v11085_v36 }
 0x50b   :  { %7238 = vmatprep.subr.bf16.mxu0 %v11090_v50  ;;  %v7410_v50 = vrot.slane %v12366_v53, %v11786_v43 }
 0x50e   :  { %7239 = vmatpush2.bf16.msra.mxu0 %v11088_v57 }
 0x50f   :  { %7240 = vmatprep.subr.bf16.mxu0 %v11093_v52 }
 0x512   :  { %7241 = vmatpush2.bf16.msra.mxu0 %v11091_v14 }
 0x515   :  { %7243 = vmatmul.mubr.bf16.vlgmr.msra.gmra.mxu0 %v12269_v18  ;;  %v6938_v16 = vpop.f32.mrf.mxu0 }
 0x516   :  { %v6939_v51 = vadd.f32 %v6938_v16, %v12303_v45  ;;  %7252 = vmatprep.mubr.bf16.mxu0 %v12275_v2 }
 0x517   :  { %v12343_v44 = vpop.f32.mrf.mxu1  ;;  %v6940_v28 = vpop.f32.mrf.mxu0 }
 0x518   :  { %v6941_v17 = vadd.f32 %v6940_v28, %v12307_v37  ;;  %v7261_v13 = vmul.f32 %v11748_v20, %v6939_v51 }
 0x519   :  { %v12347_v0 = vpop.f32.mrf.mxu1  ;;  %v6942_v6 = vpop.f32.mrf.mxu0 }
 0x51a   :  { %v6943_v12 = vadd.f32 %v6942_v6, %v12310_v25  ;;  %v7262_v4 = vmul.f32 %v11748_v20, %v6941_v17  ;;  %v7279_v22 = vrot.slane %v7261_v13, 7  ;;  %v7333_v62 = vrot.slane %v7261_v13, 1 }
 0x51b   :  { %v12351_v18 = vpop.f32.mrf.mxu1  ;;  %v6944_v30 = vpop.f32.mrf.mxu0 }
 0x51c   :  { %v7267_v45 = vmul.f32 %v11754_v24, %v6943_v12  ;;  %v6945_v2 = vadd.f32 %v6944_v30, %v12314_v11  ;;  %v7280_v15 = vrot.slane %v7262_v4, 7  ;;  %v7334_v10 = vrot.slane %v7262_v4, 1 }
 0x51d   :  { %v12355_v23 = vpop.f32.mrf.mxu1  ;;  %7253 = vmatmul.mubr.bf16.gmra.mxu0 %v12289_v26  ;;  %v6948_v37 = vpop.f32.mrf.mxu0 }
 0x51e   :  { %v7285_v5 = vrot.slane %v7267_v45, 7  ;;  %v7339_v9 = vrot.slane %v7267_v45, 1  ;;  %v7268_v25 = vmul.f32 %v11754_v24, %v6945_v2  ;;  %v6949_v31 = vadd.f32 %v6948_v37, %v12319_v1 }
 0x51f   :  { %v12360_v8 = vpop.f32.mrf.mxu1  ;;  %v6950_v27 = vpop.f32.mrf.mxu0 }
 0x520   :  { %v7303_v11 = vsel %vm2473_vm2, %v7279_v22, %v7285_v5  ;;  %v7357_v54 = vsel %vm2528_vm3, %v7333_v62, %v7339_v9  ;;  %v7286_v47 = vrot.slane %v7268_v25, 7  ;;  %v7340_v26 = vrot.slane %v7268_v25, 1 }
 0x521   :  { %v7321_v55 = vadd.f32 %v7303_v11, %v7267_v45  ;;  %v7273_v21 = vmul.f32 0.0, %v6949_v31  ;;  %v6951_v32 = vadd.f32 %v6950_v27, %v12322_v48  ;;  %v12369_v1 = vpop.f32.mrf.mxu1  ;;  %v6952_v3 = vpop.f32.mrf.mxu0 }
 0x522   :  { %v7304_v33 = vsel %vm2473_vm2, %v7280_v15, %v7286_v47  ;;  %v7358_v41 = vsel %vm2528_vm3, %v7334_v10, %v7340_v26 }
 0x523   :  { %v7322_v61 = vadd.f32 %v7304_v33, %v7268_v25  ;;  %v7291_v39 = vrot.slane %v7273_v21, 7  ;;  %v7345_v34 = vrot.slane %v7273_v21, 1  ;;  %v7274_v42 = vmul.f32 0.0, %v6951_v32  ;;  %v7105_v35 = vpop.f32.mrf.mxu1  ;;  %v6953_v36 = vpop.f32.mrf.mxu0 }
 0x525   :  { %v7297_v48 = vsel %vm2473_vm2, %v7285_v5, %v7291_v39  ;;  %v7309_v57 = vsel %vm2473_vm2, %v7291_v39, %v7279_v22  ;;  %v7351_v52 = vsel %vm2528_vm3, %v7339_v9, %v7345_v34  ;;  %v7363_v14 = vsel %vm2528_vm3, %v7345_v34, %v7333_v62  ;;  %v7106_v16 = vpop.f32.mrf.mxu1 }
 0x526   :  { %v7315_v51 = vadd.f32 %v7309_v57, %v7261_v13  ;;  %v7327_v28 = vadd.f32 %v7297_v48, %v7273_v21  ;;  %v7375_v17 = vadd.f32 %v7351_v52, %v7321_v55  ;;  %v7292_v6 = vrot.slane %v7274_v42, 7 }
 0x527   :  { %v7346_v12 = vrot.slane %v7274_v42, 1 }
 0x528   :  { %v7369_v30 = vadd.f32 %v7357_v54, %v7315_v51  ;;  %v7381_v43 = vadd.f32 %v7363_v14, %v7327_v28  ;;  %v7393_v45 = vmul.f32 %v11754_v24, %v7375_v17  ;;  %v7298_v2 = vsel %vm2473_vm2, %v7286_v47, %v7292_v6 }
 0x529   :  { %v7310_v22 = vsel %vm2473_vm2, %v7292_v6, %v7280_v15  ;;  %v7328_v37 = vadd.f32 %v7298_v2, %v7274_v42  ;;  %v7352_v62 = vsel %vm2528_vm3, %v7340_v26, %v7346_v12  ;;  %v7364_v13 = vsel %vm2528_vm3, %v7346_v12, %v7334_v10  ;;  %v11112_v2 = vld [vmem:[#allocation16 + $0xf0] sm:$0xff]  }
 0x52a   :  { %v7387_v5 = vmul.f32 %v11748_v20, %v7369_v30  ;;  %v7399_v9 = vmul.f32 0.0, %v7381_v43  ;;  %v7443_v25 = vadd.f32 %v7410_v50, %v7393_v45  ;;  %v7316_v31 = vadd.f32 %v7310_v22, %v7262_v4  ;;  %v11111_v45 = vld [vmem:[#allocation16 + $0xb8] sm:$0xff]  }
 0x52b   :  { %v7376_v27 = vadd.f32 %v7352_v62, %v7322_v61  ;;  %v7382_v11 = vadd.f32 %v7364_v13, %v7328_v37  ;;  %v7414_v54 = vrot.slane %v12366_v53, %v11796_v60  ;;  %v11113_v37 = vld [vmem:[#allocation16 + $0xb0] sm:$0xff]   ;;  %v11114_v62 = vld [vmem:[#allocation16 + $0xe8] sm:$0xff]  }
 0x52c   :  { %v7437_v47 = vadd.f32 %v7410_v50, %v7387_v5  ;;  %v7449_v55 = vadd.f32 %v7410_v50, %v7399_v9  ;;  %11266 = vtanh.f32 %v7443_v25  ;;  %v7370_v15 = vadd.f32 %v7358_v41, %v7316_v31  ;;  %v11115_v13 = vld [vmem:[#allocation16 + $0xa8] sm:$0xff]   ;;  %v11116_v9 = vld [vmem:[#allocation16 + $0xe0] sm:$0xff]   ;;  %v11118_v31 = vld [vmem:[#allocation16 + $0xd8] sm:$0xff]  }
 0x52d   :  { %v7394_v21 = vmul.f32 %v11754_v24, %v7376_v27  ;;  %v7400_v26 = vmul.f32 0.0, %v7382_v11  ;;  %v11117_v25 = vld [vmem:[#allocation16 + $0xa0] sm:$0xff]   ;;  %v11119_v27 = vld [vmem:[#allocation16 + $0x98] sm:$0xff]  }
 0x52e   :  { %11268 = vtanh.f32 %v7437_v47  ;;  %v7388_v10 = vmul.f32 %v11748_v20, %v7370_v15 }
 0x52f   :  { %11270 = vtanh.f32 %v7449_v55  ;;  %v7444_v32 = vadd.f32 %v7414_v54, %v7394_v21  ;;  %v7450_v3 = vadd.f32 %v7414_v54, %v7400_v26 }
 0x530   :  { %v7438_v33 = vadd.f32 %v7414_v54, %v7388_v10  ;;  %v11120_v54 = vld [vmem:[#allocation16 + $0xd0] sm:$0xff]  }
 0x531   :  { %11272 = vtanh.f32 %v7444_v32  ;;  %v11121_v10 = vld [vmem:[#allocation16 + $0x90] sm:$0xff]  }
 0x532   :  { %11274 = vtanh.f32 %v7438_v33  ;;  %v11122_v33 = vld [vmem:[#allocation16 + $0xc8] sm:$0xff]  }
 0x533   :  { %11276 = vtanh.f32 %v7450_v3 }
 0x539   :  { %v12399_v4 = vpop.eup %11266 }
 0x53a   :  { %v7479_v39 = vrot.slane %v12399_v4, 1 }
 0x53b   :  { %v12401_v60 = vpop.eup %11268 }
 0x53c   :  { %v12403_v61 = vpop.eup %11270  ;;  %v7473_v41 = vrot.slane %v12401_v60, 1  ;;  %v7509_v34 = vpack.c.bf16 %v12399_v4, %v12401_v60  ;;  %v11159_v4 = vld [vmem:[#allocation14 + $0x118] sm:$0xff]   ;;  %v11162_v60 = vld [vmem:[#allocation14 + $0x150] sm:$0xff]  }
 0x53d   :  { %v7485_v42 = vrot.slane %v12403_v61, 1 }
 0x53e   :  { %v12410_v35 = vpop.eup %11272  ;;  %v7497_v36 = vsel %vm2528_vm3, %v7473_v41, %v7479_v39 }
 0x53f   :  { %v12414_v50 = vpop.eup %11274  ;;  %v7491_v48 = vsel %vm2528_vm3, %v7479_v39, %v7485_v42  ;;  %v7503_v57 = vsel %vm2528_vm3, %v7485_v42, %v7473_v41  ;;  %v7480_v16 = vrot.slane %v12410_v35, 1 }
 0x540   :  { %v12420_v52 = vpop.eup %11276  ;;  %v7474_v14 = vrot.slane %v12414_v50, 1  ;;  %v7617_v51 = vpack.c.bf16 %v7491_v48, %v7497_v36  ;;  %v7510_v28 = vpack.c.bf16 %v12410_v35, %v12414_v50  ;;  %v7623_v5 = vpack.c.bf16 %v7503_v57, %v7503_v57  ;;  %v11138_v50 = vld [vmem:[#allocation14 + $0x48] sm:$0xff]  }
 0x541   :  { %v7486_v17 = vrot.slane %v12420_v52, 1 }
 0x542   :  { %v7498_v6 = vsel %vm2528_vm3, %v7474_v14, %v7480_v16 }
 0x543   :  { %v7492_v12 = vsel %vm2528_vm3, %v7480_v16, %v7486_v17  ;;  %v7504_v30 = vsel %vm2528_vm3, %v7486_v17, %v7474_v14 }
 0x544   :  { %v7618_v43 = vpack.c.bf16 %v7492_v12, %v7498_v6  ;;  %v7624_v22 = vpack.c.bf16 %v7504_v30, %v7504_v30 }
 0x546   :  { %8045 = vmatprep.mubr.bf16.mxu1 %v7618_v43 }
 0x547   :  { %8046 = vmatmul.mubr.bf16.vlgmr.msra.gmra.mxu1 %v7617_v51 }
 0x548   :  { %8053 = vmatprep.mubr.bf16.mxu1 %v7624_v22  ;;  %9626 = vmatpush3.bf16.msra.mxu1 %v11111_v45  ;;  %v11125_v22 = vld [vmem:[#allocation16 + $0x80] sm:$0xff]  }
 0x549   :  { %9627 = vmatprep.subr.bf16.mxu1 %v11112_v2 }
 0x54c   :  { %9628 = vmatpush3.bf16.msra.mxu1 %v11113_v37 }
 0x54d   :  { %9629 = vmatprep.subr.bf16.mxu1 %v11114_v62 }
 0x54f   :  { %8054 = vmatmul.mubr.bf16.gmra.mxu1 %v7623_v5 }
 0x550   :  { %9630 = vmatpush3.bf16.msra.mxu1 %v11115_v13 }
 0x551   :  { %9631 = vmatprep.subr.bf16.mxu1 %v11116_v9 }
 0x554   :  { %9632 = vmatpush3.bf16.msra.mxu1 %v11117_v25 }
 0x555   :  { %v7040_v11 = vpop.f32.mrf.mxu0  ;;  %9633 = vmatprep.subr.bf16.mxu1 %v11118_v31 }
 0x556   :  { %v7041_v47 = vadd.f32 %v7040_v11, %v12326_v56 }
 0x557   :  { %v7042_v55 = vpop.f32.mrf.mxu0  ;;  %v12434_v15 = vpop.f32.mrf.mxu1 }
 0x558   :  { %v7092_v21 = vadd.f32 %v12343_v44, %v7041_v47  ;;  %v7043_v26 = vadd.f32 %v7042_v55, %v12328_v59  ;;  %9634 = vmatpush3.bf16.msra.mxu1 %v11119_v27  ;;  %v11123_v59 = vld [vmem:[#allocation16 + $0x88] sm:$0xff]  }
 0x559   :  { %v7044_v32 = vpop.f32.mrf.mxu0  ;;  %v12438_v3 = vpop.f32.mrf.mxu1  ;;  %9635 = vmatprep.subr.bf16.mxu1 %v11120_v54 }
 0x55a   :  { %v7094_v41 = vadd.f32 %v12347_v0, %v7043_v26  ;;  %v7045_v39 = vadd.f32 %v7044_v32, %v12330_v40  ;;  %v7263_v56 = vmul.f32 %v11748_v20, %v7092_v21  ;;  %v11124_v0 = vld [vmem:[#allocation16 + $0xc0] sm:$0xff]  }
 0x55b   :  { %v7046_v42 = vpop.f32.mrf.mxu0  ;;  %v12443_v36 = vpop.f32.mrf.mxu1 }
 0x55c   :  { %v7096_v44 = vadd.f32 %v12351_v18, %v7045_v39  ;;  %9636 = vmatpush3.bf16.msra.mxu1 %v11121_v10  ;;  %v12447_v48 = vmul.f32 %v11748_v20, %v7094_v41  ;;  %v7047_v57 = vadd.f32 %v7046_v42, %v12332_v58  ;;  %v7281_v17 = vrot.slane %v7263_v56, 7  ;;  %v11144_v10 = vld [vmem:[#allocation16 + $0x178] sm:$0xff]  }
 0x55d   :  { %v7050_v14 = vpop.f32.mrf.mxu0  ;;  %v12450_v16 = vpop.f32.mrf.mxu1  ;;  %9637 = vmatprep.subr.bf16.mxu1 %v11122_v33  ;;  %v7335_v6 = vrot.slane %v7263_v56, 1  ;;  %v11145_v39 = vld [vmem:[#allocation16 + $0x138] sm:$0xff]   ;;  %9653 = vmatprep.subr.bf16.mxu0 %v11144_v10 }
 0x55e   :  { %v7269_v40 = vmul.f32 %v11754_v24, %v7096_v44  ;;  %v7051_v51 = vadd.f32 %v7050_v14, %v12336_v19  ;;  %v7098_v18 = vadd.f32 %v12355_v23, %v7047_v57  ;;  %v7282_v37 = vrot.slane %v12447_v48, 7  ;;  %v11126_v23 = vld [vmem:[#allocation14 + $0x78] sm:$0xff]   ;;  %9654 = vmatpush3.bf16.msra.mxu0 %v11145_v39  ;;  %v11165_v39 = vld [vmem:[#allocation16 + $0x110] sm:$0xff]  }
 0x55f   :  { %v7052_v12 = vpop.f32.mrf.mxu0  ;;  %v12455_v30 = vpop.f32.mrf.mxu1  ;;  %v7336_v25 = vrot.slane %v12447_v48, 1 }
 0x560   :  { %v7287_v43 = vrot.slane %v7269_v40, 7  ;;  %v7341_v45 = vrot.slane %v7269_v40, 1  ;;  %v7102_v58 = vadd.f32 %v12360_v8, %v7051_v51  ;;  %v7053_v2 = vadd.f32 %v7052_v12, %v12338_v29  ;;  %9638 = vmatpush3.bf16.msra.mxu1 %v11123_v59  ;;  %v11148_v12 = vld [vmem:[#allocation16 + $0x170] sm:$0xff]  }
 0x561   :  { %v7270_v62 = vmul.f32 %v11754_v24, %v7098_v18  ;;  %v7054_v19 = vpop.f32.mrf.mxu0  ;;  %v12461_v13 = vpop.f32.mrf.mxu1  ;;  %9639 = vmatprep.subr.bf16.mxu1 %v11124_v0  ;;  %9655 = vmatprep.subr.bf16.mxu0 %v11148_v12 }
 0x562   :  { %v7305_v5 = vsel %vm2473_vm2, %v7281_v17, %v7287_v43  ;;  %v7359_v9 = vsel %vm2528_vm3, %v7335_v6, %v7341_v45  ;;  %v7275_v8 = vmul.f32 0.0, %v7102_v58  ;;  %v7104_v29 = vadd.f32 %v12369_v1, %v7053_v2 }
 0x563   :  { %v7323_v31 = vadd.f32 %v7305_v5, %v7269_v40  ;;  %v7288_v27 = vrot.slane %v7270_v62, 7  ;;  %v7342_v11 = vrot.slane %v7270_v62, 1  ;;  %v7055_v54 = vpop.f32.mrf.mxu0  ;;  %v7207_v47 = vpop.f32.mrf.mxu1  ;;  %v7418_v1 = vrot.slane %v12366_v53, %v11852_v7 }
 0x564   :  { %v7293_v55 = vrot.slane %v7275_v8, 7  ;;  %v7347_v21 = vrot.slane %v7275_v8, 1  ;;  %v7276_v26 = vmul.f32 0.0, %v7104_v29  ;;  %9640 = vmatpush3.bf16.msra.mxu1 %v11125_v22  ;;  %v11149_v22 = vld [vmem:[#allocation16 + $0x130] sm:$0xff]   ;;  %v7422_v29 = vrot.slane %v12366_v53, %v11872_v38  ;;  %v11153_v54 = vld [vmem:[#allocation16 + $0x128] sm:$0xff]   ;;  %v11157_v38 = vld [vmem:[#allocation16 + $0x120] sm:$0xff]  }
 0x565   :  { %v7306_v32 = vsel %vm2473_vm2, %v7282_v37, %v7288_v27  ;;  %v7360_v33 = vsel %vm2528_vm3, %v7336_v25, %v7342_v11  ;;  %v7208_v41 = vpop.f32.mrf.mxu1  ;;  %9681 = vmatprep.subr.bf16.mxu1 %v11126_v23  ;;  %9656 = vmatpush3.bf16.msra.mxu0 %v11149_v22 }
 0x566   :  { %v7324_v42 = vadd.f32 %v7306_v32, %v7270_v62  ;;  %v7299_v44 = vsel %vm2473_vm2, %v7287_v43, %v7293_v55  ;;  %v7311_v59 = vsel %vm2473_vm2, %v7293_v55, %v7281_v17  ;;  %v7353_v57 = vsel %vm2528_vm3, %v7341_v45, %v7347_v21  ;;  %v11164_v41 = vld [vmem:[#allocation16 + $0x150] sm:$0xff]  }
 0x567   :  { %v7317_v14 = vadd.f32 %v7311_v59, %v7263_v56  ;;  %v7329_v0 = vadd.f32 %v7299_v44, %v7275_v8  ;;  %v7365_v40 = vsel %vm2528_vm3, %v7347_v21, %v7335_v6  ;;  %v7377_v7 = vadd.f32 %v7353_v57, %v7323_v31  ;;  %v11169_v59 = vld [vmem:[#allocation16 + $0x108] sm:$0xff]  }
 0x568   :  { %v7294_v51 = vrot.slane %v7276_v26, 7  ;;  %v7348_v18 = vrot.slane %v7276_v26, 1 }
 0x569   :  { %v7371_v58 = vadd.f32 %v7359_v9, %v7317_v14  ;;  %v7383_v2 = vadd.f32 %v7365_v40, %v7329_v0  ;;  %v7395_v43 = vmul.f32 %v11754_v24, %v7377_v7  ;;  %v11172_v14 = vld [vmem:[#allocation16 + $0x140] sm:$0xff]  }
 0x56a   :  { %v7300_v17 = vsel %vm2473_vm2, %v7288_v27, %v7294_v51  ;;  %v7312_v56 = vsel %vm2473_vm2, %v7294_v51, %v7282_v37  ;;  %v7354_v45 = vsel %vm2528_vm3, %v7342_v11, %v7348_v18  ;;  %v7366_v6 = vsel %vm2528_vm3, %v7348_v18, %v7336_v25  ;;  %v11152_v37 = vld [vmem:[#allocation16 + $0x168] sm:$0xff]  }
 0x56b   :  { %v7389_v62 = vmul.f32 %v11748_v20, %v7371_v58  ;;  %v7401_v19 = vmul.f32 0.0, %v7383_v2  ;;  %v7445_v23 = vadd.f32 %v7418_v1, %v7395_v43  ;;  %v7318_v5 = vadd.f32 %v7312_v56, %v12447_v48  ;;  %9657 = vmatprep.subr.bf16.mxu0 %v11152_v37  ;;  %v11173_v2 = vld [vmem:[#allocation16 + $0x100] sm:$0xff]  }
 0x56c   :  { %v7330_v9 = vadd.f32 %v7300_v17, %v7276_v26  ;;  %v7378_v8 = vadd.f32 %v7354_v45, %v7324_v42  ;;  %9658 = vmatpush3.bf16.msra.mxu0 %v11153_v54  ;;  %v11156_v26 = vld [vmem:[#allocation16 + $0x160] sm:$0xff]   ;;  %v11168_v42 = vld [vmem:[#allocation16 + $0x148] sm:$0xff]   ;;  %v11129_v54 = vld [vmem:[#allocation14 + $0x30] sm:$0xff]  }
 0x56d   :  { %v7439_v31 = vadd.f32 %v7418_v1, %v7389_v62  ;;  %v7451_v27 = vadd.f32 %v7418_v1, %v7401_v19  ;;  %11278 = vtanh.f32 %v7445_v23  ;;  %v7372_v11 = vadd.f32 %v7360_v33, %v7318_v5  ;;  %9659 = vmatprep.subr.bf16.mxu0 %v11156_v26  ;;  %v11160_v33 = vld [vmem:[#allocation16 + $0x158] sm:$0xff]  }
 0x56e   :  { %v7384_v25 = vadd.f32 %v7366_v6, %v7330_v9  ;;  %v7396_v47 = vmul.f32 %v11754_v24, %v7378_v8  ;;  %v11161_v1 = vld [vmem:[#allocation16 + $0x118] sm:$0xff]  }
 0x56f   :  { %11280 = vtanh.f32 %v7439_v31  ;;  %v7390_v55 = vmul.f32 %v11748_v20, %v7372_v11  ;;  %v11127_v31 = vld [vmem:[#allocation14 + $0x38] sm:$0xff]  }
 0x570   :  { %11282 = vtanh.f32 %v7451_v27  ;;  %v7402_v48 = vmul.f32 0.0, %v7384_v25  ;;  %v7446_v21 = vadd.f32 %v7422_v29, %v7396_v47  ;;  %9660 = vmatpush3.bf16.msra.mxu0 %v11157_v38  ;;  %v11128_v27 = vld [vmem:[#allocation14 + $0x70] sm:$0xff]   ;;  %v11130_v25 = vld [vmem:[#allocation14 + $0x68] sm:$0xff]   ;;  %v11134_v26 = vld [vmem:[#allocation14 + $0x58] sm:$0xff]  }
 0x571   :  { %v7440_v10 = vadd.f32 %v7422_v29, %v7390_v55  ;;  %9661 = vmatprep.subr.bf16.mxu0 %v11160_v33  ;;  %v11131_v47 = vld [vmem:[#allocation14 + $0x28] sm:$0xff]   ;;  %v11135_v38 = vld [vmem:[#allocation14 + $0x18] sm:$0xff]   ;;  %v11136_v33 = vld [vmem:[#allocation14 + $0x50] sm:$0xff]  }
 0x572   :  { %v7452_v32 = vadd.f32 %v7422_v29, %v7402_v48  ;;  %11284 = vtanh.f32 %v7446_v21  ;;  %v11174_v29 = vld [vmem:[#allocation14 + $0xf8] sm:$0xff]   ;;  %v11132_v48 = vld [vmem:[#allocation14 + $0x60] sm:$0xff]  }
 0x573   :  { %11286 = vtanh.f32 %v7440_v10  ;;  %v11133_v21 = vld [vmem:[#allocation14 + $0x20] sm:$0xff]  }
 0x574   :  { %11288 = vtanh.f32 %v7452_v32  ;;  %9662 = vmatpush3.bf16.msra.mxu0 %v11161_v1 }
 0x575   :  { %9663 = vmatprep.subr.bf16.mxu0 %v11164_v41 }
 0x578   :  { %9664 = vmatpush3.bf16.msra.mxu0 %v11165_v39 }
 0x579   :  { %9665 = vmatprep.subr.bf16.mxu0 %v11168_v42  ;;  %v11137_v42 = vld [vmem:[#allocation14 + $0x10] sm:$0xff]  }
 0x57a   :  { %v12498_v44 = vpop.eup %11278 }
 0x57b   :  { %v7481_v7 = vrot.slane %v12498_v44, 1 }
 0x57c   :  { %v12500_v57 = vpop.eup %11280  ;;  %9666 = vmatpush3.bf16.msra.mxu0 %v11169_v59 }
 0x57d   :  { %v12502_v0 = vpop.eup %11282  ;;  %v7475_v40 = vrot.slane %v12500_v57, 1  ;;  %v7511_v51 = vpack.c.bf16 %v12498_v44, %v12500_v57  ;;  %9667 = vmatprep.subr.bf16.mxu0 %v11172_v14 }
 0x57e   :  { %v7487_v18 = vrot.slane %v12502_v0, 1 }
 0x57f   :  { %v12509_v12 = vpop.eup %11284  ;;  %v7499_v58 = vsel %vm2528_vm3, %v7475_v40, %v7481_v7 }
 0x580   :  { %v12513_v43 = vpop.eup %11286  ;;  %v7493_v22 = vsel %vm2528_vm3, %v7481_v7, %v7487_v18  ;;  %v7505_v17 = vsel %vm2528_vm3, %v7487_v18, %v7475_v40  ;;  %v7482_v6 = vrot.slane %v12509_v12, 1  ;;  %9668 = vmatpush3.bf16.msra.mxu0 %v11173_v2  ;;  %v11139_v40 = vld [vmem:[#allocation14 + $0x8] sm:$0xff]   ;;  %v11140_v7 = vld [vmem:[#allocation14 + $0x40] sm:$0xff]  }
 0x581   :  { %v12519_v56 = vpop.eup %11288  ;;  %v7476_v45 = vrot.slane %v12513_v43, 1  ;;  %v7619_v62 = vpack.c.bf16 %v7493_v22, %v7499_v58  ;;  %v7512_v19 = vpack.c.bf16 %v12509_v12, %v12513_v43  ;;  %9709 = vmatprep.subr.bf16.mxu0 %v11174_v29  ;;  %v7625_v55 = vpack.c.bf16 %v7505_v17, %v7505_v17  ;;  %v11141_v2 = vld [vmem:[#allocation14] sm:$0xff]   ;;  %v11146_v17 = vld [vmem:[#allocation14 + $0x170] sm:$0xff]  }
 0x582   :  { %v7488_v23 = vrot.slane %v12519_v56, 1  ;;  %v11170_v29 = vld [vmem:[#allocation14 + $0x140] sm:$0xff]  }
 0x583   :  { %v7500_v5 = vsel %vm2528_vm3, %v7476_v45, %v7482_v6  ;;  %v11188_v12 = vld [vmem:[#allocation14 + $0xc0] sm:$0xff]  }
 0x584   :  { %v7494_v9 = vsel %vm2528_vm3, %v7482_v6, %v7488_v23  ;;  %v7506_v8 = vsel %vm2528_vm3, %v7488_v23, %v7476_v45  ;;  %v7516_v45 = vpack.c.bf16 %v12420_v52, %v12420_v52  ;;  %v11151_v6 = vld [vmem:[#allocation14 + $0x128] sm:$0xff]   ;;  %v11154_v23 = vld [vmem:[#allocation14 + $0x160] sm:$0xff]   ;;  %v11158_v52 = vld [vmem:[#allocation14 + $0x158] sm:$0xff]  }
 0x585   :  { %v7620_v37 = vpack.c.bf16 %v7494_v9, %v7500_v5  ;;  %v7626_v11 = vpack.c.bf16 %v7506_v8, %v7506_v8  ;;  %v11155_v5 = vld [vmem:[#allocation14 + $0x120] sm:$0xff]   ;;  %v11166_v9 = vld [vmem:[#allocation14 + $0x148] sm:$0xff]  }
 0x586   :  { %v11167_v8 = vld [vmem:[#allocation14 + $0x108] sm:$0xff]   ;;  %v11189_v43 = vld [vmem:[#allocation14 + $0x80] sm:$0xff]  }
 0x587   :  { %8093 = vmatprep.mubr.bf16.mxu1 %v7620_v37 }
 0x588   :  { %8094 = vmatmul.mubr.bf16.vlgmr.msra.gmra.mxu1 %v7619_v62  ;;  %v7515_v62 = vpack.c.bf16 %v12403_v61, %v12403_v61  ;;  %v11171_v61 = vld [vmem:[#allocation14 + $0x100] sm:$0xff]  }
 0x589   :  { %9682 = vmatpush3.bf16.msra.mxu1 %v11127_v31  ;;  %8101 = vmatprep.mubr.bf16.mxu1 %v7626_v11 }
 0x58a   :  { %9683 = vmatprep.subr.bf16.mxu1 %v11128_v27 }
 0x58d   :  { %9684 = vmatpush3.bf16.msra.mxu1 %v11129_v54 }
 0x58e   :  { %9685 = vmatprep.subr.bf16.mxu1 %v11130_v25 }
 0x590   :  { %8102 = vmatmul.mubr.bf16.gmra.mxu1 %v7625_v55 }
 0x591   :  { %9686 = vmatpush3.bf16.msra.mxu1 %v11131_v47  ;;  %8477 = vmatprep.mubr.bf16.mxu1 %v7510_v28 }
 0x592   :  { %9687 = vmatprep.subr.bf16.mxu1 %v11132_v48 }
 0x595   :  { %9688 = vmatpush3.bf16.msra.mxu1 %v11133_v21  ;;  %v7142_v10 = vpop.f32.mrf.mxu0 }
 0x596   :  { %9689 = vmatprep.subr.bf16.mxu1 %v11134_v26  ;;  %v12536_v32 = vadd.f32 %v12434_v15, %v7142_v10 }
 0x597   :  { %v7144_v1 = vpop.f32.mrf.mxu0 }
 0x598   :  { %v12539_v41 = vadd.f32 %v12438_v3, %v7144_v1 }
 0x599   :  { %9690 = vmatpush3.bf16.msra.mxu1 %v11135_v38  ;;  %v7146_v39 = vpop.f32.mrf.mxu0 }
 0x59a   :  { %9691 = vmatprep.subr.bf16.mxu1 %v11136_v33  ;;  %v7198_v35 = vadd.f32 %v12443_v36, %v7146_v39  ;;  %v11142_v36 = vld [vmem:[#allocation14 + $0x178] sm:$0xff]  }
 0x59b   :  { %v7148_v28 = vpop.f32.mrf.mxu0 }
 0x59c   :  { %v7200_v59 = vadd.f32 %v12450_v16, %v7148_v28  ;;  %v11143_v16 = vld [vmem:[#allocation14 + $0x138] sm:$0xff]  }
 0x59d   :  { %9692 = vmatpush3.bf16.msra.mxu1 %v11137_v42  ;;  %v7152_v14 = vpop.f32.mrf.mxu0 }
 0x59e   :  { %9693 = vmatprep.subr.bf16.mxu1 %v11138_v50  ;;  %v12544_v15 = vadd.f32 %v12455_v30, %v7152_v14  ;;  %v11147_v30 = vld [vmem:[#allocation14 + $0x130] sm:$0xff]  }
 0x59f   :  { %v7154_v3 = vpop.f32.mrf.mxu0 }
 0x5a0   :  { %v12547_v18 = vadd.f32 %v12461_v13, %v7154_v3  ;;  %v11150_v13 = vld [vmem:[#allocation14 + $0x168] sm:$0xff]  }
 0x5a1   :  { %9694 = vmatpush3.bf16.msra.mxu1 %v11139_v40  ;;  %v7156_v58 = vpop.f32.mrf.mxu0 }
 0x5a2   :  { %9695 = vmatprep.subr.bf16.mxu1 %v11140_v7 }
 0x5a3   :  { %v7157_v22 = vpop.f32.mrf.mxu0 }
 0x5a5   :  { %9696 = vmatpush3.bf16.msra.mxu1 %v11141_v2 }
 0x5a6   :  { %9737 = vmatprep.subr.bf16.mxu1 %v11142_v36 }
 0x5a8   :  { %8478 = vmatmul.mubr.bf16.vlgmr.msra.gmra.mxu1 %v7509_v34  ;;  %v11163_v34 = vld [vmem:[#allocation14 + $0x110] sm:$0xff]  }
 0x5a9   :  { %8485 = vmatprep.mubr.bf16.mxu1 %v7516_v45  ;;  %9738 = vmatpush3.bf16.msra.mxu1 %v11143_v16 }
 0x5aa   :  { %9739 = vmatprep.subr.bf16.mxu1 %v11146_v17 }
 0x5ad   :  { %9740 = vmatpush3.bf16.msra.mxu1 %v11147_v30 }
 0x5ae   :  { %9741 = vmatprep.subr.bf16.mxu1 %v11150_v13  ;;  %v7426_v13 = vrot.slane %v12366_v53, %v11929_v49 }
 0x5b0   :  { %8486 = vmatmul.mubr.bf16.gmra.mxu1 %v7515_v62 }
 0x5b1   :  { %9742 = vmatpush3.bf16.msra.mxu1 %v11151_v6 }
 0x5b2   :  { %9743 = vmatprep.subr.bf16.mxu1 %v11154_v23 }
 0x5b5   :  { %9744 = vmatpush3.bf16.msra.mxu1 %v11155_v5 }
 0x5b6   :  { %9745 = vmatprep.subr.bf16.mxu1 %v11158_v52 }
 0x5b9   :  { %9746 = vmatpush3.bf16.msra.mxu1 %v11159_v4 }
 0x5ba   :  { %9747 = vmatprep.subr.bf16.mxu1 %v11162_v60 }
 0x5bd   :  { %9748 = vmatpush3.bf16.msra.mxu1 %v11163_v34 }
 0x5be   :  { %9749 = vmatprep.subr.bf16.mxu1 %v11166_v9 }
 0x5c1   :  { %9750 = vmatpush3.bf16.msra.mxu1 %v11167_v8 }
 0x5c2   :  { %9751 = vmatprep.subr.bf16.mxu1 %v11170_v29 }
 0x5c5   :  { %9752 = vmatpush3.bf16.msra.mxu1 %v11171_v61 }
 0x5d5   :  { %v7244_v37 = vpop.f32.mrf.mxu0 }
 0x5d6   :  { %v7245_v31 = vadd.f32 %v7244_v37, %v12536_v32 }
 0x5d7   :  { %v7246_v27 = vpop.f32.mrf.mxu0 }
 0x5d8   :  { %v7247_v11 = vadd.f32 %v7246_v27, %v12539_v41  ;;  %v7265_v54 = vmul.f32 %v11748_v20, %v7245_v31 }
 0x5d9   :  { %v7248_v25 = vpop.f32.mrf.mxu0 }
 0x5da   :  { %v7249_v47 = vadd.f32 %v7248_v25, %v7198_v35  ;;  %v7266_v55 = vmul.f32 %v11748_v20, %v7247_v11  ;;  %v7283_v10 = vrot.slane %v7265_v54, 7  ;;  %v7337_v38 = vrot.slane %v7265_v54, 1 }
 0x5db   :  { %v7250_v48 = vpop.f32.mrf.mxu0 }
 0x5dc   :  { %v7271_v21 = vmul.f32 %v11754_v24, %v7249_v47  ;;  %v7251_v26 = vadd.f32 %v7250_v48, %v7200_v59  ;;  %v7284_v41 = vrot.slane %v7266_v55, 7  ;;  %v7338_v50 = vrot.slane %v7266_v55, 1 }
 0x5dd   :  { %v7254_v33 = vpop.f32.mrf.mxu0 }
 0x5de   :  { %v7289_v1 = vrot.slane %v7271_v21, 7  ;;  %v7343_v39 = vrot.slane %v7271_v21, 1  ;;  %v7272_v32 = vmul.f32 %v11754_v24, %v7251_v26  ;;  %v7255_v42 = vadd.f32 %v7254_v33, %v12544_v15 }
 0x5df   :  { %v7256_v28 = vpop.f32.mrf.mxu0  ;;  %v7430_v26 = vrot.slane %v12366_v53, %v11960_v63 }
 0x5e0   :  { %v7307_v35 = vsel %vm2473_vm2, %v7283_v10, %v7289_v1  ;;  %v7361_v14 = vsel %vm2528_vm3, %v7337_v38, %v7343_v39  ;;  %v7290_v40 = vrot.slane %v7272_v32, 7  ;;  %v7344_v59 = vrot.slane %v7272_v32, 1 }
 0x5e1   :  { %v7325_v7 = vadd.f32 %v7307_v35, %v7271_v21  ;;  %v7277_v3 = vmul.f32 0.0, %v7255_v42  ;;  %v7257_v58 = vadd.f32 %v7256_v28, %v12547_v18  ;;  %v7258_v2 = vpop.f32.mrf.mxu0 }
 0x5e2   :  { %v7308_v36 = vsel %vm2473_vm2, %v7284_v41, %v7290_v40  ;;  %v7362_v15 = vsel %vm2528_vm3, %v7338_v50, %v7344_v59 }
 0x5e3   :  { %v7326_v22 = vadd.f32 %v7308_v36, %v7272_v32  ;;  %v7295_v16 = vrot.slane %v7277_v3, 7  ;;  %v7349_v17 = vrot.slane %v7277_v3, 1  ;;  %v7278_v45 = vmul.f32 0.0, %v7257_v58  ;;  %v7259_v30 = vpop.f32.mrf.mxu0 }
 0x5e5   :  { %v7301_v6 = vsel %vm2473_vm2, %v7289_v1, %v7295_v16  ;;  %v7313_v18 = vsel %vm2473_vm2, %v7295_v16, %v7283_v10  ;;  %v7355_v62 = vsel %vm2528_vm3, %v7343_v39, %v7349_v17  ;;  %v7367_v23 = vsel %vm2528_vm3, %v7349_v17, %v7337_v38 }
 0x5e6   :  { %v7319_v5 = vadd.f32 %v7313_v18, %v7265_v54  ;;  %v7331_v52 = vadd.f32 %v7301_v6, %v7277_v3  ;;  %v7379_v4 = vadd.f32 %v7355_v62, %v7325_v7  ;;  %v7296_v60 = vrot.slane %v7278_v45, 7  ;;  %v11175_v18 = vld [vmem:[#allocation14 + $0xb8] sm:$0xff]   ;;  %v11176_v62 = vld [vmem:[#allocation14 + $0xf0] sm:$0xff]  }
 0x5e7   :  { %v7350_v34 = vrot.slane %v7278_v45, 1 }
 0x5e8   :  { %v7373_v9 = vadd.f32 %v7361_v14, %v7319_v5  ;;  %v7385_v8 = vadd.f32 %v7367_v23, %v7331_v52  ;;  %v7397_v49 = vmul.f32 %v11754_v24, %v7379_v4  ;;  %v7302_v29 = vsel %vm2473_vm2, %v7290_v40, %v7296_v60  ;;  %v11177_v52 = vld [vmem:[#allocation14 + $0xb0] sm:$0xff]  }
 0x5e9   :  { %v7314_v61 = vsel %vm2473_vm2, %v7296_v60, %v7284_v41  ;;  %v7332_v37 = vadd.f32 %v7302_v29, %v7278_v45  ;;  %v7356_v31 = vsel %vm2528_vm3, %v7344_v59, %v7350_v34  ;;  %v7368_v27 = vsel %vm2528_vm3, %v7350_v34, %v7338_v50  ;;  %v11178_v34 = vld [vmem:[#allocation14 + $0xe8] sm:$0xff]  }
 0x5ea   :  { %v7391_v11 = vmul.f32 %v11748_v20, %v7373_v9  ;;  %v7403_v54 = vmul.f32 0.0, %v7385_v8  ;;  %v7447_v25 = vadd.f32 %v7426_v13, %v7397_v49  ;;  %v7320_v47 = vadd.f32 %v7314_v61, %v7266_v55  ;;  %v11180_v61 = vld [vmem:[#allocation14 + $0xe0] sm:$0xff]  }
 0x5eb   :  { %v7380_v48 = vadd.f32 %v7356_v31, %v7326_v22  ;;  %v7386_v21 = vadd.f32 %v7368_v27, %v7332_v37  ;;  %v11181_v27 = vld [vmem:[#allocation14 + $0xa0] sm:$0xff]  }
 0x5ec   :  { %v7441_v10 = vadd.f32 %v7426_v13, %v7391_v11  ;;  %v7453_v38 = vadd.f32 %v7426_v13, %v7403_v54  ;;  %11290 = vtanh.f32 %v7447_v25  ;;  %v7374_v33 = vadd.f32 %v7362_v15, %v7320_v47  ;;  %v11182_v54 = vld [vmem:[#allocation14 + $0xd8] sm:$0xff]  }
 0x5ed   :  { %v7398_v1 = vmul.f32 %v11754_v24, %v7380_v48  ;;  %v7404_v39 = vmul.f32 0.0, %v7386_v21  ;;  %v11183_v48 = vld [vmem:[#allocation14 + $0x98] sm:$0xff]  }
 0x5ee   :  { %11292 = vtanh.f32 %v7441_v10  ;;  %v7392_v32 = vmul.f32 %v11748_v20, %v7374_v33  ;;  %v11185_v10 = vld [vmem:[#allocation14 + $0x90] sm:$0xff]   ;;  %v11187_v33 = vld [vmem:[#allocation14 + $0x88] sm:$0xff]  }
 0x5ef   :  { %11294 = vtanh.f32 %v7453_v38  ;;  %v7448_v42 = vadd.f32 %v7430_v26, %v7398_v1  ;;  %v7454_v41 = vadd.f32 %v7430_v26, %v7404_v39  ;;  %v11186_v38 = vld [vmem:[#allocation14 + $0xc8] sm:$0xff]   ;;  %v7517_v1 = vpack.c.bf16 %v12502_v0, %v12502_v0 }
 0x5f0   :  { %v7442_v50 = vadd.f32 %v7430_v26, %v7392_v32  ;;  %v11184_v26 = vld [vmem:[#allocation14 + $0xd0] sm:$0xff]  }
 0x5f1   :  { %11296 = vtanh.f32 %v7448_v42 }
 0x5f2   :  { %11298 = vtanh.f32 %v7442_v50 }
 0x5f3   :  { %11300 = vtanh.f32 %v7454_v41 }
 0x5f9   :  { %v11291_v55 = vpop.eup %11290 }
 0x5fa   :  { %v7483_v14 = vrot.slane %v11291_v55, 1 }
 0x5fb   :  { %v11293_v28 = vpop.eup %11292 }
 0x5fc   :  { %v11295_v63 = vpop.eup %11294  ;;  %v7513_v53 = vpack.c.bf16 %v11291_v55, %v11293_v28  ;;  %v7477_v35 = vrot.slane %v11293_v28, 1 }
 0x5fd   :  { %v7489_v40 = vrot.slane %v11295_v63, 1  ;;  %v7519_v60 = vpack.c.bf16 %v11295_v63, %v11295_v63 }
 0x5fe   :  { %v11297_v59 = vpop.eup %11296  ;;  %v7501_v24 = vsel %vm2528_vm3, %v7477_v35, %v7483_v14 }
 0x5ff   :  { %v11299_v7 = vpop.eup %11298  ;;  %v7495_v20 = vsel %vm2528_vm3, %v7483_v14, %v7489_v40  ;;  %v7507_v3 = vsel %vm2528_vm3, %v7489_v40, %v7477_v35  ;;  %v7484_v15 = vrot.slane %v11297_v59, 1 }
 0x600   :  { %v11301_v58 = vpop.eup %11300  ;;  %v7514_v2 = vpack.c.bf16 %v11297_v59, %v11299_v7  ;;  %v7478_v36 = vrot.slane %v11299_v7, 1  ;;  %v7621_v22 = vpack.c.bf16 %v7495_v20, %v7501_v24  ;;  %v7627_v29 = vpack.c.bf16 %v7507_v3, %v7507_v3 }
 0x601   :  { %v7490_v16 = vrot.slane %v11301_v58, 1  ;;  %v7520_v17 = vpack.c.bf16 %v11301_v58, %v11301_v58 }
 0x602   :  { %8573 = vmatprep.mubr.bf16.mxu1 %v7514_v2  ;;  %v7502_v45 = vsel %vm2528_vm3, %v7478_v36, %v7484_v15 }
 0x603   :  { %8574 = vmatmul.mubr.bf16.vlgmr.msra.gmra.mxu1 %v7513_v53  ;;  %v7496_v30 = vsel %vm2528_vm3, %v7484_v15, %v7490_v16  ;;  %v7508_v13 = vsel %vm2528_vm3, %v7490_v16, %v7478_v36 }
 0x604   :  { %8581 = vmatprep.mubr.bf16.mxu1 %v7520_v17  ;;  %v7622_v6 = vpack.c.bf16 %v7496_v30, %v7502_v45  ;;  %v7628_v23 = vpack.c.bf16 %v7508_v13, %v7508_v13 }
 0x606   :  { %8141 = vmatprep.mubr.bf16.mxu0 %v7622_v6 }
 0x607   :  { %8142 = vmatmul.mubr.bf16.vlgmr.msra.gmra.mxu0 %v7621_v22  ;;  %v9613_v5 = vpop.f32.mrf.mxu1 }
 0x608   :  { %9710 = vmatpush3.bf16.msra.mxu0 %v11175_v18  ;;  %8149 = vmatprep.mubr.bf16.mxu0 %v7628_v23 }
 0x609   :  { %v9614_v4 = vpop.f32.mrf.mxu1  ;;  %9711 = vmatprep.subr.bf16.mxu0 %v11176_v62 }
 0x60a   :  { %v9615_v9 = vadd.f32 %v9614_v4, %v9613_v5 }
 0x60b   :  { %v9616_v8 = vpop.f32.mrf.mxu1  ;;  %8582 = vmatmul.mubr.bf16.gmra.mxu1 %v7519_v60 }
 0x60c   :  { %9712 = vmatpush3.bf16.msra.mxu0 %v11177_v52 }
 0x60d   :  { %v9617_v49 = vpop.f32.mrf.mxu1  ;;  %9713 = vmatprep.subr.bf16.mxu0 %v11178_v34 }
 0x60e   :  { %v9618_v37 = vadd.f32 %v9617_v49, %v9616_v8 }
 0x60f   :  { %8150 = vmatmul.mubr.bf16.gmra.mxu0 %v7627_v29  ;;  %v9619_v31 = vpop.f32.mrf.mxu1 }
 0x610   :  { %9714 = vmatpush3.bf16.msra.mxu0 %v11179_v46  ;;  %8525 = vmatprep.mubr.bf16.mxu0 %v7512_v19  ;;  %v7518_v19 = vpack.c.bf16 %v12519_v56, %v12519_v56 }
 0x611   :  { %v9620_v11 = vpop.f32.mrf.mxu1  ;;  %9715 = vmatprep.subr.bf16.mxu0 %v11180_v61 }
 0x612   :  { %v9621_v25 = vadd.f32 %v9620_v11, %v9619_v31 }
 0x613   :  { %v9622_v47 = vpop.f32.mrf.mxu1 }
 0x614   :  { %9716 = vmatpush3.bf16.msra.mxu0 %v11181_v27 }
 0x615   :  { %v9623_v21 = vpop.f32.mrf.mxu1  ;;  %9717 = vmatprep.subr.bf16.mxu0 %v11182_v54 }
 0x618   :  { %9718 = vmatpush3.bf16.msra.mxu0 %v11183_v48 }
 0x619   :  { %9719 = vmatprep.subr.bf16.mxu0 %v11184_v26  ;;  %v9596_v26 = vld [vmem:[#allocation17] ss:$0 sm:$0xff] }
 0x61c   :  { %9720 = vmatpush3.bf16.msra.mxu0 %v11185_v10 }
 0x61d   :  { %9721 = vmatprep.subr.bf16.mxu0 %v11186_v38 }
 0x620   :  { %9722 = vmatpush3.bf16.msra.mxu0 %v11187_v33 }
 0x621   :  { %9723 = vmatprep.subr.bf16.mxu0 %v11188_v12 }
 0x624   :  { %9724 = vmatpush3.bf16.msra.mxu0 %v11189_v43 }
 0x627   :  { %8526 = vmatmul.mubr.bf16.vlgmr.msra.gmra.mxu0 %v7511_v51 }
 0x628   :  { %8533 = vmatprep.mubr.bf16.mxu0 %v7518_v19 }
 0x62f   :  { %8534 = vmatmul.mubr.bf16.gmra.mxu0 %v7517_v1 }
 0x648   :  { %v9641_v39 = vpop.f32.mrf.mxu1 }
 0x64a   :  { %v9642_v32 = vpop.f32.mrf.mxu1 }
 0x64b   :  { %v9643_v42 = vadd.f32 %v9642_v32, %v9641_v39 }
 0x64c   :  { %v9644_v41 = vpop.f32.mrf.mxu1 }
 0x64d   :  { %v8096_v50 = vadd.f32 %v9643_v42, %v9615_v9 }
 0x64e   :  { %v9645_v55 = vpop.f32.mrf.mxu1 }
 0x64f   :  { %v9646_v28 = vadd.f32 %v9645_v55, %v9644_v41 }
 0x650   :  { %v9647_v63 = vpop.f32.mrf.mxu1 }
 0x651   :  { %v8099_v53 = vadd.f32 %v9646_v28, %v9618_v37 }
 0x652   :  { %v9648_v35 = vpop.f32.mrf.mxu1 }
 0x653   :  { %v9649_v56 = vadd.f32 %v9648_v35, %v9647_v63 }
 0x654   :  { %v9650_v14 = vpop.f32.mrf.mxu1 }
 0x655   :  { %v8104_v40 = vadd.f32 %v9649_v56, %v9621_v25 }
 0x656   :  { %v9651_v44 = vpop.f32.mrf.mxu1 }
 0x668   :  { %v9697_v57 = vpop.f32.mrf.mxu1 }
 0x66a   :  { %v9698_v51 = vpop.f32.mrf.mxu1 }
 0x66b   :  { %v9699_v59 = vadd.f32 %v9698_v51, %v9697_v57 }
 0x66c   :  { %v9700_v24 = vpop.f32.mrf.mxu1 }
 0x66e   :  { %v9701_v0 = vpop.f32.mrf.mxu1 }
 0x66f   :  { %v9702_v7 = vadd.f32 %v9701_v0, %v9700_v24 }
 0x670   :  { %v9703_v20 = vpop.f32.mrf.mxu1 }
 0x672   :  { %v9704_v3 = vpop.f32.mrf.mxu1 }
 0x673   :  { %v9705_v58 = vadd.f32 %v9704_v3, %v9703_v20 }
 0x674   :  { %v9706_v2 = vpop.f32.mrf.mxu1 }
 0x676   :  { %v9707_v36 = vpop.f32.mrf.mxu1 }
 0x6c3   :  { %v9753_v15 = vpop.f32.mrf.mxu1 }
 0x6c5   :  { %v9754_v22 = vpop.f32.mrf.mxu1 }
 0x6c6   :  { %v9755_v48 = vadd.f32 %v9754_v22, %v9753_v15 }
 0x6c7   :  { %v9669_v16 = vpop.f32.mrf.mxu0  ;;  %v9756_v17 = vpop.f32.mrf.mxu1 }
 0x6c9   :  { %v9670_v45 = vpop.f32.mrf.mxu0  ;;  %v9757_v30 = vpop.f32.mrf.mxu1 }
 0x6ca   :  { %v9671_v13 = vadd.f32 %v9670_v45, %v9669_v16  ;;  %v9758_v43 = vadd.f32 %v9757_v30, %v9756_v17 }
 0x6cb   :  { %v9672_v6 = vpop.f32.mrf.mxu0  ;;  %v9759_v18 = vpop.f32.mrf.mxu1 }
 0x6cc   :  { %v8144_v62 = vadd.f32 %v9671_v13, %v8096_v50 }
 0x6cd   :  { %v9673_v23 = vpop.f32.mrf.mxu0  ;;  %v9760_v5 = vpop.f32.mrf.mxu1 }
 0x6ce   :  { %v9674_v52 = vadd.f32 %v9673_v23, %v9672_v6  ;;  %v8480_v4 = vadd.f32 %v9699_v59, %v8144_v62  ;;  %v9761_v50 = vadd.f32 %v9760_v5, %v9759_v18 }
 0x6cf   :  { %v9675_v60 = vpop.f32.mrf.mxu0  ;;  %v9762_v34 = vpop.f32.mrf.mxu1 }
 0x6d0   :  { %v8147_v9 = vadd.f32 %v9674_v52, %v8099_v53 }
 0x6d1   :  { %v9676_v8 = vpop.f32.mrf.mxu0  ;;  %v9763_v46 = vpop.f32.mrf.mxu1 }
 0x6d2   :  { %v9677_v49 = vadd.f32 %v9676_v8, %v9675_v60  ;;  %v8483_v29 = vadd.f32 %v9702_v7, %v8147_v9 }
 0x6d3   :  { %v9678_v61 = vpop.f32.mrf.mxu0 }
 0x6d4   :  { %v8152_v37 = vadd.f32 %v9677_v49, %v8104_v40 }
 0x6d5   :  { %v9679_v31 = vpop.f32.mrf.mxu0 }
 0x6d6   :  { %v8488_v27 = vadd.f32 %v9705_v58, %v8152_v37 }
 0x6e7   :  { %v9725_v11 = vpop.f32.mrf.mxu0 }
 0x6e9   :  { %v9726_v54 = vpop.f32.mrf.mxu0 }
 0x6ea   :  { %v9727_v25 = vadd.f32 %v9726_v54, %v9725_v11 }
 0x6eb   :  { %v9728_v47 = vpop.f32.mrf.mxu0 }
 0x6ec   :  { %v8528_v21 = vadd.f32 %v9727_v25, %v8480_v4 }
 0x6ed   :  { %v9729_v10 = vpop.f32.mrf.mxu0 }
 0x6ee   :  { %v8576_v38 = vadd.f32 %v9755_v48, %v8528_v21  ;;  %v9730_v33 = vadd.f32 %v9729_v10, %v9728_v47 }
 0x6ef   :  { %v9731_v12 = vpop.f32.mrf.mxu0 }
 0x6f0   :  { %v8596_v19 = vadd.f32 %v9596_v26, %v8576_v38  ;;  %v8531_v1 = vadd.f32 %v9730_v33, %v8483_v29 }
 0x6f1   :  { %v9732_v39 = vpop.f32.mrf.mxu0 }
 0x6f2   :  { %8599 = vst [vmem:[#allocation19] sm:$0xff] %v8596_v19  ;;  %v8579_v32 = vadd.f32 %v9758_v43, %v8531_v1  ;;  %v9733_v42 = vadd.f32 %v9732_v39, %v9731_v12 }
 0x6f3   :  { %v9734_v41 = vpop.f32.mrf.mxu0 }
 0x6f4   :  { %v8597_v55 = vadd.f32 %v9596_v26, %v8579_v32  ;;  %v8536_v28 = vadd.f32 %v9733_v42, %v8488_v27 }
 0x6f5   :  { %v9735_v63 = vpop.f32.mrf.mxu0 }
 0x6f6   :  { %8600 = vst [vmem:[#allocation19 + $0x8] sm:$0xff] %v8597_v55  ;;  %v8584_v53 = vadd.f32 %v9761_v50, %v8536_v28 }
 0x6f8   :  { %v8598_v35 = vadd.f32 %v9596_v26, %v8584_v53 }
 0x6fa   :  { %8601 = vst [vmem:[#allocation19 + $0x10] sm:$0xff] %v8598_v35 }
 0x6fb   :  { %11520 = shalt.err (!%p11517_p12)
}
 0x6fc   :  { %s11559_s12 = smov 128   ;;  %s11560_s21 = smov 8  }
 0x6fd   :  { %8613 = dma.vmem_to_hbm [thread:$0]  %s8608_s9, 384, %s12631_s10, [#allocation4], %s11559_s12, %s11559_s12, %s11560_s21  }
 0x6fe   :  { %11541 = dma.done.wait [#allocation4], 384  }
 0x6ff   :  { %11542 = vsyncadd [#allocation4], 4294966912 }
 0x700   :  { %8617 = vsyncpa [#allocation3], 1 }
 0x701   :  { %8618 = vsyncpa [#allocation6], 1 }
 0x702   :  { %8619 = vsyncpa [#allocation9], 1 }
 0x703   :  { %8620 = vsyncpa [#allocation12], 1 }
 0x704   :  { %8621 = vsyncpa [#allocation15], 1 }
 0x705   :  { %8622 = vsyncpa [#allocation18], 1 }
 0x706   :  { %8623 = vsyncpa [#allocation4], 1 }

</bundles_post_ra>
